<compile_context>
chip_gen: v7x
topology: tpu7x:2x2x1
jax: 0.10.0
libtpu: 0.0.40
codegen_flags: <defaults>
</compile_context>

<pallas_src>
import numpy as np

import jax
import jax.numpy as jnp
from jax import lax
from jax.experimental import pallas as pl
from jax.experimental.pallas import tpu as pltpu


# (cin, cout, k, stride, pad) for the four conv layers of CNNModel(hidden=32).
CONV_CFG = [(1, 16, 5, 2, 4), (16, 32, 3, 2, 1), (32, 64, 3, 2, 1), (64, 64, 3, 2, 1)]
CONV_WIN = [28, 16, 8, 4]       # interior (unpadded) input width per layer
CONV_KP = [128, 256, 256, 256]  # lane-padded contraction width per layer
DENSE_STEP = [1, 2, 4, 8]       # tap row spacing in the dense-row schedule
DENSE_ROWS = [32, 29, 25, 17]   # number of dense output rows computed per layer


# ---------------------------------------------------------------------------
# Fused Pallas kernel: conv1..conv4 (+Swish) -> fc1 (+Swish) -> fc2
# ---------------------------------------------------------------------------
def _ebm_fused_kernel(x_ref,
                      b1_ref, c1_ref, b2_ref, c2_ref,
                      b3_ref, c3_ref, b4_ref, c4_ref,
                      w1_ref, d1_ref, w2_ref, d2_ref,
                      o_ref):
    def swish(v):
        # x * sigmoid(x); exp and the approximate reciprocal both go to the EUP.
        return v * pl.reciprocal(1.0 + jnp.exp(-v), approx=True)

    def conv_rows(src, b_ref, bias_ref, k, step, rows):
        # src: (R, Kp) activation rows.  Dense row t of the output is
        #   swish( sum_i src[step*i + t, :] @ B[i] + bias ).
        # Real conv output row ho sits at dense offset 2*step*ho.
        q = b_ref.shape[2]
        acc = jnp.zeros((rows, q), jnp.float32)
        for i in range(k):                       # static unroll over kernel rows
            acc = acc + jnp.dot(src[step * i: step * i + rows, :], b_ref[i],
                                preferred_element_type=jnp.float32)
        return swish(acc + bias_ref[...])

    x1 = x_ref[0]                                                      # (36, 128)
    r1 = conv_rows(x1, b1_ref, c1_ref, 5, DENSE_STEP[0], DENSE_ROWS[0])  # (32, 256)
    s2 = jnp.concatenate([jnp.zeros((2, 256), jnp.float32), r1], axis=0)  # (34, 256)
    r2 = conv_rows(s2, b2_ref, c2_ref, 3, DENSE_STEP[1], DENSE_ROWS[1])  # (29, 256)
    s3 = jnp.concatenate([jnp.zeros((4, 256), jnp.float32), r2], axis=0)  # (33, 256)
    r3 = conv_rows(s3, b3_ref, c3_ref, 3, DENSE_STEP[2], DENSE_ROWS[2])  # (25, 256)
    s4 = jnp.concatenate([jnp.zeros((8, 256), jnp.float32), r3], axis=0)  # (33, 256)
    r4 = conv_rows(s4, b4_ref, c4_ref, 3, DENSE_STEP[3], DENSE_ROWS[3])  # (17, 128)

    # fc1 (+Swish): the NCHW-flatten permutation is folded into w1 at init.
    # Real conv4 output rows are the dense rows 0 and 16.
    h = (jnp.dot(r4[0:1, :], w1_ref[0], preferred_element_type=jnp.float32)
         + jnp.dot(r4[16:17, :], w1_ref[1], preferred_element_type=jnp.float32)
         + d1_ref[...])
    h = swish(h)                                                       # (1, 128)
    out = jnp.dot(h, w2_ref[...], preferred_element_type=jnp.float32) + d2_ref[...]
    o_ref[...] = out.reshape(1, 1, 128)                                # lane 0 = energy


def _const_index_map_2d(i):
    return (0, 0)


def _const_index_map_3d(i):
    return (0, 0, 0)


def _const_spec(a):
    return pl.BlockSpec(a.shape,
                        _const_index_map_2d if a.ndim == 2 else _const_index_map_3d)


def ebm_forward(x_nchw, packed):
    """x_nchw: (N, 1, 28, 28) -> (N,) energies.  `packed` = pack_params(raw)."""
    n = x_nchw.shape[0]
    # Stage the input once: squeeze channel, pad H by 4 (conv1's padding) and pad
    # the lane dim 28 -> 128.  W-padding is folded into the B weight slabs.
    x2d = x_nchw.reshape(n, 28, 28).astype(jnp.float32)
    x_rows = jnp.pad(x2d, ((0, 0), (4, 4), (0, 100)))                  # (n, 36, 128)

    in_specs = [pl.BlockSpec((1, 36, 128), lambda i: (i, 0, 0))]
    in_specs += [_const_spec(a) for a in packed]

    out = pl.pallas_call(
        _ebm_fused_kernel,
        out_shape=jax.ShapeDtypeStruct((n, 1, 128), jnp.float32),
        grid=(n,),
        in_specs=in_specs,
        out_specs=pl.BlockSpec((1, 1, 128), lambda i: (i, 0, 0)),
        compiler_params=pltpu.CompilerParams(
            dimension_semantics=("parallel",)),
    )(x_rows, *packed)
    return out[:, 0, 0]                                                # squeeze(dim=-1)


# ---------------------------------------------------------------------------
# Parameters: raw torch-layout weights (deterministic) + kernel-layout repack.
# ---------------------------------------------------------------------------
def init_raw_params(key):
    keys = jax.random.split(key, 12)
    idx = 0
    convs = []
    for (cin, cout, k, s, p) in CONV_CFG:
        w = jax.random.normal(keys[idx], (cout, cin, k, k), jnp.float32)
        w = w * np.sqrt(2.0 / (cin * k * k)); idx += 1
        b = 0.1 * jax.random.normal(keys[idx], (cout,), jnp.float32); idx += 1
        convs.append((w, b))
    fc1_w = jax.random.normal(keys[idx], (64, 256), jnp.float32) * np.sqrt(2.0 / 256); idx += 1
    fc1_b = 0.1 * jax.random.normal(keys[idx], (64,), jnp.float32); idx += 1
    fc2_w = jax.random.normal(keys[idx], (1, 64), jnp.float32) * np.sqrt(1.0 / 64); idx += 1
    fc2_b = 0.1 * jax.random.normal(keys[idx], (1,), jnp.float32); idx += 1
    return {"convs": convs, "fc1": (fc1_w, fc1_b), "fc2": (fc2_w, fc2_b)}


def pack_params(raw):
    """Repack torch-layout weights into the kernel's row-matmul layout.

    For conv layer l and kernel row i, B_l[i] is (Kp_l, Wo_l*Cout_l) such that
        out_row(ho)[wo*Cout + co] = sum_i in_row(2*ho + i) @ B_l[i] + bias,
    where in_row is an activation row flattened as [w*Cin + ci]; kernel-width
    taps, W-zero-padding and the channel contraction are all baked into B.
    """
    packed = []
    for l, ((w, b), (cin, cout, k, s, p)) in enumerate(zip(raw["convs"], CONV_CFG)):
        win, kp = CONV_WIN[l], CONV_KP[l]
        wo = (win + 2 * p - k) // s + 1
        wnp = np.asarray(w, np.float32)
        B = np.zeros((k, kp, wo * cout), np.float32)
        for i in range(k):
            for o in range(wo):
                for j in range(k):
                    wi = s * o + j - p            # interior input column index
                    if 0 <= wi < win:             # columns in the W-pad are zero
                        B[i, wi * cin:(wi + 1) * cin,
                          o * cout:(o + 1) * cout] = wnp[:, :, i, j].T
        bias_row = np.tile(np.asarray(b, np.float32), wo).reshape(1, wo * cout)
        packed += [jnp.asarray(B), jnp.asarray(bias_row)]

    # fc1: fold torch's NCHW flatten (index = c*4 + h*2 + w) into the weight.
    # conv4 activation rows are laid out as [w*64 + c]; pad 64 -> 128 lanes.
    w1, b1 = raw["fc1"]
    w1 = np.asarray(w1, np.float32)
    W1p = np.zeros((2, 128, 128), np.float32)
    for h in range(2):
        for w_ in range(2):
            W1p[h, w_ * 64:(w_ + 1) * 64, :64] = w1[:, np.arange(64) * 4 + h * 2 + w_].T
    b1p = np.zeros((1, 128), np.float32)
    b1p[0, :64] = np.asarray(b1, np.float32)

    w2, b2 = raw["fc2"]
    W2p = np.zeros((128, 128), np.float32)
    W2p[:64, 0] = np.asarray(w2, np.float32)[0]
    b2p = np.zeros((1, 128), np.float32)
    b2p[0, 0] = float(np.asarray(b2)[0])
    packed += [jnp.asarray(W1p), jnp.asarray(b1p), jnp.asarray(W2p), jnp.asarray(b2p)]
    return packed


# ---------------------------------------------------------------------------
# Pure-JAX reference (validates the Pallas path against lax.conv)
# ---------------------------------------------------------------------------
def _swish_ref(x):
    return x * jax.nn.sigmoid(x)


def ebm_forward_ref(x_nchw, raw):
    x = x_nchw.astype(jnp.float32)
    for (w, b), (cin, cout, k, s, p) in zip(raw["convs"], CONV_CFG):
        x = lax.conv_general_dilated(
            x, w, window_strides=(s, s), padding=((p, p), (p, p)),
            dimension_numbers=("NCHW", "OIHW", "NCHW"))
        x = _swish_ref(x + b[None, :, None, None])
    flat = x.reshape(x.shape[0], -1)                 # NCHW flatten == torch order
    w1, b1 = raw["fc1"]
    w2, b2 = raw["fc2"]
    h = _swish_ref(flat @ w1.T + b1)
    out = h @ w2.T + b2
    return out[:, 0]


if __name__ == "__main__":
    root = jax.random.PRNGKey(0)
    k_x, k_p = jax.random.split(root)
    x = jax.random.normal(k_x, (2, 1, 28, 28), jnp.float32)   # NCHW, MNIST-sized
    raw = init_raw_params(k_p)
    packed = pack_params(raw)

    fwd = jax.jit(ebm_forward)
    out = jax.block_until_ready(fwd(x, packed))
    ref = jax.block_until_ready(ebm_forward_ref(x, raw))

    assert out.shape == (2,), out.shape
    # approx reciprocal inside the fused Swish => compare at a modest tolerance.
    assert jnp.allclose(out, ref, atol=2e-2, rtol=2e-2), (out, ref)
    print("KERNEL_OK")
</pallas_src>

<mosaic_0001>
module attributes {stable_mosaic.version = 11 : i64} {
  func.func @_ebm_fused_kernel(%arg0: i32, %arg1: memref<1x36x128xf32, #tpu.memory_space<vmem>>, %arg2: memref<5x128x256xf32, #tpu.memory_space<vmem>>, %arg3: memref<1x256xf32, #tpu.memory_space<vmem>>, %arg4: memref<3x256x256xf32, #tpu.memory_space<vmem>>, %arg5: memref<1x256xf32, #tpu.memory_space<vmem>>, %arg6: memref<3x256x256xf32, #tpu.memory_space<vmem>>, %arg7: memref<1x256xf32, #tpu.memory_space<vmem>>, %arg8: memref<3x256x128xf32, #tpu.memory_space<vmem>>, %arg9: memref<1x128xf32, #tpu.memory_space<vmem>>, %arg10: memref<2x128x128xf32, #tpu.memory_space<vmem>>, %arg11: memref<1x128xf32, #tpu.memory_space<vmem>>, %arg12: memref<128x128xf32, #tpu.memory_space<vmem>>, %arg13: memref<1x128xf32, #tpu.memory_space<vmem>>, %arg14: memref<1x1x128xf32, #tpu.memory_space<vmem>>) attributes {dimension_semantics = [#tpu.dimension_semantics<parallel>], iteration_bounds = array<i64: 2>, scalar_prefetch = 0 : i64, scratch_operands = 0 : i64, tpu.core_type = #tpu.core_type<tc>, window_params = [{transform_indices = @transform_0, window_bounds = array<i64: 1, 36, 128>}, {pipeline_mode = #tpu.pipeline_mode<synchronous>, transform_indices = @transform_1, window_bounds = array<i64: 5, 128, 256>}, {pipeline_mode = #tpu.pipeline_mode<synchronous>, transform_indices = @transform_2, window_bounds = array<i64: 1, 256>}, {pipeline_mode = #tpu.pipeline_mode<synchronous>, transform_indices = @transform_3, window_bounds = array<i64: 3, 256, 256>}, {pipeline_mode = #tpu.pipeline_mode<synchronous>, transform_indices = @transform_4, window_bounds = array<i64: 1, 256>}, {pipeline_mode = #tpu.pipeline_mode<synchronous>, transform_indices = @transform_5, window_bounds = array<i64: 3, 256, 256>}, {pipeline_mode = #tpu.pipeline_mode<synchronous>, transform_indices = @transform_6, window_bounds = array<i64: 1, 256>}, {pipeline_mode = #tpu.pipeline_mode<synchronous>, transform_indices = @transform_7, window_bounds = array<i64: 3, 256, 128>}, {pipeline_mode = #tpu.pipeline_mode<synchronous>, transform_indices = @transform_8, window_bounds = array<i64: 1, 128>}, {pipeline_mode = #tpu.pipeline_mode<synchronous>, transform_indices = @transform_9, window_bounds = array<i64: 2, 128, 128>}, {pipeline_mode = #tpu.pipeline_mode<synchronous>, transform_indices = @transform_10, window_bounds = array<i64: 1, 128>}, {pipeline_mode = #tpu.pipeline_mode<synchronous>, transform_indices = @transform_11, window_bounds = array<i64: 128, 128>}, {pipeline_mode = #tpu.pipeline_mode<synchronous>, transform_indices = @transform_12, window_bounds = array<i64: 1, 128>}, {transform_indices = @transform_13, window_bounds = array<i64: 1, 1, 128>}]} {
    %c0 = arith.constant 0 : index
    %c0_0 = arith.constant 0 : index
    %c0_1 = arith.constant 0 : index
    %0 = vector.load %arg1[%c0, %c0_0, %c0_1] : memref<1x36x128xf32, #tpu.memory_space<vmem>>, vector<1x36x128xf32>
    %1 = vector.shape_cast %0 : vector<1x36x128xf32> to vector<36x128xf32>
    %cst = arith.constant 0.000000e+00 : f32
    %2 = vector.broadcast %cst : f32 to vector<32x256xf32>
    %3 = vector.extract_strided_slice %1 {offsets = [0, 0], sizes = [32, 128], strides = [1, 1]} : vector<36x128xf32> to vector<32x128xf32>
    %c0_2 = arith.constant 0 : index
    %c0_3 = arith.constant 0 : index
    %c0_4 = arith.constant 0 : index
    %4 = vector.load %arg2[%c0_2, %c0_3, %c0_4] : memref<5x128x256xf32, #tpu.memory_space<vmem>>, vector<1x128x256xf32>
    %5 = vector.shape_cast %4 : vector<1x128x256xf32> to vector<128x256xf32>
    %cst_5 = arith.constant dense<0.000000e+00> : vector<32x256xf32>
    %6 = tpu.matmul %3, %5, %cst_5 {dimension_numbers = #tpu.dot_dimension_numbers<[1], [0], [0], [1], [0, 0, 1, 1], [], []>} : vector<32x128xf32>, vector<128x256xf32>, vector<32x256xf32> -> vector<32x256xf32>
    %7 = arith.addf %2, %6 : vector<32x256xf32>
    %8 = vector.extract_strided_slice %1 {offsets = [1, 0], sizes = [32, 128], strides = [1, 1]} : vector<36x128xf32> to vector<32x128xf32>
    %c1 = arith.constant 1 : index
    %c0_6 = arith.constant 0 : index
    %c0_7 = arith.constant 0 : index
    %9 = vector.load %arg2[%c1, %c0_6, %c0_7] : memref<5x128x256xf32, #tpu.memory_space<vmem>>, vector<1x128x256xf32>
    %10 = vector.shape_cast %9 : vector<1x128x256xf32> to vector<128x256xf32>
    %cst_8 = arith.constant dense<0.000000e+00> : vector<32x256xf32>
    %11 = tpu.matmul %8, %10, %cst_8 {dimension_numbers = #tpu.dot_dimension_numbers<[1], [0], [0], [1], [0, 0, 1, 1], [], []>} : vector<32x128xf32>, vector<128x256xf32>, vector<32x256xf32> -> vector<32x256xf32>
    %12 = arith.addf %7, %11 : vector<32x256xf32>
    %13 = vector.extract_strided_slice %1 {offsets = [2, 0], sizes = [32, 128], strides = [1, 1]} : vector<36x128xf32> to vector<32x128xf32>
    %c2 = arith.constant 2 : index
    %c0_9 = arith.constant 0 : index
    %c0_10 = arith.constant 0 : index
    %14 = vector.load %arg2[%c2, %c0_9, %c0_10] : memref<5x128x256xf32, #tpu.memory_space<vmem>>, vector<1x128x256xf32>
    %15 = vector.shape_cast %14 : vector<1x128x256xf32> to vector<128x256xf32>
    %cst_11 = arith.constant dense<0.000000e+00> : vector<32x256xf32>
    %16 = tpu.matmul %13, %15, %cst_11 {dimension_numbers = #tpu.dot_dimension_numbers<[1], [0], [0], [1], [0, 0, 1, 1], [], []>} : vector<32x128xf32>, vector<128x256xf32>, vector<32x256xf32> -> vector<32x256xf32>
    %17 = arith.addf %12, %16 : vector<32x256xf32>
    %18 = vector.extract_strided_slice %1 {offsets = [3, 0], sizes = [32, 128], strides = [1, 1]} : vector<36x128xf32> to vector<32x128xf32>
    %c3 = arith.constant 3 : index
    %c0_12 = arith.constant 0 : index
    %c0_13 = arith.constant 0 : index
    %19 = vector.load %arg2[%c3, %c0_12, %c0_13] : memref<5x128x256xf32, #tpu.memory_space<vmem>>, vector<1x128x256xf32>
    %20 = vector.shape_cast %19 : vector<1x128x256xf32> to vector<128x256xf32>
    %cst_14 = arith.constant dense<0.000000e+00> : vector<32x256xf32>
    %21 = tpu.matmul %18, %20, %cst_14 {dimension_numbers = #tpu.dot_dimension_numbers<[1], [0], [0], [1], [0, 0, 1, 1], [], []>} : vector<32x128xf32>, vector<128x256xf32>, vector<32x256xf32> -> vector<32x256xf32>
    %22 = arith.addf %17, %21 : vector<32x256xf32>
    %23 = vector.extract_strided_slice %1 {offsets = [4, 0], sizes = [32, 128], strides = [1, 1]} : vector<36x128xf32> to vector<32x128xf32>
    %c4 = arith.constant 4 : index
    %c0_15 = arith.constant 0 : index
    %c0_16 = arith.constant 0 : index
    %24 = vector.load %arg2[%c4, %c0_15, %c0_16] : memref<5x128x256xf32, #tpu.memory_space<vmem>>, vector<1x128x256xf32>
    %25 = vector.shape_cast %24 : vector<1x128x256xf32> to vector<128x256xf32>
    %cst_17 = arith.constant dense<0.000000e+00> : vector<32x256xf32>
    %26 = tpu.matmul %23, %25, %cst_17 {dimension_numbers = #tpu.dot_dimension_numbers<[1], [0], [0], [1], [0, 0, 1, 1], [], []>} : vector<32x128xf32>, vector<128x256xf32>, vector<32x256xf32> -> vector<32x256xf32>
    %27 = arith.addf %22, %26 : vector<32x256xf32>
    %c0_18 = arith.constant 0 : index
    %c0_19 = arith.constant 0 : index
    %28 = vector.load %arg3[%c0_18, %c0_19] : memref<1x256xf32, #tpu.memory_space<vmem>>, vector<1x256xf32>
    %29 = vector.broadcast %28 : vector<1x256xf32> to vector<32x256xf32>
    %30 = arith.addf %27, %29 : vector<32x256xf32>
    %cst_20 = arith.constant 0.000000e+00 : f32
    %31 = vector.broadcast %cst_20 : f32 to vector<32x256xf32>
    %32 = arith.subf %31, %30 : vector<32x256xf32>
    %33 = math.exp %32 : vector<32x256xf32>
    %cst_21 = arith.constant 1.000000e+00 : f32
    %34 = vector.broadcast %cst_21 : f32 to vector<32x256xf32>
    %35 = arith.addf %34, %33 : vector<32x256xf32>
    %36 = tpu.reciprocal %35 {approx = true} : vector<32x256xf32> -> vector<32x256xf32>
    %37 = arith.mulf %30, %36 : vector<32x256xf32>
    %cst_22 = arith.constant 0.000000e+00 : f32
    %38 = vector.broadcast %cst_22 : f32 to vector<2x256xf32>
    %39 = tpu.concatenate %38, %37 in 0 : vector<2x256xf32>, vector<32x256xf32> -> vector<34x256xf32>
    %cst_23 = arith.constant 0.000000e+00 : f32
    %40 = vector.broadcast %cst_23 : f32 to vector<29x256xf32>
    %41 = vector.extract_strided_slice %39 {offsets = [0, 0], sizes = [29, 256], strides = [1, 1]} : vector<34x256xf32> to vector<29x256xf32>
    %c0_24 = arith.constant 0 : index
    %c0_25 = arith.constant 0 : index
    %c0_26 = arith.constant 0 : index
    %42 = vector.load %arg4[%c0_24, %c0_25, %c0_26] : memref<3x256x256xf32, #tpu.memory_space<vmem>>, vector<1x256x256xf32>
    %43 = vector.shape_cast %42 : vector<1x256x256xf32> to vector<256x256xf32>
    %cst_27 = arith.constant dense<0.000000e+00> : vector<29x256xf32>
    %44 = tpu.matmul %41, %43, %cst_27 {dimension_numbers = #tpu.dot_dimension_numbers<[1], [0], [0], [1], [0, 0, 1, 1], [], []>} : vector<29x256xf32>, vector<256x256xf32>, vector<29x256xf32> -> vector<29x256xf32>
    %45 = arith.addf %40, %44 : vector<29x256xf32>
    %46 = vector.extract_strided_slice %39 {offsets = [2, 0], sizes = [29, 256], strides = [1, 1]} : vector<34x256xf32> to vector<29x256xf32>
    %c1_28 = arith.constant 1 : index
    %c0_29 = arith.constant 0 : index
    %c0_30 = arith.constant 0 : index
    %47 = vector.load %arg4[%c1_28, %c0_29, %c0_30] : memref<3x256x256xf32, #tpu.memory_space<vmem>>, vector<1x256x256xf32>
    %48 = vector.shape_cast %47 : vector<1x256x256xf32> to vector<256x256xf32>
    %cst_31 = arith.constant dense<0.000000e+00> : vector<29x256xf32>
    %49 = tpu.matmul %46, %48, %cst_31 {dimension_numbers = #tpu.dot_dimension_numbers<[1], [0], [0], [1], [0, 0, 1, 1], [], []>} : vector<29x256xf32>, vector<256x256xf32>, vector<29x256xf32> -> vector<29x256xf32>
    %50 = arith.addf %45, %49 : vector<29x256xf32>
    %51 = vector.extract_strided_slice %39 {offsets = [4, 0], sizes = [29, 256], strides = [1, 1]} : vector<34x256xf32> to vector<29x256xf32>
    %c2_32 = arith.constant 2 : index
    %c0_33 = arith.constant 0 : index
    %c0_34 = arith.constant 0 : index
    %52 = vector.load %arg4[%c2_32, %c0_33, %c0_34] : memref<3x256x256xf32, #tpu.memory_space<vmem>>, vector<1x256x256xf32>
    %53 = vector.shape_cast %52 : vector<1x256x256xf32> to vector<256x256xf32>
    %cst_35 = arith.constant dense<0.000000e+00> : vector<29x256xf32>
    %54 = tpu.matmul %51, %53, %cst_35 {dimension_numbers = #tpu.dot_dimension_numbers<[1], [0], [0], [1], [0, 0, 1, 1], [], []>} : vector<29x256xf32>, vector<256x256xf32>, vector<29x256xf32> -> vector<29x256xf32>
    %55 = arith.addf %50, %54 : vector<29x256xf32>
    %c0_36 = arith.constant 0 : index
    %c0_37 = arith.constant 0 : index
    %56 = vector.load %arg5[%c0_36, %c0_37] : memref<1x256xf32, #tpu.memory_space<vmem>>, vector<1x256xf32>
    %57 = vector.broadcast %56 : vector<1x256xf32> to vector<29x256xf32>
    %58 = arith.addf %55, %57 : vector<29x256xf32>
    %cst_38 = arith.constant 0.000000e+00 : f32
    %59 = vector.broadcast %cst_38 : f32 to vector<29x256xf32>
    %60 = arith.subf %59, %58 : vector<29x256xf32>
    %61 = math.exp %60 : vector<29x256xf32>
    %cst_39 = arith.constant 1.000000e+00 : f32
    %62 = vector.broadcast %cst_39 : f32 to vector<29x256xf32>
    %63 = arith.addf %62, %61 : vector<29x256xf32>
    %64 = tpu.reciprocal %63 {approx = true} : vector<29x256xf32> -> vector<29x256xf32>
    %65 = arith.mulf %58, %64 : vector<29x256xf32>
    %cst_40 = arith.constant 0.000000e+00 : f32
    %66 = vector.broadcast %cst_40 : f32 to vector<4x256xf32>
    %67 = tpu.concatenate %66, %65 in 0 : vector<4x256xf32>, vector<29x256xf32> -> vector<33x256xf32>
    %cst_41 = arith.constant 0.000000e+00 : f32
    %68 = vector.broadcast %cst_41 : f32 to vector<25x256xf32>
    %69 = vector.extract_strided_slice %67 {offsets = [0, 0], sizes = [25, 256], strides = [1, 1]} : vector<33x256xf32> to vector<25x256xf32>
    %c0_42 = arith.constant 0 : index
    %c0_43 = arith.constant 0 : index
    %c0_44 = arith.constant 0 : index
    %70 = vector.load %arg6[%c0_42, %c0_43, %c0_44] : memref<3x256x256xf32, #tpu.memory_space<vmem>>, vector<1x256x256xf32>
    %71 = vector.shape_cast %70 : vector<1x256x256xf32> to vector<256x256xf32>
    %cst_45 = arith.constant dense<0.000000e+00> : vector<25x256xf32>
    %72 = tpu.matmul %69, %71, %cst_45 {dimension_numbers = #tpu.dot_dimension_numbers<[1], [0], [0], [1], [0, 0, 1, 1], [], []>} : vector<25x256xf32>, vector<256x256xf32>, vector<25x256xf32> -> vector<25x256xf32>
    %73 = arith.addf %68, %72 : vector<25x256xf32>
    %74 = vector.extract_strided_slice %67 {offsets = [4, 0], sizes = [25, 256], strides = [1, 1]} : vector<33x256xf32> to vector<25x256xf32>
    %c1_46 = arith.constant 1 : index
    %c0_47 = arith.constant 0 : index
    %c0_48 = arith.constant 0 : index
    %75 = vector.load %arg6[%c1_46, %c0_47, %c0_48] : memref<3x256x256xf32, #tpu.memory_space<vmem>>, vector<1x256x256xf32>
    %76 = vector.shape_cast %75 : vector<1x256x256xf32> to vector<256x256xf32>
    %cst_49 = arith.constant dense<0.000000e+00> : vector<25x256xf32>
    %77 = tpu.matmul %74, %76, %cst_49 {dimension_numbers = #tpu.dot_dimension_numbers<[1], [0], [0], [1], [0, 0, 1, 1], [], []>} : vector<25x256xf32>, vector<256x256xf32>, vector<25x256xf32> -> vector<25x256xf32>
    %78 = arith.addf %73, %77 : vector<25x256xf32>
    %79 = vector.extract_strided_slice %67 {offsets = [8, 0], sizes = [25, 256], strides = [1, 1]} : vector<33x256xf32> to vector<25x256xf32>
    %c2_50 = arith.constant 2 : index
    %c0_51 = arith.constant 0 : index
    %c0_52 = arith.constant 0 : index
    %80 = vector.load %arg6[%c2_50, %c0_51, %c0_52] : memref<3x256x256xf32, #tpu.memory_space<vmem>>, vector<1x256x256xf32>
    %81 = vector.shape_cast %80 : vector<1x256x256xf32> to vector<256x256xf32>
    %cst_53 = arith.constant dense<0.000000e+00> : vector<25x256xf32>
    %82 = tpu.matmul %79, %81, %cst_53 {dimension_numbers = #tpu.dot_dimension_numbers<[1], [0], [0], [1], [0, 0, 1, 1], [], []>} : vector<25x256xf32>, vector<256x256xf32>, vector<25x256xf32> -> vector<25x256xf32>
    %83 = arith.addf %78, %82 : vector<25x256xf32>
    %c0_54 = arith.constant 0 : index
    %c0_55 = arith.constant 0 : index
    %84 = vector.load %arg7[%c0_54, %c0_55] : memref<1x256xf32, #tpu.memory_space<vmem>>, vector<1x256xf32>
    %85 = vector.broadcast %84 : vector<1x256xf32> to vector<25x256xf32>
    %86 = arith.addf %83, %85 : vector<25x256xf32>
    %cst_56 = arith.constant 0.000000e+00 : f32
    %87 = vector.broadcast %cst_56 : f32 to vector<25x256xf32>
    %88 = arith.subf %87, %86 : vector<25x256xf32>
    %89 = math.exp %88 : vector<25x256xf32>
    %cst_57 = arith.constant 1.000000e+00 : f32
    %90 = vector.broadcast %cst_57 : f32 to vector<25x256xf32>
    %91 = arith.addf %90, %89 : vector<25x256xf32>
    %92 = tpu.reciprocal %91 {approx = true} : vector<25x256xf32> -> vector<25x256xf32>
    %93 = arith.mulf %86, %92 : vector<25x256xf32>
    %cst_58 = arith.constant 0.000000e+00 : f32
    %94 = vector.broadcast %cst_58 : f32 to vector<8x256xf32>
    %95 = tpu.concatenate %94, %93 in 0 : vector<8x256xf32>, vector<25x256xf32> -> vector<33x256xf32>
    %cst_59 = arith.constant 0.000000e+00 : f32
    %96 = vector.broadcast %cst_59 : f32 to vector<17x128xf32>
    %97 = vector.extract_strided_slice %95 {offsets = [0, 0], sizes = [17, 256], strides = [1, 1]} : vector<33x256xf32> to vector<17x256xf32>
    %c0_60 = arith.constant 0 : index
    %c0_61 = arith.constant 0 : index
    %c0_62 = arith.constant 0 : index
    %98 = vector.load %arg8[%c0_60, %c0_61, %c0_62] : memref<3x256x128xf32, #tpu.memory_space<vmem>>, vector<1x256x128xf32>
    %99 = vector.shape_cast %98 : vector<1x256x128xf32> to vector<256x128xf32>
    %cst_63 = arith.constant dense<0.000000e+00> : vector<17x128xf32>
    %100 = tpu.matmul %97, %99, %cst_63 {dimension_numbers = #tpu.dot_dimension_numbers<[1], [0], [0], [1], [0, 0, 1, 1], [], []>} : vector<17x256xf32>, vector<256x128xf32>, vector<17x128xf32> -> vector<17x128xf32>
    %101 = arith.addf %96, %100 : vector<17x128xf32>
    %102 = vector.extract_strided_slice %95 {offsets = [8, 0], sizes = [17, 256], strides = [1, 1]} : vector<33x256xf32> to vector<17x256xf32>
    %c1_64 = arith.constant 1 : index
    %c0_65 = arith.constant 0 : index
    %c0_66 = arith.constant 0 : index
    %103 = vector.load %arg8[%c1_64, %c0_65, %c0_66] : memref<3x256x128xf32, #tpu.memory_space<vmem>>, vector<1x256x128xf32>
    %104 = vector.shape_cast %103 : vector<1x256x128xf32> to vector<256x128xf32>
    %cst_67 = arith.constant dense<0.000000e+00> : vector<17x128xf32>
    %105 = tpu.matmul %102, %104, %cst_67 {dimension_numbers = #tpu.dot_dimension_numbers<[1], [0], [0], [1], [0, 0, 1, 1], [], []>} : vector<17x256xf32>, vector<256x128xf32>, vector<17x128xf32> -> vector<17x128xf32>
    %106 = arith.addf %101, %105 : vector<17x128xf32>
    %107 = vector.extract_strided_slice %95 {offsets = [16, 0], sizes = [17, 256], strides = [1, 1]} : vector<33x256xf32> to vector<17x256xf32>
    %c2_68 = arith.constant 2 : index
    %c0_69 = arith.constant 0 : index
    %c0_70 = arith.constant 0 : index
    %108 = vector.load %arg8[%c2_68, %c0_69, %c0_70] : memref<3x256x128xf32, #tpu.memory_space<vmem>>, vector<1x256x128xf32>
    %109 = vector.shape_cast %108 : vector<1x256x128xf32> to vector<256x128xf32>
    %cst_71 = arith.constant dense<0.000000e+00> : vector<17x128xf32>
    %110 = tpu.matmul %107, %109, %cst_71 {dimension_numbers = #tpu.dot_dimension_numbers<[1], [0], [0], [1], [0, 0, 1, 1], [], []>} : vector<17x256xf32>, vector<256x128xf32>, vector<17x128xf32> -> vector<17x128xf32>
    %111 = arith.addf %106, %110 : vector<17x128xf32>
    %c0_72 = arith.constant 0 : index
    %c0_73 = arith.constant 0 : index
    %112 = vector.load %arg9[%c0_72, %c0_73] : memref<1x128xf32, #tpu.memory_space<vmem>>, vector<1x128xf32>
    %113 = vector.broadcast %112 : vector<1x128xf32> to vector<17x128xf32>
    %114 = arith.addf %111, %113 : vector<17x128xf32>
    %cst_74 = arith.constant 0.000000e+00 : f32
    %115 = vector.broadcast %cst_74 : f32 to vector<17x128xf32>
    %116 = arith.subf %115, %114 : vector<17x128xf32>
    %117 = math.exp %116 : vector<17x128xf32>
    %cst_75 = arith.constant 1.000000e+00 : f32
    %118 = vector.broadcast %cst_75 : f32 to vector<17x128xf32>
    %119 = arith.addf %118, %117 : vector<17x128xf32>
    %120 = tpu.reciprocal %119 {approx = true} : vector<17x128xf32> -> vector<17x128xf32>
    %121 = arith.mulf %114, %120 : vector<17x128xf32>
    %122 = vector.extract_strided_slice %121 {offsets = [0, 0], sizes = [1, 128], strides = [1, 1]} : vector<17x128xf32> to vector<1x128xf32>
    %c0_76 = arith.constant 0 : index
    %c0_77 = arith.constant 0 : index
    %c0_78 = arith.constant 0 : index
    %123 = vector.load %arg10[%c0_76, %c0_77, %c0_78] : memref<2x128x128xf32, #tpu.memory_space<vmem>>, vector<1x128x128xf32>
    %124 = vector.shape_cast %123 : vector<1x128x128xf32> to vector<128x128xf32>
    %cst_79 = arith.constant dense<0.000000e+00> : vector<1x128xf32>
    %125 = tpu.matmul %122, %124, %cst_79 {dimension_numbers = #tpu.dot_dimension_numbers<[1], [0], [0], [1], [0, 0, 1, 1], [], []>} : vector<1x128xf32>, vector<128x128xf32>, vector<1x128xf32> -> vector<1x128xf32>
    %126 = vector.extract_strided_slice %121 {offsets = [16, 0], sizes = [1, 128], strides = [1, 1]} : vector<17x128xf32> to vector<1x128xf32>
    %c1_80 = arith.constant 1 : index
    %c0_81 = arith.constant 0 : index
    %c0_82 = arith.constant 0 : index
    %127 = vector.load %arg10[%c1_80, %c0_81, %c0_82] : memref<2x128x128xf32, #tpu.memory_space<vmem>>, vector<1x128x128xf32>
    %128 = vector.shape_cast %127 : vector<1x128x128xf32> to vector<128x128xf32>
    %cst_83 = arith.constant dense<0.000000e+00> : vector<1x128xf32>
    %129 = tpu.matmul %126, %128, %cst_83 {dimension_numbers = #tpu.dot_dimension_numbers<[1], [0], [0], [1], [0, 0, 1, 1], [], []>} : vector<1x128xf32>, vector<128x128xf32>, vector<1x128xf32> -> vector<1x128xf32>
    %130 = arith.addf %125, %129 : vector<1x128xf32>
    %c0_84 = arith.constant 0 : index
    %c0_85 = arith.constant 0 : index
    %131 = vector.load %arg11[%c0_84, %c0_85] : memref<1x128xf32, #tpu.memory_space<vmem>>, vector<1x128xf32>
    %132 = arith.addf %130, %131 : vector<1x128xf32>
    %cst_86 = arith.constant 0.000000e+00 : f32
    %133 = vector.broadcast %cst_86 : f32 to vector<1x128xf32>
    %134 = arith.subf %133, %132 : vector<1x128xf32>
    %135 = math.exp %134 : vector<1x128xf32>
    %cst_87 = arith.constant 1.000000e+00 : f32
    %136 = vector.broadcast %cst_87 : f32 to vector<1x128xf32>
    %137 = arith.addf %136, %135 : vector<1x128xf32>
    %138 = tpu.reciprocal %137 {approx = true} : vector<1x128xf32> -> vector<1x128xf32>
    %139 = arith.mulf %132, %138 : vector<1x128xf32>
    %c0_88 = arith.constant 0 : index
    %c0_89 = arith.constant 0 : index
    %140 = vector.load %arg12[%c0_88, %c0_89] : memref<128x128xf32, #tpu.memory_space<vmem>>, vector<128x128xf32>
    %cst_90 = arith.constant dense<0.000000e+00> : vector<1x128xf32>
    %141 = tpu.matmul %139, %140, %cst_90 {dimension_numbers = #tpu.dot_dimension_numbers<[1], [0], [0], [1], [0, 0, 1, 1], [], []>} : vector<1x128xf32>, vector<128x128xf32>, vector<1x128xf32> -> vector<1x128xf32>
    %c0_91 = arith.constant 0 : index
    %c0_92 = arith.constant 0 : index
    %142 = vector.load %arg13[%c0_91, %c0_92] : memref<1x128xf32, #tpu.memory_space<vmem>>, vector<1x128xf32>
    %143 = arith.addf %141, %142 : vector<1x128xf32>
    %144 = vector.shape_cast %143 : vector<1x128xf32> to vector<1x1x128xf32>
    %c0_93 = arith.constant 0 : index
    %c0_94 = arith.constant 0 : index
    %c0_95 = arith.constant 0 : index
    %145 = vector.load %arg14[%c0_93, %c0_94, %c0_95] : memref<1x1x128xf32, #tpu.memory_space<vmem>>, vector<1x1x128xf32>
    tpu.vector_store %arg14[%c0_93, %c0_94, %c0_95], %144 {strides = array<i32>} : memref<1x1x128xf32, #tpu.memory_space<vmem>>, vector<1x1x128xf32>,
    return
  }
  func.func @transform_0(%arg0: i32) -> (i32, i32, i32) {
    %c0_i32 = arith.constant 0 : i32
    %c0_i32_0 = arith.constant 0 : i32
    %c0_i32_1 = arith.constant 0 : i32
    return %arg0, %c0_i32, %c0_i32_0 : i32, i32, i32
  }
  func.func @transform_1(%arg0: i32) -> (i32, i32, i32) {
    %c0_i32 = arith.constant 0 : i32
    %c0_i32_0 = arith.constant 0 : i32
    %c0_i32_1 = arith.constant 0 : i32
    %c0_i32_2 = arith.constant 0 : i32
    return %c0_i32, %c0_i32_0, %c0_i32_1 : i32, i32, i32
  }
  func.func @transform_2(%arg0: i32) -> (i32, i32) {
    %c0_i32 = arith.constant 0 : i32
    %c0_i32_0 = arith.constant 0 : i32
    %c0_i32_1 = arith.constant 0 : i32
    return %c0_i32, %c0_i32_0 : i32, i32
  }
  func.func @transform_3(%arg0: i32) -> (i32, i32, i32) {
    %c0_i32 = arith.constant 0 : i32
    %c0_i32_0 = arith.constant 0 : i32
    %c0_i32_1 = arith.constant 0 : i32
    %c0_i32_2 = arith.constant 0 : i32
    return %c0_i32, %c0_i32_0, %c0_i32_1 : i32, i32, i32
  }
  func.func @transform_4(%arg0: i32) -> (i32, i32) {
    %c0_i32 = arith.constant 0 : i32
    %c0_i32_0 = arith.constant 0 : i32
    %c0_i32_1 = arith.constant 0 : i32
    return %c0_i32, %c0_i32_0 : i32, i32
  }
  func.func @transform_5(%arg0: i32) -> (i32, i32, i32) {
    %c0_i32 = arith.constant 0 : i32
    %c0_i32_0 = arith.constant 0 : i32
    %c0_i32_1 = arith.constant 0 : i32
    %c0_i32_2 = arith.constant 0 : i32
    return %c0_i32, %c0_i32_0, %c0_i32_1 : i32, i32, i32
  }
  func.func @transform_6(%arg0: i32) -> (i32, i32) {
    %c0_i32 = arith.constant 0 : i32
    %c0_i32_0 = arith.constant 0 : i32
    %c0_i32_1 = arith.constant 0 : i32
    return %c0_i32, %c0_i32_0 : i32, i32
  }
  func.func @transform_7(%arg0: i32) -> (i32, i32, i32) {
    %c0_i32 = arith.constant 0 : i32
    %c0_i32_0 = arith.constant 0 : i32
    %c0_i32_1 = arith.constant 0 : i32
    %c0_i32_2 = arith.constant 0 : i32
    return %c0_i32, %c0_i32_0, %c0_i32_1 : i32, i32, i32
  }
  func.func @transform_8(%arg0: i32) -> (i32, i32) {
    %c0_i32 = arith.constant 0 : i32
    %c0_i32_0 = arith.constant 0 : i32
    %c0_i32_1 = arith.constant 0 : i32
    return %c0_i32, %c0_i32_0 : i32, i32
  }
  func.func @transform_9(%arg0: i32) -> (i32, i32, i32) {
    %c0_i32 = arith.constant 0 : i32
    %c0_i32_0 = arith.constant 0 : i32
    %c0_i32_1 = arith.constant 0 : i32
    %c0_i32_2 = arith.constant 0 : i32
    return %c0_i32, %c0_i32_0, %c0_i32_1 : i32, i32, i32
  }
  func.func @transform_10(%arg0: i32) -> (i32, i32) {
    %c0_i32 = arith.constant 0 : i32
    %c0_i32_0 = arith.constant 0 : i32
    %c0_i32_1 = arith.constant 0 : i32
    return %c0_i32, %c0_i32_0 : i32, i32
  }
  func.func @transform_11(%arg0: i32) -> (i32, i32) {
    %c0_i32 = arith.constant 0 : i32
    %c0_i32_0 = arith.constant 0 : i32
    %c0_i32_1 = arith.constant 0 : i32
    return %c0_i32, %c0_i32_0 : i32, i32
  }
  func.func @transform_12(%arg0: i32) -> (i32, i32) {
    %c0_i32 = arith.constant 0 : i32
    %c0_i32_0 = arith.constant 0 : i32
    %c0_i32_1 = arith.constant 0 : i32
    return %c0_i32, %c0_i32_0 : i32, i32
  }
  func.func @transform_13(%arg0: i32) -> (i32, i32, i32) {
    %c0_i32 = arith.constant 0 : i32
    %c0_i32_0 = arith.constant 0 : i32
    %c0_i32_1 = arith.constant 0 : i32
    return %arg0, %c0_i32, %c0_i32_0 : i32, i32, i32
  }
}

</mosaic_0001>

<bundles_post_ra>
// kernel: ebm_forward.1
= control target key start
LH: loop header
LB: loop body
LE: loop exit
PB: predicated region body
PF: predicated region fallthrough
CT: control target
= control target key end

     0   :  { %s5411_s0 = inlined_call_operand.vmem [shape: f32[2,36,128], index: 0, kind: input, shape index: {}]   ;;  %s5412_s1 = inlined_call_operand.hbm [shape: f32[5,128,256], index: 1, kind: input, shape index: {}]   ;;  %s5413_s2 = inlined_call_operand.vmem [shape: f32[1,256], index: 2, kind: input, shape index: {}]   ;;  %s5414_s3 = inlined_call_operand.hbm [shape: f32[3,256,256], index: 3, kind: input, shape index: {}]   ;;  %s5415_s4 = inlined_call_operand.vmem [shape: f32[1,256], index: 4, kind: input, shape index: {}]   ;;  %s5416_s5 = inlined_call_operand.hbm [shape: f32[3,256,256], index: 5, kind: input, shape index: {}]   ;;  %s5417_s6 = inlined_call_operand.vmem [shape: f32[1,256], index: 6, kind: input, shape index: {}]   ;;  %s5418_s7 = inlined_call_operand.hbm [shape: f32[3,256,128], index: 7, kind: input, shape index: {}]   ;;  %s5419_s8 = inlined_call_operand.vmem [shape: f32[1,128], index: 8, kind: input, shape index: {}]   ;;  %s5420_s9 = inlined_call_operand.vmem [shape: f32[2,128,128], index: 9, kind: input, shape index: {}]   ;;  %s5421_s10 = inlined_call_operand.vmem [shape: f32[1,128], index: 10, kind: input, shape index: {}]   ;;  %s5422_s11 = inlined_call_operand.vmem [shape: f32[128,128], index: 11, kind: input, shape index: {}]   ;;  %s5423_s12 = inlined_call_operand.vmem [shape: f32[1,128], index: 12, kind: input, shape index: {}]   ;;  %s5424_s13 = inlined_call_operand.vmem [shape: f32[2,1,128], index: 13, kind: output, shape index: {}]  }
   0x1   :  { %5428 = sst [smem:[#allocation13_spill]] %s5423_s12 }
   0x2   :  { %5429 = sst [smem:[#allocation14_spill]] %s5424_s13 }
   0x3   :  { %18 = vsyncpa [#allocation3], 0 }
   0x4   :  { %19 = vsyncpa [#allocation5], 0 }
   0x5   :  { %20 = vsyncpa [#allocation8], 0  ;;  %s4667_s25 = smov 0  }
   0x6 LB: > { %5430 = sst [smem:[#allocation12_spill]] %s4584_s25  ;;  %s4673_s26 = sadd.s32 4294967295, %s4584_s25   ;;  %s4584_s25 = sphi %s4667_s25, %s26_s25  }
   0x7   : > { %p3195_p0 = scmp.ge.s32.totalorder %s4584_s25, 1  ;;  %p335_p1 = scmp.lt.s32.totalorder %s4584_s25, 3 }
   0x8   : > { %p5426_p2 = scmp.eq.s32.totalorder %s4673_s26, 0  ;;  %s4586_s28 = smov [#allocation4]  }
   0x9   : > { %p4678_p3 = pnand %p3195_p0, %p335_p1  ;;  %s363_s29 = sshll.u32 %s4586_s28, 4  ;;  %s4682_s29 = int_to_ptr.vmem [resolvable:$true] %s363_s29 }
   0xa   : > { %s4587_s30 = smov [#allocation2]   ;;  %s4588_s16 = smov [#allocation6]  }
   0xb   : > { %s5431_s27 = scalar_select %p4678_p3, 1, 0 }
   0xc   : > { %p4306_p4 = pneg %p4678_p3  ;;  %s347_s14 = sshll.u32 %s4587_s30, 4  ;;  %s4686_s14 = int_to_ptr.vmem [resolvable:$true] %s347_s14 }
   0xd   : > { %s379_s17 = sshll.u32 %s4588_s16, 4  ;;  %s4589_s18 = smov [#allocation7]   ;;  %s4694_s17 = int_to_ptr.vmem [resolvable:$true] %s379_s17 }
   0xe   : > { %p4690_p5 = pnand %p5426_p2, %p4306_p4  ;;  %s4696_s19 = sshll.u32 %s4589_s18, 4  ;;  %s396_s19 = int_to_ptr.vmem [resolvable:$true] %s4696_s19 }
   0xf   : > { %s4454_s22 = scalar_lea.hbm %s5414_s3, 24576 }
  0x10   : > { %p4455_p6 = scmp.ne.s32.totalorder %s5414_s3, %s4454_s22  ;;  %p4706_p7 = pneg %p4690_p5 }
  0x11   : > { %p4461_p10 = scmp.lt.u32.totalorder %s4454_s22, %s5414_s3 }
  0x12   : > { %p4457_p8 = pnand %p4706_p7, %p4455_p6 }
  0x14   : > { %p4458_p9 = pneg %p4457_p8 }
  0x16   : > { %p4463_p11 = pnand %p4461_p10, %p4458_p9 }
  0x18   : > { %4466 = shalt.err (!%p4463_p11)
}
  0x19   : > { %s4467_s18 = scalar_lea.vmem %s4682_s29, 24576  ;;  %p4475_p1 = scmp.lt.s32.totalorder %s4682_s29, %s4682_s29 }
  0x1a   : > { %p4468_p12 = scmp.ne.s32.totalorder %s4682_s29, %s4467_s18  ;;  %p4476_p4 = scmp.lt.s32.totalorder %s4467_s18, %s4467_s18 }
  0x1c   : > { %p4470_p13 = pnand %p4468_p12, %p4706_p7  ;;  %p4477_p6 = por %p4476_p4, %p4475_p1 }
  0x1e   : > { %p4471_p0 = pneg %p4470_p13 }
  0x20   : > { %p4478_p8 = pnand %p4477_p6, %p4471_p0 }
  0x22   : > { %4481 = shalt.err (!%p4478_p8)
}
  0x23   : > { %s4590_s20 = smov 256   ;;  %s4591_s21 = smov 16  }
  0x24   : > { %4312 = dma.hbm_to_vmem [thread:$0]  (!%p4690_p5), %s5414_s3, 24576, %s4682_s29, [#allocation5], %s4590_s20, %s4590_s20, %s4591_s21  }
  0x25   : > { %s4482_s16 = scalar_lea.hbm %s5412_s1, 20480 }
  0x26   : > { %p4483_p9 = scmp.ne.s32.totalorder %s5412_s1, %s4482_s16  ;;  %p4489_p12 = scmp.lt.u32.totalorder %s4482_s16, %s5412_s1 }
  0x28   : > { %p4485_p10 = pnand %p4483_p9, %p4706_p7 }
  0x2a   : > { %p4486_p11 = pneg %p4485_p10 }
  0x2c   : > { %p4491_p13 = pnand %p4489_p12, %p4486_p11 }
  0x2e   : > { %4494 = shalt.err (!%p4491_p13)
}
  0x2f   : > { %s4495_s29 = scalar_lea.vmem %s4686_s14, 20480  ;;  %p4503_p6 = scmp.lt.s32.totalorder %s4686_s14, %s4686_s14 }
  0x30   : > { %p4496_p0 = scmp.ne.s32.totalorder %s4686_s14, %s4495_s29  ;;  %p4504_p8 = scmp.lt.s32.totalorder %s4495_s29, %s4495_s29 }
  0x32   : > { %p4498_p1 = pnand %p4496_p0, %p4706_p7  ;;  %p4505_p9 = por %p4504_p8, %p4503_p6 }
  0x34   : > { %p4499_p4 = pneg %p4498_p1 }
  0x36   : > { %p4506_p10 = pnand %p4505_p9, %p4499_p4 }
  0x38   : > { %4509 = shalt.err (!%p4506_p10)
}
  0x39   : > { %4309 = dma.hbm_to_vmem [thread:$0]  (!%p4690_p5), %s5412_s1, 20480, %s4686_s14, [#allocation3], %s4590_s20, %s4590_s20, %s4591_s21  }
  0x3a   : > { %s4510_s23 = scalar_lea.hbm %s5416_s5, 24576 }
  0x3b   : > { %p4511_p11 = scmp.ne.s32.totalorder %s5416_s5, %s4510_s23  ;;  %p4517_p0 = scmp.lt.u32.totalorder %s4510_s23, %s5416_s5 }
  0x3d   : > { %p4513_p12 = pnand %p4511_p11, %p4706_p7 }
  0x3f   : > { %p4514_p13 = pneg %p4513_p12 }
  0x41   : > { %p4519_p1 = pnand %p4517_p0, %p4514_p13 }
  0x43   : > { %4522 = shalt.err (!%p4519_p1)
}
  0x44   : > { %s4523_s14 = scalar_lea.vmem %s4694_s17, 24576  ;;  %p4531_p9 = scmp.lt.s32.totalorder %s4694_s17, %s4694_s17 }
  0x45   : > { %p4524_p4 = scmp.ne.s32.totalorder %s4694_s17, %s4523_s14  ;;  %p4532_p10 = scmp.lt.s32.totalorder %s4523_s14, %s4523_s14 }
  0x47   : > { %p4526_p6 = pnand %p4524_p4, %p4706_p7  ;;  %p4533_p11 = por %p4532_p10, %p4531_p9 }
  0x49   : > { %p4527_p8 = pneg %p4526_p6 }
  0x4b   : > { %p4534_p12 = pnand %p4533_p11, %p4527_p8 }
  0x4d   : > { %4537 = shalt.err (!%p4534_p12)
}
  0x4e   : > { %4315 = dma.hbm_to_vmem [thread:$0]  (!%p4690_p5), %s5416_s5, 24576, %s4694_s17, [#allocation5], %s4590_s20, %s4590_s20, %s4591_s21  }
  0x4f   : > { %s4538_s22 = scalar_lea.hbm %s5418_s7, 12288 }
  0x50   : > { %p4539_p13 = scmp.ne.s32.totalorder %s5418_s7, %s4538_s22  ;;  %p4545_p4 = scmp.lt.u32.totalorder %s4538_s22, %s5418_s7 }
  0x52   : > { %p4541_p0 = pnand %p4539_p13, %p4706_p7 }
  0x54   : > { %p4542_p1 = pneg %p4541_p0 }
  0x56   : > { %p4547_p6 = pnand %p4545_p4, %p4542_p1 }
  0x58   : > { %4550 = shalt.err (!%p4547_p6)
}
  0x59   : > { %s4551_s18 = scalar_lea.vmem %s396_s19, 12288  ;;  %p4559_p11 = scmp.lt.s32.totalorder %s396_s19, %s396_s19 }
  0x5a   : > { %p4552_p8 = scmp.ne.s32.totalorder %s396_s19, %s4551_s18  ;;  %p4560_p12 = scmp.lt.s32.totalorder %s4551_s18, %s4551_s18 }
  0x5c   : > { %p4554_p9 = pnand %p4552_p8, %p4706_p7  ;;  %p4561_p2 = por %p4560_p12, %p4559_p11 }
  0x5e   : > { %p4555_p10 = pneg %p4554_p9 }
  0x60   : > { %p4562_p3 = pnand %p4561_p2, %p4555_p10 }
  0x62   : > { %4565 = shalt.err (!%p4562_p3)
}
  0x63   : > { %s4592_s17 = smov 128   ;;  %s4593_s20 = smov 8  }
  0x64   : > { %4318 = dma.hbm_to_vmem [thread:$0]  (!%p4690_p5), %s5418_s7, 12288, %s396_s19, [#allocation8], %s4592_s17, %s4592_s17, %s4593_s20  }
  0x65   : > { %p5434_p13 = scmp.ne.s32.totalorder %s5431_s27, 0 }
  0x66   : > { %p5435_p0 = scmp.eq.s32.totalorder (!%p5434_p13), %s4673_s26, 0 }
  0x67   : > { %434 = sbr.rel (%p5434_p13) target bundleno = 2108 (0x83c), region = 72 }
  0x6e   : > { %4571 = dma.done.wait (%p5435_p0), [#allocation3], 20480   ;;  %p5436_p7 = pmov %p5435_p0 }
  0x6f   : > { %p5437_p2 = pmov %p5435_p0 }
  0x70   : > { %4573 = vsyncadd (%p5436_p7), [#allocation3], 4294946816 }
  0x71   : > { %4575 = dma.done.wait (%p5437_p2), [#allocation5], 49152   ;;  %p5438_p3 = pmov %p5435_p0 }
  0x72   : > { %p5439_p1 = pmov %p5435_p0 }
  0x73   : > { %4577 = vsyncadd (%p5438_p3), [#allocation5], 4294918144 }
  0x74   : > { %4579 = dma.done.wait (%p5439_p1), [#allocation8], 12288   ;;  %p5440_p5 = pmov %p5435_p0 }
  0x75   : > { %v4594_v0 = vmov 0.0   ;;  %p488_p4 = scmp.lt.s32.totalorder %s4673_s26, 1  ;;  %v535_v1 = vld [vmem:[#allocation2 + $0x108] sm:$0xff]  ;;  %v537_v2 = vld [vmem:[#allocation2 + $0x118] sm:$0xff]  ;;  %v534_v3 = vld [vmem:[#allocation2 + $0x100] sm:$0xff]  ;;  %vm796_vm0 = vcmask 1045504  }
  0x76   : > { %4581 = vsyncadd (%p5440_p5), [#allocation8], 4294955008  ;;  %649 = vmatprep.mubr.f32.mxu0 %v4594_v0  ;;  %v3513_v4 = vpack.c.bf16 %v537_v2, %v535_v1  ;;  %v536_v5 = vld [vmem:[#allocation2 + $0x110] sm:$0xff]  ;;  %v539_v6 = vld [vmem:[#allocation2 + $0x128] sm:$0xff]  ;;  %vm940_vm1 = vcmask 1044480   ;;  %vm571_vm2 = vcmask 1046528  }
  0x77   : > { %s5449_s26 = smov (!%p488_p4, %s4673_s26), 1  ;;  %v541_v7 = vld [vmem:[#allocation2 + $0x138] sm:$0xff]  ;;  %v3515_v8 = vpack.c.bf16 %v536_v5, %v534_v3  ;;  %v538_v10 = vld [vmem:[#allocation2 + $0x120] sm:$0xff]  ;;  %v540_v11 = vld [vmem:[#allocation2 + $0x130] sm:$0xff]  ;;  %vm1084_vm3 = vcmask 1043456   ;;  %vm1271_vm4 = vcmask 1041408  }
  0x78   : > { %v3517_v9 = vpack.c.bf16 %v541_v7, %v539_v6  ;;  %v543_v12 = vld [vmem:[#allocation2 + $0x148] sm:$0xff]  ;;  %3514 = vmatprep.subr.bf16.mxu0 %v3513_v4  ;;  %v545_v13 = vld [vmem:[#allocation2 + $0x158] sm:$0xff]  ;;  %v3519_v14 = vpack.c.bf16 %v540_v11, %v538_v10  ;;  %s4289_s27 = smul.u32 40, %s5449_s26  ;;  %v542_v16 = vld [vmem:[#allocation2 + $0x140] sm:$0xff]  ;;  %vm4596_vm7 = vmmov 0   ;;  %s5445_s29 = sld [smem:[#allocation13_spill]] }
  0x79   : > { %3516 = vmatpush1.bf16.msra.mxu0 %v3515_v8  ;;  %v3521_v15 = vpack.c.bf16 %v545_v13, %v543_v12  ;;  %v544_v17 = vld [vmem:[#allocation2 + $0x150] sm:$0xff]  ;;  %v547_v18 = vld [vmem:[#allocation2 + $0x168] sm:$0xff]  ;;  %v549_v19 = vld [vmem:[#allocation2 + $0x178] sm:$0xff]  ;;  %s5446_s25 = sld [smem:[#allocation14_spill]] }
  0x7a   : > { %3518 = vmatprep.subr.bf16.mxu0 %v3517_v9  ;;  %v3523_v20 = vpack.c.bf16 %v544_v17, %v542_v16  ;;  %s4824_s28 = scalar_lea.vmem %s5411_s0, %s4289_s27  ;;  %v3525_v21 = vpack.c.bf16 %v549_v19, %v547_v18  ;;  %v546_v22 = vld [vmem:[#allocation2 + $0x160] sm:$0xff]  ;;  %v548_v23 = vld [vmem:[#allocation2 + $0x170] sm:$0xff]  ;;  %v551_v24 = vld [vmem:[#allocation2 + $0x188] sm:$0xff] }
  0x7b   : > { %v553_v25 = vld [vmem:[#allocation2 + $0x198] sm:$0xff]  ;;  %v4827_v26 = vld [vmem:[%s4824_s28] sm:$0xff]  ;;  %v3527_v27 = vpack.c.bf16 %v548_v23, %v546_v22  ;;  %v4830_v28 = vld [vmem:[%s4824_s28 + $0x8] sm:$0xff] }
  0x7c   : > { %v797_v29 = vrot.slane %v4827_v26, 2  ;;  %v3529_v30 = vpack.c.bf16 %v553_v25, %v551_v24  ;;  %v550_v31 = vld [vmem:[#allocation2 + $0x180] sm:$0xff]  ;;  %v552_v32 = vld [vmem:[#allocation2 + $0x190] sm:$0xff]  ;;  %v798_v33 = vrot.slane %v4830_v28, 2  ;;  %v941_v34 = vrot.slane %v4827_v26, 3  ;;  %v555_v36 = vld [vmem:[#allocation2 + $0x1a8] sm:$0xff] }
  0x7d   : > { %3520 = vmatpush1.bf16.msra.mxu0 %v3519_v14  ;;  %v942_v35 = vrot.slane %v4830_v28, 3  ;;  %v557_v37 = vld [vmem:[#allocation2 + $0x1b8] sm:$0xff]  ;;  %v3531_v40 = vpack.c.bf16 %v552_v32, %v550_v31  ;;  %v554_v42 = vld [vmem:[#allocation2 + $0x1a0] sm:$0xff]  ;;  %v556_v43 = vld [vmem:[#allocation2 + $0x1b0] sm:$0xff]  ;;  %v572_v8 = vrot.slane %v4827_v26, 1  ;;  %v573_v9 = vrot.slane %v4830_v28, 1 }
  0x7e   : > { %3522 = vmatprep.subr.bf16.mxu0 %v3521_v15  ;;  %v4837_v38 = vsel %vm796_vm0, %v797_v29, %v798_v33  ;;  %v3533_v41 = vpack.c.bf16 %v557_v37, %v555_v36  ;;  %v559_v44 = vld [vmem:[#allocation2 + $0x1c8] sm:$0xff]  ;;  %v561_v45 = vld [vmem:[#allocation2 + $0x1d8] sm:$0xff]  ;;  %v4843_v46 = vld [vmem:[%s4824_s28 + $0x10] sm:$0xff]  ;;  %v3535_v48 = vpack.c.bf16 %v556_v43, %v554_v42  ;;  %v1086_v22 = vrot.slane %v4830_v28, 4 }
  0x7f   : > { %v4840_v39 = vsel %vm940_vm1, %v941_v34, %v942_v35  ;;  %v800_v47 = vrot.slane %v4843_v46, 2  ;;  %v944_v49 = vrot.slane %v4843_v46, 3  ;;  %v3537_v50 = vpack.c.bf16 %v561_v45, %v559_v44  ;;  %v558_v51 = vld [vmem:[#allocation2 + $0x1c0] sm:$0xff]  ;;  %v560_v52 = vld [vmem:[#allocation2 + $0x1d0] sm:$0xff]  ;;  %v4848_v53 = vld [vmem:[%s4824_s28 + $0x18] sm:$0xff]  ;;  %s495_s22 = scalar_lea.vmem %s5446_s25, %s5449_s26 }
  0x80   : > { %v563_v55 = vld [vmem:[#allocation2 + $0x1e8] sm:$0xff]  ;;  %v565_v56 = vld [vmem:[#allocation2 + $0x1f8] sm:$0xff]  ;;  %v4854_v57 = vld [vmem:[%s4824_s28 + $0x20] sm:$0xf]  ;;  %v802_v58 = vrot.slane %v4848_v53, 2  ;;  %v3539_v61 = vpack.c.bf16 %v560_v52, %v558_v51  ;;  %v946_v63 = vrot.slane %v4848_v53, 3  ;;  %v574_v18 = vsel %vm571_vm2, %v572_v8, %v573_v9 }
  0x81   : > { %3524 = vmatpush1.bf16.msra.mxu0 %v3523_v20  ;;  %v4851_v54 = vsel %vm796_vm0, %v798_v33, %v800_v47  ;;  %v4858_v59 = vsel %vm940_vm1, %v942_v35, %v944_v49  ;;  %v804_v60 = vrot.slane %v4854_v57, 2  ;;  %v3541_v1 = vpack.c.bf16 %v565_v56, %v563_v55  ;;  %v562_v2 = vld [vmem:[#allocation2 + $0x1e0] sm:$0xff]  ;;  %v564_v3 = vld [vmem:[#allocation2 + $0x1f0] sm:$0xff]  ;;  %v502_v5 = vld [vmem:[#allocation2 + $0x8] sm:$0xff] }
  0x82   : > { %3526 = vmatprep.subr.bf16.mxu0 %v3525_v21  ;;  %v4862_v62 = vsel %vm796_vm0, %v800_v47, %v802_v58  ;;  %v504_v6 = vld [vmem:[#allocation2 + $0x18] sm:$0xff]  ;;  %v4869_v7 = vsel %vm940_vm1, %v944_v49, %v946_v63  ;;  %v3543_v10 = vpack.c.bf16 %v564_v3, %v562_v2  ;;  %v501_v11 = vld [vmem:[#allocation2] sm:$0xff]  ;;  %v503_v12 = vld [vmem:[#allocation2 + $0x10] sm:$0xff]  ;;  %v948_v13 = vrot.slane %v4854_v57, 3 }
  0x83   : > { %v4866_v4 = vsel %vm796_vm0, %v802_v58, %v804_v60  ;;  %v3545_v14 = vpack.c.bf16 %v504_v6, %v502_v5  ;;  %v506_v15 = vld [vmem:[#allocation2 + $0x28] sm:$0xff]  ;;  %v508_v16 = vld [vmem:[#allocation2 + $0x38] sm:$0xff]  ;;  %v3547_v19 = vpack.c.bf16 %v503_v12, %v501_v11  ;;  %v575_v20 = vrot.slane %v4843_v46, 1  ;;  %v505_v24 = vld [vmem:[#allocation2 + $0x20] sm:$0xff] }
  0x84   : > { %v4875_v17 = vsel %vm940_vm1, %v946_v63, %v948_v13  ;;  %v1085_v21 = vrot.slane %v4827_v26, 4  ;;  %v3549_v23 = vpack.c.bf16 %v508_v16, %v506_v15  ;;  %v507_v25 = vld [vmem:[#allocation2 + $0x30] sm:$0xff]  ;;  %v512_v29 = vld [vmem:[#allocation2 + $0x58] sm:$0xff]  ;;  %v577_v33 = vrot.slane %v4848_v53, 1  ;;  %v509_v36 = vld [vmem:[#allocation2 + $0x40] sm:$0xff] }
  0x85   : > { %3528 = vmatpush1.bf16.msra.mxu0 %v3527_v27  ;;  %v510_v27 = vld [vmem:[#allocation2 + $0x48] sm:$0xff]  ;;  %v3551_v31 = vpack.c.bf16 %v507_v25, %v505_v24  ;;  %v576_v32 = vsel %vm571_vm2, %v573_v9, %v575_v20  ;;  %v1088_v34 = vrot.slane %v4843_v46, 4  ;;  %v511_v37 = vld [vmem:[#allocation2 + $0x50] sm:$0xff]  ;;  %v579_v45 = vrot.slane %v4854_v57, 1  ;;  %v513_v49 = vld [vmem:[#allocation2 + $0x60] sm:$0xff] }
  0x86   : > { %3530 = vmatprep.subr.bf16.mxu0 %v3529_v30  ;;  %v4882_v30 = vsel %vm1084_vm3, %v1085_v21, %v1086_v22  ;;  %v3553_v35 = vpack.c.bf16 %v512_v29, %v510_v27  ;;  %v3555_v43 = vpack.c.bf16 %v511_v37, %v509_v36  ;;  %v578_v44 = vsel %vm571_vm2, %v575_v20, %v577_v33  ;;  %v518_v51 = vld [vmem:[#allocation2 + $0x88] sm:$0xff]  ;;  %v520_v52 = vld [vmem:[#allocation2 + $0x98] sm:$0xff]  ;;  %v517_v63 = vld [vmem:[#allocation2 + $0x80] sm:$0xff] }
  0x87   : > { %v4889_v42 = vsel %vm1084_vm3, %v1086_v22, %v1088_v34  ;;  %v1090_v47 = vrot.slane %v4848_v53, 4  ;;  %v580_v58 = vsel %vm571_vm2, %v577_v33, %v579_v45  ;;  %v1092_v60 = vrot.slane %v4854_v57, 4  ;;  %v522_v2 = vld [vmem:[#allocation2 + $0xa8] sm:$0xff]  ;;  %v524_v3 = vld [vmem:[#allocation2 + $0xb8] sm:$0xff]  ;;  %v521_v9 = vld [vmem:[#allocation2 + $0xa0] sm:$0xff] }
  0x88   : > { %v3565_v8 = vpack.c.bf16 %v524_v3, %v522_v2  ;;  %v526_v11 = vld [vmem:[#allocation2 + $0xc8] sm:$0xff]  ;;  %v528_v57 = vld [vmem:[#allocation2 + $0xd8] sm:$0xff]  ;;  %v527_v15 = vld [vmem:[#allocation2 + $0xd0] sm:$0xff] }
  0x89   : > { %3532 = vmatpush1.bf16.msra.mxu0 %v3531_v40  ;;  %v514_v40 = vld [vmem:[#allocation2 + $0x68] sm:$0xff]  ;;  %v4896_v55 = vsel %vm1084_vm3, %v1088_v34, %v1090_v47  ;;  %v4902_v5 = vsel %vm1084_vm3, %v1090_v47, %v1092_v60  ;;  %v3569_v13 = vpack.c.bf16 %v528_v57, %v526_v11  ;;  %v531_v20 = vld [vmem:[#allocation2 + $0xf0] sm:$0xff]  ;;  %v1364_v22 = vld [vmem:[#allocation4 + $0x218] sm:$0xff] }
  0x8a   : > { %3534 = vmatprep.subr.bf16.mxu0 %v3533_v41  ;;  %v516_v41 = vld [vmem:[#allocation2 + $0x78] sm:$0xff]  ;;  %v530_v16 = vld [vmem:[#allocation2 + $0xe8] sm:$0xff]  ;;  %v1363_v27 = vld [vmem:[#allocation4 + $0x210] sm:$0xff] }
  0x8b   : > { %v1362_v21 = vld [vmem:[#allocation4 + $0x208] sm:$0xff]  ;;  %v1367_v36 = vld [vmem:[#allocation4 + $0x230] sm:$0xff]  ;;  %v1373_v2 = vld [vmem:[#allocation4 + $0x260] sm:$0xff] }
  0x8c   : > { %v3673_v25 = vpack.c.bf16 %v1364_v22, %v1362_v21  ;;  %v1366_v29 = vld [vmem:[#allocation4 + $0x228] sm:$0xff]  ;;  %v1375_v3 = vld [vmem:[#allocation4 + $0x270] sm:$0xff]  ;;  %v775_v57 = vld [vmem:[#allocation2 + $0x258] sm:$0xff] }
  0x8d   : > { %3536 = vmatpush1.bf16.msra.mxu0 %v3535_v48  ;;  %v3557_v48 = vpack.c.bf16 %v516_v41, %v514_v40  ;;  %v1370_v37 = vld [vmem:[#allocation4 + $0x248] sm:$0xff]  ;;  %v767_v41 = vld [vmem:[#allocation2 + $0x218] sm:$0xff]  ;;  %v774_v21 = vld [vmem:[#allocation2 + $0x250] sm:$0xff] }
  0x8e   : > { %3538 = vmatprep.subr.bf16.mxu0 %v3537_v50  ;;  %v515_v50 = vld [vmem:[#allocation2 + $0x70] sm:$0xff]  ;;  %v765_v40 = vld [vmem:[#allocation2 + $0x208] sm:$0xff]  ;;  %3674 = vmatprep.subr.bf16.mxu1 %v3673_v25  ;;  %vm5026_vm5 = vmneg %vm1271_vm4 }
  0x8f   : > { %v3559_v56 = vpack.c.bf16 %v515_v50, %v513_v49  ;;  %v1371_v49 = vld [vmem:[#allocation4 + $0x250] sm:$0xff]  ;;  %v3577_v50 = vpack.c.bf16 %v767_v41, %v765_v40  ;;  %v1374_v60 = vld [vmem:[#allocation4 + $0x268] sm:$0xff]  ;;  %v787_v40 = vld [vmem:[#allocation2 + $0x2b8] sm:$0xff] }
  0x90   : > { %vm5142_vm6 = vmneg %vm1084_vm3 }
  0x91   : > { %3540 = vmatpush1.bf16.msra.mxu0 %v3539_v61  ;;  %v3561_v61 = vpack.c.bf16 %v520_v52, %v518_v51  ;;  %v764_v51 = vld [vmem:[#allocation2 + $0x200] sm:$0xff]  ;;  %v766_v52 = vld [vmem:[#allocation2 + $0x210] sm:$0xff] }
  0x92   : > { %3542 = vmatprep.subr.bf16.mxu0 %v3541_v1  ;;  %v519_v1 = vld [vmem:[#allocation2 + $0x90] sm:$0xff] }
  0x93   : > { %v3563_v6 = vpack.c.bf16 %v519_v1, %v517_v63  ;;  %v3579_v1 = vpack.c.bf16 %v766_v52, %v764_v51  ;;  %v790_v51 = vld [vmem:[#allocation2 + $0x2d0] sm:$0xff]  ;;  %v793_v52 = vld [vmem:[#allocation2 + $0x2e8] sm:$0xff] }
  0x95   : > { %3544 = vmatpush1.bf16.msra.mxu0 %v3543_v10  ;;  %v523_v10 = vld [vmem:[#allocation2 + $0xb0] sm:$0xff] }
  0x96   : > { %3546 = vmatprep.subr.bf16.mxu0 %v3545_v14  ;;  %v3567_v12 = vpack.c.bf16 %v523_v10, %v521_v9  ;;  %v525_v14 = vld [vmem:[#allocation2 + $0xc0] sm:$0xff]  ;;  %v770_v9 = vld [vmem:[#allocation2 + $0x230] sm:$0xff]  ;;  %v773_v10 = vld [vmem:[#allocation2 + $0x248] sm:$0xff] }
  0x97   : > { %v3571_v24 = vpack.c.bf16 %v527_v15, %v525_v14  ;;  %v3687_v14 = vpack.c.bf16 %v1375_v3, %v1373_v2 }
  0x98   : > { %650 = vmatmul.mubr.f32.vlgmr.msra.gmra.mrb[0].mxu0 %v574_v18  ;;  %v532_v18 = vld [vmem:[#allocation2 + $0xf8] sm:$0xff] }
  0x99   : > { %3548 = vmatpush1.bf16.msra.mxu0 %v3547_v19  ;;  %655 = vmatprep.mubr.f32.mxu0 %v4594_v0  ;;  %v529_v19 = vld [vmem:[#allocation2 + $0xe0] sm:$0xff] }
  0x9a   : > { %3550 = vmatprep.subr.bf16.mxu0 %v3549_v23  ;;  %v1361_v23 = vld [vmem:[#allocation4 + $0x200] sm:$0xff]  ;;  %v3575_v45 = vpack.c.bf16 %v531_v20, %v529_v19  ;;  %v3585_v19 = vpack.c.bf16 %v775_v57, %v773_v10  ;;  %v915_v10 = vld [vmem:[#allocation2 + $0x338] sm:$0xff] }
  0x9b   : > { %v3675_v33 = vpack.c.bf16 %v1363_v27, %v1361_v23  ;;  %v772_v20 = vld [vmem:[#allocation2 + $0x240] sm:$0xff]  ;;  %v777_v23 = vld [vmem:[#allocation2 + $0x268] sm:$0xff] }
  0x9c   : > { %656 = vmatmul.mubr.f32.gmra.mrb[2].mxu0 %v576_v32  ;;  %v3573_v32 = vpack.c.bf16 %v532_v18, %v530_v16  ;;  %v1377_v16 = vld [vmem:[#allocation4 + $0x280] sm:$0xff]  ;;  %v1379_v18 = vld [vmem:[#allocation4 + $0x290] sm:$0xff]  ;;  %v3587_v25 = vpack.c.bf16 %v774_v21, %v772_v20  ;;  %v921_v21 = vld [vmem:[#allocation2 + $0x368] sm:$0xff] }
  0x9d   : > { %3552 = vmatpush1.bf16.msra.mxu0 %v3551_v31  ;;  %661 = vmatprep.mubr.f32.mxu0 %v4594_v0  ;;  %v1368_v31 = vld [vmem:[#allocation4 + $0x238] sm:$0xff]  ;;  %v918_v20 = vld [vmem:[#allocation2 + $0x350] sm:$0xff] }
  0x9e   : > { %3554 = vmatprep.subr.bf16.mxu0 %v3553_v35  ;;  %v3677_v34 = vpack.c.bf16 %v1368_v31, %v1366_v29  ;;  %v1365_v35 = vld [vmem:[#allocation4 + $0x220] sm:$0xff]  ;;  %3676 = vmatpush1.bf16.msra.mxu1 %v3675_v33  ;;  %v778_v31 = vld [vmem:[#allocation2 + $0x270] sm:$0xff]  ;;  %v783_v33 = vld [vmem:[#allocation2 + $0x298] sm:$0xff] }
  0x9f   : > { %v776_v29 = vld [vmem:[#allocation2 + $0x260] sm:$0xff] }
  0xa0   : > { %662 = vmatmul.mubr.f32.gmra.mrb[4].mxu0 %v578_v44  ;;  %v3679_v44 = vpack.c.bf16 %v1367_v36, %v1365_v35  ;;  %3678 = vmatprep.subr.bf16.mxu1 %v3677_v34  ;;  %v3591_v34 = vpack.c.bf16 %v778_v31, %v776_v29  ;;  %v780_v35 = vld [vmem:[#allocation2 + $0x280] sm:$0xff]  ;;  %v782_v36 = vld [vmem:[#allocation2 + $0x290] sm:$0xff] }
  0xa1   : > { %3556 = vmatpush1.bf16.msra.mxu0 %v3555_v43  ;;  %667 = vmatprep.mubr.f32.mxu0 %v4594_v0  ;;  %v1372_v43 = vld [vmem:[#allocation4 + $0x258] sm:$0xff]  ;;  %v3595_v41 = vpack.c.bf16 %v782_v36, %v780_v35  ;;  %v928_v36 = vld [vmem:[#allocation2 + $0x3a0] sm:$0xff] }
  0xa2   : > { %3558 = vmatprep.subr.bf16.mxu0 %v3557_v48  ;;  %v3681_v47 = vpack.c.bf16 %v1372_v43, %v1370_v37  ;;  %v1369_v48 = vld [vmem:[#allocation4 + $0x240] sm:$0xff]  ;;  %3680 = vmatpush1.bf16.msra.mxu1 %v3679_v44  ;;  %v785_v37 = vld [vmem:[#allocation2 + $0x2a8] sm:$0xff]  ;;  %v786_v44 = vld [vmem:[#allocation2 + $0x2b0] sm:$0xff] }
  0xa3   : > { %v3683_v63 = vpack.c.bf16 %v1371_v49, %v1369_v48  ;;  %v3597_v43 = vpack.c.bf16 %v787_v40, %v785_v37  ;;  %v933_v37 = vld [vmem:[#allocation2 + $0x3c8] sm:$0xff]  ;;  %v935_v40 = vld [vmem:[#allocation2 + $0x3d8] sm:$0xff] }
  0xa4   : > { %668 = vmatmul.mubr.f32.gmra.mrb[6].mxu0 %v580_v58  ;;  %v771_v58 = vld [vmem:[#allocation2 + $0x238] sm:$0xff]  ;;  %3682 = vmatprep.subr.bf16.mxu1 %v3681_v47 }
  0xa5   : > { %3560 = vmatpush1.bf16.msra.mxu0 %v3559_v56  ;;  %738 = vmatprep.mubr.f32.mxu0 %v4594_v0  ;;  %v769_v56 = vld [vmem:[#allocation2 + $0x228] sm:$0xff]  ;;  %v791_v47 = vld [vmem:[#allocation2 + $0x2d8] sm:$0xff] }
  0xa6   : > { %3562 = vmatprep.subr.bf16.mxu0 %v3561_v61  ;;  %v1376_v61 = vld [vmem:[#allocation4 + $0x278] sm:$0xff]  ;;  %3684 = vmatpush1.bf16.msra.mxu1 %v3683_v63  ;;  %v909_v63 = vld [vmem:[#allocation2 + $0x308] sm:$0xff] }
  0xa7   : > { %v3685_v11 = vpack.c.bf16 %v1376_v61, %v1374_v60  ;;  %v792_v60 = vld [vmem:[#allocation2 + $0x2e0] sm:$0xff]  ;;  %v794_v61 = vld [vmem:[#allocation2 + $0x2f0] sm:$0xff] }
  0xa8   : > { %v3607_v2 = vpack.c.bf16 %v794_v61, %v792_v60  ;;  %v1054_v60 = vld [vmem:[#allocation2 + $0x410] sm:$0xff]  ;;  %v1057_v61 = vld [vmem:[#allocation2 + $0x428] sm:$0xff] }
  0xa9   : > { %3564 = vmatpush1.bf16.msra.mxu0 %v3563_v6  ;;  %v3581_v6 = vpack.c.bf16 %v771_v58, %v769_v56  ;;  %3686 = vmatprep.subr.bf16.mxu1 %v3685_v11  ;;  %v795_v56 = vld [vmem:[#allocation2 + $0x2f8] sm:$0xff] }
  0xaa   : > { %3566 = vmatprep.subr.bf16.mxu0 %v3565_v8  ;;  %v768_v8 = vld [vmem:[#allocation2 + $0x220] sm:$0xff]  ;;  %3688 = vmatpush1.bf16.msra.mxu1 %v3687_v14  ;;  %v3605_v58 = vpack.c.bf16 %v795_v56, %v793_v52  ;;  %v917_v14 = vld [vmem:[#allocation2 + $0x348] sm:$0xff]  ;;  %v1055_v52 = vld [vmem:[#allocation2 + $0x418] sm:$0xff] }
  0xab   : > { %v3583_v15 = vpack.c.bf16 %v770_v9, %v768_v8  ;;  %v910_v8 = vld [vmem:[#allocation2 + $0x310] sm:$0xff]  ;;  %v913_v9 = vld [vmem:[#allocation2 + $0x328] sm:$0xff] }
  0xac   : > { %v3613_v57 = vpack.c.bf16 %v915_v10, %v913_v9  ;;  %v1063_v9 = vld [vmem:[#allocation2 + $0x458] sm:$0xff] }
  0xad   : > { %3568 = vmatpush1.bf16.msra.mxu0 %v3567_v12  ;;  %v1378_v12 = vld [vmem:[#allocation4 + $0x288] sm:$0xff] }
  0xae   : > { %3570 = vmatprep.subr.bf16.mxu0 %v3569_v13  ;;  %v1380_v13 = vld [vmem:[#allocation4 + $0x298] sm:$0xff] }
  0xaf   : > { %v3689_v22 = vpack.c.bf16 %v1380_v13, %v1378_v12  ;;  %v912_v12 = vld [vmem:[#allocation2 + $0x320] sm:$0xff]  ;;  %v914_v13 = vld [vmem:[#allocation2 + $0x330] sm:$0xff] }
  0xb1   : > { %3572 = vmatpush1.bf16.msra.mxu0 %v3571_v24  ;;  %v779_v24 = vld [vmem:[#allocation2 + $0x278] sm:$0xff]  ;;  %3690 = vmatprep.subr.bf16.mxu1 %v3689_v22 }
  0xb2   : > { %3574 = vmatprep.subr.bf16.mxu0 %v3573_v32  ;;  %v3589_v27 = vpack.c.bf16 %v779_v24, %v777_v23  ;;  %v781_v32 = vld [vmem:[#allocation2 + $0x288] sm:$0xff]  ;;  %v923_v22 = vld [vmem:[#allocation2 + $0x378] sm:$0xff] }
  0xb3   : > { %v3621_v24 = vpack.c.bf16 %v923_v22, %v921_v21 }
  0xb5   : > { %3576 = vmatpush1.bf16.msra.mxu0 %v3575_v45  ;;  %v789_v45 = vld [vmem:[#allocation2 + $0x2c8] sm:$0xff] }
  0xb6   : > { %3578 = vmatprep.subr.bf16.mxu0 %v3577_v50  ;;  %v3601_v49 = vpack.c.bf16 %v791_v47, %v789_v45  ;;  %v788_v50 = vld [vmem:[#allocation2 + $0x2c0] sm:$0xff]  ;;  %v937_v45 = vld [vmem:[#allocation2 + $0x3e8] sm:$0xff]  ;;  %v939_v47 = vld [vmem:[#allocation2 + $0x3f8] sm:$0xff] }
  0xb8   : > { %739 = vmatmul.mubr.f32.vlgmr.msra.gmra.mrb[0].mxu0 %v4827_v26  ;;  %v3691_v26 = vpack.c.bf16 %v1379_v18, %v1377_v16  ;;  %v3615_v16 = vpack.c.bf16 %v914_v13, %v912_v12  ;;  %v1062_v12 = vld [vmem:[#allocation2 + $0x450] sm:$0xff]  ;;  %v1065_v13 = vld [vmem:[#allocation2 + $0x468] sm:$0xff] }
  0xb9   : > { %3580 = vmatpush1.bf16.msra.mxu0 %v3579_v1  ;;  %744 = vmatprep.mubr.f32.mxu0 %v4594_v0  ;;  %v911_v1 = vld [vmem:[#allocation2 + $0x318] sm:$0xff] }
  0xba   : > { %3582 = vmatprep.subr.bf16.mxu0 %v3581_v6  ;;  %3692 = vmatpush1.bf16.msra.mxu1 %v3691_v26  ;;  %v3609_v3 = vpack.c.bf16 %v911_v1, %v909_v63  ;;  %v908_v6 = vld [vmem:[#allocation2 + $0x300] sm:$0xff]  ;;  %v1059_v63 = vld [vmem:[#allocation2 + $0x438] sm:$0xff] }
  0xbb   : > { %v3611_v11 = vpack.c.bf16 %v910_v8, %v908_v6  ;;  %v920_v26 = vld [vmem:[#allocation2 + $0x360] sm:$0xff]  ;;  %v1058_v6 = vld [vmem:[#allocation2 + $0x430] sm:$0xff]  ;;  %v1061_v8 = vld [vmem:[#allocation2 + $0x448] sm:$0xff] }
  0xbc   : > { %745 = vmatmul.mubr.f32.gmra.mrb[2].mxu0 %v4830_v28  ;;  %v3593_v28 = vpack.c.bf16 %v783_v33, %v781_v32  ;;  %v924_v32 = vld [vmem:[#allocation2 + $0x380] sm:$0xff]  ;;  %v929_v33 = vld [vmem:[#allocation2 + $0x3a8] sm:$0xff] }
  0xbd   : > { %3584 = vmatpush1.bf16.msra.mxu0 %v3583_v15  ;;  %750 = vmatprep.mubr.f32.mxu0 %v4594_v0  ;;  %v919_v15 = vld [vmem:[#allocation2 + $0x358] sm:$0xff] }
  0xbe   : > { %3586 = vmatprep.subr.bf16.mxu0 %v3585_v19  ;;  %v3617_v18 = vpack.c.bf16 %v919_v15, %v917_v14  ;;  %v916_v19 = vld [vmem:[#allocation2 + $0x340] sm:$0xff]  ;;  %v1067_v14 = vld [vmem:[#allocation2 + $0x478] sm:$0xff] }
  0xbf   : > { %v3619_v23 = vpack.c.bf16 %v918_v20, %v916_v19  ;;  %v1069_v19 = vld [vmem:[#allocation2 + $0x488] sm:$0xff]  ;;  %v1071_v20 = vld [vmem:[#allocation2 + $0x498] sm:$0xff] }
  0xc0   : > { %751 = vmatmul.mubr.f32.gmra.mrb[4].mxu0 %v4843_v46  ;;  %v784_v46 = vld [vmem:[#allocation2 + $0x2a0] sm:$0xff]  ;;  %v3657_v22 = vpack.c.bf16 %v1071_v20, %v1069_v19 }
  0xc1   : > { %3588 = vmatpush1.bf16.msra.mxu0 %v3587_v25  ;;  %756 = vmatprep.mubr.f32.mxu0 %v4594_v0  ;;  %v3599_v48 = vpack.c.bf16 %v786_v44, %v784_v46  ;;  %v925_v25 = vld [vmem:[#allocation2 + $0x388] sm:$0xff]  ;;  %v932_v46 = vld [vmem:[#allocation2 + $0x3c0] sm:$0xff]  ;;  %v934_v44 = vld [vmem:[#allocation2 + $0x3d0] sm:$0xff] }
  0xc2   : > { %3590 = vmatprep.subr.bf16.mxu0 %v3589_v27  ;;  %v927_v27 = vld [vmem:[#allocation2 + $0x398] sm:$0xff]  ;;  %v1405_v20 = vld [vmem:[#allocation4 + $0x360] sm:$0xff] }
  0xc3   : > { %v3625_v31 = vpack.c.bf16 %v927_v27, %v925_v25  ;;  %v1072_v27 = vld [vmem:[#allocation2 + $0x4a0] sm:$0xff] }
  0xc4   : > { %757 = vmatmul.mubr.f32.gmra.mrb[6].mxu0 %v4848_v53  ;;  %v3603_v53 = vpack.c.bf16 %v790_v51, %v788_v50  ;;  %v938_v50 = vld [vmem:[#allocation2 + $0x3f0] sm:$0xff]  ;;  %v1053_v51 = vld [vmem:[#allocation2 + $0x408] sm:$0xff] }
  0xc5   : > { %3592 = vmatpush1.bf16.msra.mxu0 %v3591_v34  ;;  %874 = vmatprep.mubr.f32.mxu0 %v4594_v0  ;;  %v931_v34 = vld [vmem:[#allocation2 + $0x3b8] sm:$0xff] }
  0xc6   : > { %3594 = vmatprep.subr.bf16.mxu0 %v3593_v28  ;;  %v3629_v35 = vpack.c.bf16 %v931_v34, %v929_v33  ;;  %v1076_v33 = vld [vmem:[#allocation2 + $0x4c0] sm:$0xff]  ;;  %v1078_v34 = vld [vmem:[#allocation2 + $0x4d0] sm:$0xff] }
  0xc9   : > { %3596 = vmatpush1.bf16.msra.mxu0 %v3595_v41 }
  0xca   : > { %3598 = vmatprep.subr.bf16.mxu0 %v3597_v43  ;;  %v3633_v43 = vpack.c.bf16 %v935_v40, %v933_v37  ;;  %v1082_v37 = vld [vmem:[#allocation2 + $0x4f0] sm:$0xff] }
  0xcd   : > { %3600 = vmatpush1.bf16.msra.mxu0 %v3599_v48  ;;  %v3637_v48 = vpack.c.bf16 %v939_v47, %v937_v45  ;;  %v1383_v45 = vld [vmem:[#allocation4 + $0x2b0] sm:$0xff] }
  0xce   : > { %3602 = vmatprep.subr.bf16.mxu0 %v3601_v49  ;;  %v936_v49 = vld [vmem:[#allocation2 + $0x3e0] sm:$0xff] }
  0xcf   : > { %v3639_v56 = vpack.c.bf16 %v938_v50, %v936_v49  ;;  %v1387_v49 = vld [vmem:[#allocation4 + $0x2d0] sm:$0xff] }
  0xd1   : > { %3604 = vmatpush1.bf16.msra.mxu0 %v3603_v53  ;;  %v3641_v53 = vpack.c.bf16 %v1055_v52, %v1053_v51  ;;  %v1392_v51 = vld [vmem:[#allocation4 + $0x2f8] sm:$0xff] }
  0xd2   : > { %3606 = vmatprep.subr.bf16.mxu0 %v3605_v58  ;;  %v1052_v58 = vld [vmem:[#allocation2 + $0x400] sm:$0xff] }
  0xd3   : > { %v3643_v1 = vpack.c.bf16 %v1054_v60, %v1052_v58  ;;  %v1394_v58 = vld [vmem:[#allocation4 + $0x308] sm:$0xff]  ;;  %v1396_v60 = vld [vmem:[#allocation4 + $0x318] sm:$0xff] }
  0xd5   : > { %3608 = vmatpush1.bf16.msra.mxu0 %v3607_v2  ;;  %v3645_v2 = vpack.c.bf16 %v1059_v63, %v1057_v61  ;;  %v3705_v61 = vpack.c.bf16 %v1396_v60, %v1394_v58  ;;  %v1393_v63 = vld [vmem:[#allocation4 + $0x300] sm:$0xff] }
  0xd6   : > { %3610 = vmatprep.subr.bf16.mxu0 %v3609_v3  ;;  %v1056_v3 = vld [vmem:[#allocation2 + $0x420] sm:$0xff] }
  0xd7   : > { %v3647_v10 = vpack.c.bf16 %v1058_v6, %v1056_v3  ;;  %v1398_v3 = vld [vmem:[#allocation4 + $0x328] sm:$0xff]  ;;  %v1400_v6 = vld [vmem:[#allocation4 + $0x338] sm:$0xff] }
  0xd8   : > { %875 = vmatmul.mubr.f32.vlgmr.msra.gmra.mrb[0].mxu0 %v4837_v38  ;;  %v922_v38 = vld [vmem:[#allocation2 + $0x370] sm:$0xff] }
  0xd9   : > { %3612 = vmatpush1.bf16.msra.mxu0 %v3611_v11  ;;  %880 = vmatprep.mubr.f32.mxu0 %v4594_v0  ;;  %v3623_v29 = vpack.c.bf16 %v922_v38, %v920_v26  ;;  %v3649_v11 = vpack.c.bf16 %v1063_v9, %v1061_v8  ;;  %v1075_v26 = vld [vmem:[#allocation2 + $0x4b8] sm:$0xff]  ;;  %v3709_v8 = vpack.c.bf16 %v1400_v6, %v1398_v3  ;;  %v1397_v9 = vld [vmem:[#allocation4 + $0x320] sm:$0xff] }
  0xda   : > { %3614 = vmatprep.subr.bf16.mxu0 %v3613_v57  ;;  %v1060_v57 = vld [vmem:[#allocation2 + $0x440] sm:$0xff] }
  0xdb   : > { %v3651_v15 = vpack.c.bf16 %v1062_v12, %v1060_v57  ;;  %v1402_v57 = vld [vmem:[#allocation4 + $0x348] sm:$0xff]  ;;  %v1404_v12 = vld [vmem:[#allocation4 + $0x358] sm:$0xff] }
  0xdc   : > { %881 = vmatmul.mubr.f32.gmra.mrb[2].mxu0 %v4851_v54  ;;  %v926_v54 = vld [vmem:[#allocation2 + $0x390] sm:$0xff] }
  0xdd   : > { %3616 = vmatpush1.bf16.msra.mxu0 %v3615_v16  ;;  %886 = vmatprep.mubr.f32.mxu0 %v4594_v0  ;;  %v3627_v28 = vpack.c.bf16 %v926_v54, %v924_v32  ;;  %v3653_v16 = vpack.c.bf16 %v1067_v14, %v1065_v13  ;;  %v3713_v13 = vpack.c.bf16 %v1404_v12, %v1402_v57  ;;  %v1401_v14 = vld [vmem:[#allocation4 + $0x340] sm:$0xff] }
  0xde   : > { %3618 = vmatprep.subr.bf16.mxu0 %v3617_v18  ;;  %v1064_v18 = vld [vmem:[#allocation2 + $0x460] sm:$0xff] }
  0xe0   : > { %887 = vmatmul.mubr.f32.gmra.mrb[4].mxu0 %v4862_v62  ;;  %v930_v62 = vld [vmem:[#allocation2 + $0x3b0] sm:$0xff] }
  0xe1   : > { %3620 = vmatpush1.bf16.msra.mxu0 %v3619_v23  ;;  %892 = vmatprep.mubr.f32.mxu0 %v4594_v0  ;;  %v3631_v41 = vpack.c.bf16 %v930_v62, %v928_v36  ;;  %v1068_v23 = vld [vmem:[#allocation2 + $0x480] sm:$0xff] }
  0xe2   : > { %3622 = vmatprep.subr.bf16.mxu0 %v3621_v24  ;;  %v1073_v24 = vld [vmem:[#allocation2 + $0x4a8] sm:$0xff]  ;;  %v1080_v62 = vld [vmem:[#allocation2 + $0x4e0] sm:$0xff] }
  0xe3   : > { %v3661_v25 = vpack.c.bf16 %v1075_v26, %v1073_v24  ;;  %v3671_v40 = vpack.c.bf16 %v1082_v37, %v1080_v62  ;;  %v1409_v26 = vld [vmem:[#allocation4 + $0x380] sm:$0xff]  ;;  %v1422_v62 = vld [vmem:[#allocation4 + $0x3e8] sm:$0xff]  ;;  %v1424_v37 = vld [vmem:[#allocation4 + $0x3f8] sm:$0xff] }
  0xe4   : > { %893 = vmatmul.mubr.f32.gmra.mrb[6].mxu0 %v4866_v4  ;;  %v3635_v4 = vpack.c.bf16 %v934_v44, %v932_v46  ;;  %v1381_v44 = vld [vmem:[#allocation4 + $0x2a0] sm:$0xff] }
  0xe5   : > { %3624 = vmatpush1.bf16.msra.mxu0 %v3623_v29  ;;  %1018 = vmatprep.mubr.f32.mxu0 %v4594_v0  ;;  %v1077_v29 = vld [vmem:[#allocation2 + $0x4c8] sm:$0xff]  ;;  %v3695_v47 = vpack.c.bf16 %v1383_v45, %v1381_v44  ;;  %v1299_v45 = vld [vmem:[#allocation4 + $0x18] sm:$0xff] }
  0xe6   : > { %3626 = vmatprep.subr.bf16.mxu0 %v3625_v31  ;;  %v1079_v31 = vld [vmem:[#allocation2 + $0x4d8] sm:$0xff]  ;;  %v1297_v44 = vld [vmem:[#allocation4 + $0x8] sm:$0xff] }
  0xe7   : > { %v3665_v54 = vpack.c.bf16 %v1079_v31, %v1077_v29  ;;  %v1413_v31 = vld [vmem:[#allocation4 + $0x3a0] sm:$0xff] }
  0xe9   : > { %3628 = vmatpush1.bf16.msra.mxu0 %v3627_v28  ;;  %v1081_v28 = vld [vmem:[#allocation2 + $0x4e8] sm:$0xff] }
  0xea   : > { %3630 = vmatprep.subr.bf16.mxu0 %v3629_v35  ;;  %v1083_v35 = vld [vmem:[#allocation2 + $0x4f8] sm:$0xff] }
  0xeb   : > { %v3669_v36 = vpack.c.bf16 %v1083_v35, %v1081_v28  ;;  %v1417_v35 = vld [vmem:[#allocation4 + $0x3c0] sm:$0xff] }
  0xed   : > { %3632 = vmatpush1.bf16.msra.mxu0 %v3631_v41  ;;  %v1382_v41 = vld [vmem:[#allocation4 + $0x2a8] sm:$0xff] }
  0xee   : > { %3634 = vmatprep.subr.bf16.mxu0 %v3633_v43  ;;  %v1384_v43 = vld [vmem:[#allocation4 + $0x2b8] sm:$0xff] }
  0xef   : > { %v3693_v46 = vpack.c.bf16 %v1384_v43, %v1382_v41  ;;  %v1421_v41 = vld [vmem:[#allocation4 + $0x3e0] sm:$0xff]  ;;  %v1423_v43 = vld [vmem:[#allocation4 + $0x3f0] sm:$0xff] }
  0xf1   : > { %3636 = vmatpush1.bf16.msra.mxu0 %v3635_v4  ;;  %3694 = vmatprep.subr.bf16.mxu1 %v3693_v46  ;;  %v1388_v4 = vld [vmem:[#allocation4 + $0x2d8] sm:$0xff]  ;;  %v3735_v46 = vpack.c.bf16 %v1423_v43, %v1421_v41 }
  0xf2   : > { %3638 = vmatprep.subr.bf16.mxu0 %v3637_v48  ;;  %3696 = vmatpush1.bf16.msra.mxu1 %v3695_v47  ;;  %v3737_v47 = vpack.c.bf16 %v1299_v45, %v1297_v44 }
  0xf5   : > { %3640 = vmatpush1.bf16.msra.mxu0 %v3639_v56  ;;  %v1391_v56 = vld [vmem:[#allocation4 + $0x2f0] sm:$0xff] }
  0xf6   : > { %3642 = vmatprep.subr.bf16.mxu0 %v3641_v53 }
  0xf8   : > { %1019 = vmatmul.mubr.f32.vlgmr.msra.gmra.mrb[0].mxu0 %v4840_v39  ;;  %v1066_v39 = vld [vmem:[#allocation2 + $0x470] sm:$0xff] }
  0xf9   : > { %3644 = vmatpush1.bf16.msra.mxu0 %v3643_v1  ;;  %1024 = vmatprep.mubr.f32.mxu0 %v4594_v0  ;;  %v3655_v21 = vpack.c.bf16 %v1066_v39, %v1064_v18  ;;  %v1395_v1 = vld [vmem:[#allocation4 + $0x310] sm:$0xff]  ;;  %v1406_v18 = vld [vmem:[#allocation4 + $0x368] sm:$0xff]  ;;  %v1408_v39 = vld [vmem:[#allocation4 + $0x378] sm:$0xff] }
  0xfa   : > { %3646 = vmatprep.subr.bf16.mxu0 %v3645_v2  ;;  %v3707_v2 = vpack.c.bf16 %v1395_v1, %v1393_v63  ;;  %v3717_v19 = vpack.c.bf16 %v1408_v39, %v1406_v18 }
  0xfc   : > { %1025 = vmatmul.mubr.f32.gmra.mrb[2].mxu0 %v4858_v59  ;;  %v1070_v59 = vld [vmem:[#allocation2 + $0x490] sm:$0xff] }
  0xfd   : > { %3648 = vmatpush1.bf16.msra.mxu0 %v3647_v10  ;;  %1030 = vmatprep.mubr.f32.mxu0 %v4594_v0  ;;  %v3659_v38 = vpack.c.bf16 %v1070_v59, %v1068_v23  ;;  %v1399_v10 = vld [vmem:[#allocation4 + $0x330] sm:$0xff]  ;;  %v1410_v23 = vld [vmem:[#allocation4 + $0x388] sm:$0xff]  ;;  %v1412_v59 = vld [vmem:[#allocation4 + $0x398] sm:$0xff] }
  0xfe   : > { %3650 = vmatprep.subr.bf16.mxu0 %v3649_v11  ;;  %v3711_v11 = vpack.c.bf16 %v1399_v10, %v1397_v9  ;;  %v3721_v24 = vpack.c.bf16 %v1412_v59, %v1410_v23 }
 0x100   : > { %1031 = vmatmul.mubr.f32.gmra.mrb[4].mxu0 %v4869_v7  ;;  %v1074_v7 = vld [vmem:[#allocation2 + $0x4b0] sm:$0xff] }
 0x101   : > { %3652 = vmatpush1.bf16.msra.mxu0 %v3651_v15  ;;  %1036 = vmatprep.mubr.f32.mxu0 %v4594_v0  ;;  %v3663_v32 = vpack.c.bf16 %v1074_v7, %v1072_v27  ;;  %v1403_v15 = vld [vmem:[#allocation4 + $0x350] sm:$0xff]  ;;  %v1414_v27 = vld [vmem:[#allocation4 + $0x3a8] sm:$0xff]  ;;  %v1416_v7 = vld [vmem:[#allocation4 + $0x3b8] sm:$0xff] }
 0x102   : > { %3654 = vmatprep.subr.bf16.mxu0 %v3653_v16  ;;  %v3715_v16 = vpack.c.bf16 %v1403_v15, %v1401_v14  ;;  %v3725_v29 = vpack.c.bf16 %v1416_v7, %v1414_v27 }
 0x104   : > { %1037 = vmatmul.mubr.f32.gmra.mrb[6].mxu0 %v4875_v17  ;;  %v3667_v17 = vpack.c.bf16 %v1078_v34, %v1076_v33  ;;  %v1418_v33 = vld [vmem:[#allocation4 + $0x3c8] sm:$0xff]  ;;  %v1420_v34 = vld [vmem:[#allocation4 + $0x3d8] sm:$0xff] }
 0x105   : > { %3656 = vmatpush1.bf16.msra.mxu0 %v3655_v21  ;;  %1162 = vmatprep.mubr.f32.mxu0 %v4594_v0  ;;  %v1407_v21 = vld [vmem:[#allocation4 + $0x370] sm:$0xff]  ;;  %v3729_v28 = vpack.c.bf16 %v1420_v34, %v1418_v33 }
 0x106   : > { %3658 = vmatprep.subr.bf16.mxu0 %v3657_v22  ;;  %v3719_v22 = vpack.c.bf16 %v1407_v21, %v1405_v20 }
 0x109   : > { %3660 = vmatpush1.bf16.msra.mxu0 %v3659_v38  ;;  %v1411_v38 = vld [vmem:[#allocation4 + $0x390] sm:$0xff] }
 0x10a   : > { %3662 = vmatprep.subr.bf16.mxu0 %v3661_v25  ;;  %v3723_v25 = vpack.c.bf16 %v1411_v38, %v1409_v26 }
 0x10d   : > { %3664 = vmatpush1.bf16.msra.mxu0 %v3663_v32  ;;  %v1415_v32 = vld [vmem:[#allocation4 + $0x3b0] sm:$0xff] }
 0x10e   : > { %3666 = vmatprep.subr.bf16.mxu0 %v3665_v54  ;;  %v3727_v54 = vpack.c.bf16 %v1415_v32, %v1413_v31 }
 0x111   : > { %3668 = vmatpush1.bf16.msra.mxu0 %v3667_v17  ;;  %v1419_v17 = vld [vmem:[#allocation4 + $0x3d0] sm:$0xff] }
 0x112   : > { %3670 = vmatprep.subr.bf16.mxu0 %v3669_v36  ;;  %v3731_v36 = vpack.c.bf16 %v1419_v17, %v1417_v35 }
 0x115   : > { %3672 = vmatpush1.bf16.msra.mxu0 %v3671_v40  ;;  %v3733_v40 = vpack.c.bf16 %v1424_v37, %v1422_v62 }
 0x118   : > { %1163 = vmatmul.mubr.f32.vlgmr.msra.gmra.mrb[0].mxu0 %v4882_v30  ;;  %v1386_v30 = vld [vmem:[#allocation4 + $0x2c8] sm:$0xff] }
 0x119   : > { %1168 = vmatprep.mubr.f32.mxu0 %v4594_v0  ;;  %v3697_v48 = vpack.c.bf16 %v1388_v4, %v1386_v30  ;;  %v1197_v30 = vlaneseq }
 0x11b   : > { %3698 = vmatprep.subr.bf16.mxu1 %v3697_v48  ;;  %v1198_v4 = vshrl.u32 %v1197_v30, 7 }
 0x11c   : > { %1169 = vmatmul.mubr.f32.gmra.mrb[2].mxu0 %v4889_v42  ;;  %v1385_v42 = vld [vmem:[#allocation4 + $0x2c0] sm:$0xff] }
 0x11d   : > { %1174 = vmatprep.mubr.f32.mxu0 %v4594_v0  ;;  %v3699_v50 = vpack.c.bf16 %v1387_v49, %v1385_v42  ;;  %v4936_v48 = vsub.s32 0, %v1198_v4  ;;  %v1195_v42 = vld [vmem:[%s5413_s2] sm:$0x3]  ;;  %v4941_v49 = vsub.s32 1, %v1198_v4 }
 0x11f   : > { %3700 = vmatpush1.bf16.msra.mxu1 %v3699_v50  ;;  %v1200_v50 = vrot.slane %v1195_v42, %v4936_v48 }
 0x120   : > { %1175 = vmatmul.mubr.f32.gmra.mrb[4].mxu0 %v4896_v55  ;;  %v1390_v55 = vld [vmem:[#allocation4 + $0x2e8] sm:$0xff] }
 0x121   : > { %1180 = vmatprep.mubr.f32.mxu0 %v4594_v0  ;;  %v3701_v52 = vpack.c.bf16 %v1392_v51, %v1390_v55  ;;  %v1204_v55 = vrot.slane %v1195_v42, %v4941_v49 }
 0x123   : > { %3702 = vmatprep.subr.bf16.mxu1 %v3701_v52 }
 0x124   : > { %1181 = vmatmul.mubr.f32.gmra.mrb[6].mxu0 %v4902_v5  ;;  %v1389_v5 = vld [vmem:[#allocation4 + $0x2e0] sm:$0xff] }
 0x125   : > { %v3703_v53 = vpack.c.bf16 %v1391_v56, %v1389_v5 }
 0x127   : > { %3704 = vmatpush1.bf16.msra.mxu1 %v3703_v53 }
 0x128   : > { %3706 = vmatprep.subr.bf16.mxu1 %v3705_v61 }
 0x12b   : > { %3708 = vmatpush1.bf16.msra.mxu1 %v3707_v2 }
 0x12c   : > { %3710 = vmatprep.subr.bf16.mxu1 %v3709_v8 }
 0x12f   : > { %3712 = vmatpush1.bf16.msra.mxu1 %v3711_v11 }
 0x130   : > { %3714 = vmatprep.subr.bf16.mxu1 %v3713_v13 }
 0x133   : > { %3716 = vmatpush1.bf16.msra.mxu1 %v3715_v16 }
 0x134   : > { %3718 = vmatprep.subr.bf16.mxu1 %v3717_v19 }
 0x137   : > { %3720 = vmatpush1.bf16.msra.mxu1 %v3719_v22 }
 0x138   : > { %3722 = vmatprep.subr.bf16.mxu1 %v3721_v24 }
 0x13b   : > { %3724 = vmatpush1.bf16.msra.mxu1 %v3723_v25 }
 0x13c   : > { %3726 = vmatprep.subr.bf16.mxu1 %v3725_v29 }
 0x13f   : > { %3728 = vmatpush1.bf16.msra.mxu1 %v3727_v54 }
 0x140   : > { %3730 = vmatprep.subr.bf16.mxu1 %v3729_v28 }
 0x143   : > { %3732 = vmatpush1.bf16.msra.mxu1 %v3731_v36 }
 0x144   : > { %3734 = vmatprep.subr.bf16.mxu1 %v3733_v40 }
 0x147   : > { %3736 = vmatpush1.bf16.msra.mxu1 %v3735_v46 }
 0x148   : > { %3738 = vmatprep.subr.bf16.mxu1 %v3737_v47 }
 0x1eb   : > { %v1164_v51 = vpop.f32.mrb[0].mxu0 }
 0x1ec   : > { %v1207_v52 = vadd.f32 %v1200_v50, %v1164_v51  ;;  %v1166_v5 = vpop.f32.mrb[1].mxu0 }
 0x1ed   : > { %v1208_v56 = vadd.f32 %v1204_v55, %v1166_v5 }
 0x1ee   : > { %v1215_v53 = vsub.f32 0.0, %v1207_v52 }
 0x1ef   : > { %v1216_v58 = vsub.f32 0.0, %v1208_v56  ;;  %v1170_v60 = vpop.f32.mrb[2].mxu0 }
 0x1f0   : > { %v1223_v61 = vmul.f32 1.442695, %v1215_v53  ;;  %v4945_v63 = vadd.f32 %v1200_v50, %v1170_v60  ;;  %v1172_v1 = vpop.f32.mrb[3].mxu0  ;;  %v1298_v60 = vld [vmem:[#allocation4 + $0x10] sm:$0xff] }
 0x1f1   : > { %v1225_v2 = vmul.f32 1.442695, %v1216_v58  ;;  %v4947_v3 = vadd.f32 %v1204_v55, %v1172_v1  ;;  %v1296_v58 = vld [vmem:[#allocation4] sm:$0xff] }
 0x1f2   : > { %4346 = vpow2.f32 %v1223_v61  ;;  %v1217_v6 = vsub.f32 0.0, %v4945_v63 }
 0x1f3   : > { %4348 = vpow2.f32 %v1225_v2  ;;  %v1218_v8 = vsub.f32 0.0, %v4947_v3  ;;  %v1176_v9 = vpop.f32.mrb[4].mxu0  ;;  %v1301_v2 = vld [vmem:[#allocation4 + $0x28] sm:$0xff] }
 0x1f4   : > { %v1227_v10 = vmul.f32 1.442695, %v1217_v6  ;;  %v4951_v11 = vadd.f32 %v1200_v50, %v1176_v9  ;;  %v1178_v57 = vpop.f32.mrb[5].mxu0 }
 0x1f5   : > { %v1229_v12 = vmul.f32 1.442695, %v1218_v8  ;;  %v4953_v13 = vadd.f32 %v1204_v55, %v1178_v57 }
 0x1f6   : > { %4350 = vpow2.f32 %v1227_v10  ;;  %v1219_v14 = vsub.f32 0.0, %v4951_v11 }
 0x1f7   : > { %4352 = vpow2.f32 %v1229_v12  ;;  %v1220_v15 = vsub.f32 0.0, %v4953_v13  ;;  %v1182_v16 = vpop.f32.mrb[6].mxu0  ;;  %v3739_v12 = vpack.c.bf16 %v1298_v60, %v1296_v58  ;;  %v1319_v58 = vld [vmem:[#allocation4 + $0xb8] sm:$0xff]  ;;  %v1316_v60 = vld [vmem:[#allocation4 + $0xa0] sm:$0xff] }
 0x1f8   : > { %v1231_v18 = vmul.f32 1.442695, %v1219_v14  ;;  %v4957_v39 = vadd.f32 %v1200_v50, %v1182_v16  ;;  %v1184_v19 = vpop.f32.mrb[7].mxu0 }
 0x1f9   : > { %v1233_v20 = vmul.f32 1.442695, %v1220_v15  ;;  %v4959_v21 = vadd.f32 %v1204_v55, %v1184_v19  ;;  %v1302_v19 = vld [vmem:[#allocation4 + $0x30] sm:$0xff] }
 0x1fa   : > { %4354 = vpow2.f32 %v1231_v18  ;;  %v1221_v22 = vsub.f32 0.0, %v4957_v39  ;;  %v1300_v18 = vld [vmem:[#allocation4 + $0x20] sm:$0xff] }
 0x1fb   : > { %4356 = vpow2.f32 %v1233_v20  ;;  %v1222_v23 = vsub.f32 0.0, %v4959_v21 }
 0x1fc   : > { %v4347_v59 = vpop.eup %4346  ;;  %v1235_v24 = vmul.f32 1.442695, %v1221_v22 }
 0x1fd   : > { %v4349_v26 = vpop.eup %4348  ;;  %v1239_v38 = vadd.f32 1.0, %v4347_v59  ;;  %v1237_v25 = vmul.f32 1.442695, %v1222_v23  ;;  %v1305_v59 = vld [vmem:[#allocation4 + $0x48] sm:$0xff] }
 0x1fe   : > { %v1240_v27 = vadd.f32 1.0, %v4349_v26  ;;  %4358 = vpow2.f32 %v1235_v24  ;;  %v1307_v24 = vld [vmem:[#allocation4 + $0x58] sm:$0xff] }
 0x1ff   : > { %4360 = vrcp.f32 %v1239_v38 }
 0x200   : > { %v4351_v7 = vpop.eup %4350  ;;  %4362 = vrcp.f32 %v1240_v27  ;;  %v3743_v27 = vpack.c.bf16 %v1302_v19, %v1300_v18  ;;  %v1988_v18 = vld [vmem:[#allocation6 + $0x230] sm:$0xff]  ;;  %v1991_v19 = vld [vmem:[#allocation6 + $0x248] sm:$0xff] }
 0x201   : > { %v4353_v29 = vpop.eup %4352  ;;  %v1241_v31 = vadd.f32 1.0, %v4351_v7  ;;  %4364 = vpow2.f32 %v1237_v25 }
 0x202   : > { %v1242_v32 = vadd.f32 1.0, %v4353_v29 }
 0x203   : > { %4366 = vrcp.f32 %v1241_v31  ;;  %v3745_v31 = vpack.c.bf16 %v1307_v24, %v1305_v59  ;;  %v1993_v59 = vld [vmem:[#allocation6 + $0x258] sm:$0xff] }
 0x204   : > { %v4355_v54 = vpop.eup %4354  ;;  %4368 = vrcp.f32 %v1242_v32  ;;  %v1304_v32 = vld [vmem:[#allocation4 + $0x40] sm:$0xff] }
 0x205   : > { %v4357_v33 = vpop.eup %4356  ;;  %v1243_v34 = vadd.f32 1.0, %v4355_v54  ;;  %v1306_v54 = vld [vmem:[#allocation4 + $0x50] sm:$0xff] }
 0x206   : > { %v1244_v28 = vadd.f32 1.0, %v4357_v33 }
 0x207   : > { %4370 = vrcp.f32 %v1243_v34 }
 0x208   : > { %v4359_v35 = vpop.eup %4358  ;;  %4372 = vrcp.f32 %v1244_v28  ;;  %v1311_v28 = vld [vmem:[#allocation4 + $0x78] sm:$0xff] }
 0x209   : > { %v4361_v17 = vpop.eup %4360  ;;  %v1245_v36 = vadd.f32 1.0, %v4359_v35 }
 0x20a   : > { %v4363_v62 = vpop.eup %4362  ;;  %v1255_v37 = vmul.f32 %v4361_v17, %v1207_v52 }
 0x20b   : > { %v4365_v40 = vpop.eup %4364  ;;  %v1256_v41 = vmul.f32 %v4363_v62, %v1208_v56  ;;  %4374 = vrcp.f32 %v1245_v36  ;;  %v3747_v36 = vpack.c.bf16 %v1306_v54, %v1304_v32  ;;  %v1322_v54 = vld [vmem:[#allocation4 + $0xd0] sm:$0xff] }
 0x20c   : > { %v1246_v43 = vadd.f32 1.0, %v4365_v40  ;;  %v4965_v47 = vrot.slane %v1255_v37, 6  ;;  %v1308_v40 = vld [vmem:[#allocation4 + $0x60] sm:$0xff] }
 0x20d   : > { %v4367_v46 = vpop.eup %4366  ;;  %v4963_v44 = vrot.slane %v1256_v41, 6  ;;  %v1310_v41 = vld [vmem:[#allocation4 + $0x70] sm:$0xff] }
 0x20e   : > { %v4369_v45 = vpop.eup %4368  ;;  %v1257_v30 = vmul.f32 %v4367_v46, %v4945_v63  ;;  %4376 = vrcp.f32 %v1246_v43  ;;  %v4980_v53 = vsel %vm1271_vm4, 0.0, %v4965_v47  ;;  %v1313_v43 = vld [vmem:[#allocation4 + $0x88] sm:$0xff]  ;;  %v1315_v46 = vld [vmem:[#allocation4 + $0x98] sm:$0xff] }
 0x20f   : > { %v1258_v4 = vmul.f32 %v4369_v45, %v4947_v3  ;;  %v4971_v51 = vsel %vm1271_vm4, 0.0, %v4963_v44  ;;  %v1303_v3 = vld [vmem:[#allocation4 + $0x38] sm:$0xff]  ;;  %v1427_v57 = vrot.slane %v4980_v53, 2 }
 0x210   : > { %v1274_v42 = vrot.slane %v1257_v30, 6  ;;  %v1430_v8 = vrot.slane %v4971_v51, 2  ;;  %v3741_v16 = vpack.c.bf16 %v1303_v3, %v1301_v2  ;;  %v1985_v2 = vld [vmem:[#allocation6 + $0x218] sm:$0xff]  ;;  %v1982_v3 = vld [vmem:[#allocation6 + $0x200] sm:$0xff] }
 0x211   : > { %v4371_v50 = vpop.eup %4370  ;;  %v1276_v55 = vrot.slane %v1258_v4, 6  ;;  %v3751_v4 = vpack.c.bf16 %v1310_v41, %v1308_v40  ;;  %v1994_v40 = vld [vmem:[#allocation6 + $0x260] sm:$0xff]  ;;  %v1996_v41 = vld [vmem:[#allocation6 + $0x270] sm:$0xff] }
 0x212   : > { %v4373_v52 = vpop.eup %4372  ;;  %v4975_v5 = vsel %vm1271_vm4, %v4965_v47, %v1274_v42  ;;  %v1259_v56 = vmul.f32 %v4371_v50, %v4951_v11  ;;  %v1312_v50 = vld [vmem:[#allocation4 + $0x80] sm:$0xff] }
 0x213   : > { %v1260_v61 = vmul.f32 %v4373_v52, %v4953_v13  ;;  %v4985_v63 = vsel %vm1271_vm4, %v4963_v44, %v1276_v55  ;;  %v1428_v1 = vrot.slane %v4975_v5, 2  ;;  %v1640_v52 = vld [vmem:[#allocation4 + $0x460] sm:$0xff] }
 0x214   : > { %v1278_v6 = vrot.slane %v1259_v56, 6  ;;  %v1431_v9 = vrot.slane %v4985_v63, 2  ;;  %v1317_v56 = vld [vmem:[#allocation4 + $0xa8] sm:$0xff] }
 0x215   : > { %v4375_v10 = vpop.eup %4374  ;;  %v1280_v11 = vrot.slane %v1260_v61, 6  ;;  %v1429_v22 = vsel %vm796_vm0, %v1427_v57, %v1428_v1  ;;  %v1318_v61 = vld [vmem:[#allocation4 + $0xb0] sm:$0xff]  ;;  %v3757_v57 = vpack.c.bf16 %v1319_v58, %v1317_v56  ;;  %v1998_v58 = vld [vmem:[#allocation6 + $0x280] sm:$0xff] }
 0x216   : > { %v4992_v13 = vsel %vm1271_vm4, %v1274_v42, %v1278_v6  ;;  %v4995_v14 = vmul.f32 %v4375_v10, %v4957_v39  ;;  %v1432_v15 = vsel %vm796_vm0, %v1430_v8, %v1431_v9  ;;  %v3753_v42 = vpack.c.bf16 %v1315_v46, %v1313_v43  ;;  %v1987_v10 = vld [vmem:[#allocation6 + $0x228] sm:$0xff]  ;;  %v1326_v46 = vld [vmem:[#allocation4 + $0xf0] sm:$0xff] }
 0x217   : > { %v4999_v20 = vsel %vm1271_vm4, %v1276_v55, %v1280_v11  ;;  %1513 = vmatprep.mubr.f32.mxu1 %v1432_v15  ;;  %v1433_v23 = vrot.slane %v4992_v13, 2  ;;  %v1314_v55 = vld [vmem:[#allocation4 + $0x90] sm:$0xff] }
 0x218   : > { %v4377_v26 = vpop.eup %4376  ;;  %v1282_v38 = vrot.slane %v4995_v14, 6  ;;  %1514 = vmatmul.mubr.f32.vlgmr.msra.gmra.mrb[0].mxu1 %v1429_v22  ;;  %v1435_v39 = vrot.slane %v4999_v20, 2  ;;  %v1321_v22 = vld [vmem:[#allocation4 + $0xc8] sm:$0xff]  ;;  %v2009_v14 = vld [vmem:[#allocation6 + $0x2d8] sm:$0xff] }
 0x219   : > { %v5006_v25 = vmul.f32 %v4377_v26, %v4959_v21  ;;  %3740 = vmatpush1.bf16.msra.mxu1 %v3739_v12  ;;  %v1434_v34 = vsel %vm796_vm0, %v1428_v1, %v1433_v23  ;;  %v1309_v21 = vld [vmem:[#allocation4 + $0x68] sm:$0xff]  ;;  %v3759_v26 = vpack.c.bf16 %v1318_v61, %v1316_v60  ;;  %v2000_v60 = vld [vmem:[#allocation6 + $0x290] sm:$0xff] }
 0x21a   : > { %v5011_v7 = vsel %vm1271_vm4, %v1278_v6, %v1282_v38  ;;  %v1436_v29 = vsel %vm796_vm0, %v1431_v9, %v1435_v39  ;;  %3742 = vmatprep.subr.bf16.mxu1 %v3741_v16  ;;  %v3749_v37 = vpack.c.bf16 %v1311_v28, %v1309_v21  ;;  %v1983_v1 = vld [vmem:[#allocation6 + $0x208] sm:$0xff]  ;;  %v3755_v6 = vpack.c.bf16 %v1314_v55, %v1312_v50  ;;  %v1984_v9 = vld [vmem:[#allocation6 + $0x210] sm:$0xff]  ;;  %v1986_v16 = vld [vmem:[#allocation6 + $0x220] sm:$0xff] }
 0x21b   : > { %v1284_v33 = vrot.slane %v5006_v25, 6  ;;  %1519 = vmatprep.mubr.f32.mxu1 %v1436_v29  ;;  %v1437_v17 = vrot.slane %v5011_v7, 2  ;;  %v3865_v8 = vpack.c.bf16 %v1985_v2, %v1983_v1  ;;  %v3867_v12 = vpack.c.bf16 %v1984_v9, %v1982_v3  ;;  %v1990_v29 = vld [vmem:[#allocation6 + $0x240] sm:$0xff]  ;;  %v1997_v21 = vld [vmem:[#allocation6 + $0x278] sm:$0xff]  ;;  %v1325_v28 = vld [vmem:[#allocation4 + $0xe8] sm:$0xff] }
 0x21c   : > { %1520 = vmatmul.mubr.f32.gmra.mrb[2].mxu1 %v1434_v34  ;;  %v3871_v24 = vpack.c.bf16 %v1988_v18, %v1986_v16  ;;  %v1995_v34 = vld [vmem:[#allocation6 + $0x268] sm:$0xff]  ;;  %v3879_v50 = vpack.c.bf16 %v1996_v41, %v1994_v40  ;;  %v1328_v1 = vld [vmem:[#allocation4 + $0x100] sm:$0xff]  ;;  %v1330_v2 = vld [vmem:[#allocation4 + $0x110] sm:$0xff] }
 0x21d   : > { %v5019_v35 = vsel %vm1271_vm4, %v1280_v11, %v1284_v33  ;;  %3744 = vmatpush1.bf16.msra.mxu1 %v3743_v27  ;;  %v1438_v30 = vsel %vm796_vm0, %v1433_v23, %v1437_v17  ;;  %v1989_v11 = vld [vmem:[#allocation6 + $0x238] sm:$0xff]  ;;  %3866 = vmatprep.subr.bf16.mxu0 %v3865_v8  ;;  %v3873_v27 = vpack.c.bf16 %v1993_v59, %v1991_v19  ;;  %v1333_v3 = vld [vmem:[#allocation4 + $0x128] sm:$0xff]  ;;  %v1336_v19 = vld [vmem:[#allocation4 + $0x140] sm:$0xff] }
 0x21e   : > { %v1439_v62 = vrot.slane %v5019_v35, 2  ;;  %3746 = vmatprep.subr.bf16.mxu1 %v3745_v31  ;;  %v3869_v15 = vpack.c.bf16 %v1989_v11, %v1987_v10  ;;  %v1323_v23 = vld [vmem:[#allocation4 + $0xd8] sm:$0xff]  ;;  %3868 = vmatpush1.bf16.msra.mxu0 %v3867_v12  ;;  %v1992_v31 = vld [vmem:[#allocation6 + $0x250] sm:$0xff]  ;;  %v3883_v8 = vpack.c.bf16 %v2000_v60, %v1998_v58  ;;  %v3771_v9 = vpack.c.bf16 %v1330_v2, %v1328_v1  ;;  %v1332_v11 = vld [vmem:[#allocation4 + $0x120] sm:$0xff] }
 0x21f   : > { %v3761_v32 = vpack.c.bf16 %v1323_v23, %v1321_v22  ;;  %v1337_v12 = vld [vmem:[#allocation4 + $0x148] sm:$0xff]  ;;  %v1338_v22 = vld [vmem:[#allocation4 + $0x150] sm:$0xff]  ;;  %v1343_v59 = vld [vmem:[#allocation4 + $0x178] sm:$0xff] }
 0x220   : > { %v1440_v45 = vsel %vm796_vm0, %v1435_v39, %v1439_v62  ;;  %v1320_v39 = vld [vmem:[#allocation4 + $0xc0] sm:$0xff]  ;;  %3870 = vmatprep.subr.bf16.mxu0 %v3869_v15  ;;  %v1339_v15 = vld [vmem:[#allocation4 + $0x158] sm:$0xff]  ;;  %v1341_v23 = vld [vmem:[#allocation4 + $0x168] sm:$0xff] }
 0x221   : > { %1525 = vmatprep.mubr.f32.mxu1 %v1440_v45  ;;  %3748 = vmatpush1.bf16.msra.mxu1 %v3747_v36  ;;  %v3763_v36 = vpack.c.bf16 %v1322_v54, %v1320_v39  ;;  %v1999_v45 = vld [vmem:[#allocation6 + $0x288] sm:$0xff]  ;;  %v3777_v18 = vpack.c.bf16 %v1339_v15, %v1337_v12  ;;  %v1340_v39 = vld [vmem:[#allocation4 + $0x160] sm:$0xff]  ;;  %v1355_v41 = vld [vmem:[#allocation4 + $0x1d8] sm:$0xff] }
 0x222   : > { %1526 = vmatmul.mubr.f32.gmra.mrb[4].mxu1 %v1438_v30  ;;  %3750 = vmatprep.subr.bf16.mxu1 %v3749_v37  ;;  %v3877_v37 = vpack.c.bf16 %v1997_v21, %v1995_v34  ;;  %v2001_v30 = vld [vmem:[#allocation6 + $0x298] sm:$0xff]  ;;  %v1344_v34 = vld [vmem:[#allocation4 + $0x180] sm:$0xff]  ;;  %v1346_v21 = vld [vmem:[#allocation4 + $0x190] sm:$0xff] }
 0x223   : > { %1531 = vmatprep.mubr.f32.mxu1 %v1439_v62  ;;  %3872 = vmatpush1.bf16.msra.mxu0 %v3871_v24  ;;  %v1324_v62 = vld [vmem:[#allocation4 + $0xe0] sm:$0xff]  ;;  %v3881_v56 = vpack.c.bf16 %v2001_v30, %v1999_v45  ;;  %v3779_v24 = vpack.c.bf16 %v1338_v22, %v1336_v19  ;;  %v1353_v40 = vld [vmem:[#allocation4 + $0x1c8] sm:$0xff]  ;;  %v1354_v30 = vld [vmem:[#allocation4 + $0x1d0] sm:$0xff] }
 0x224   : > { %3874 = vmatprep.subr.bf16.mxu0 %v3873_v27  ;;  %v3767_v55 = vpack.c.bf16 %v1326_v46, %v1324_v62  ;;  %v1342_v27 = vld [vmem:[#allocation4 + $0x170] sm:$0xff]  ;;  %v1348_v62 = vld [vmem:[#allocation4 + $0x1a0] sm:$0xff]  ;;  %v3793_v46 = vpack.c.bf16 %v1355_v41, %v1353_v40  ;;  %v1629_v60 = vld [vmem:[#allocation4 + $0x408] sm:$0xff] }
 0x225   : > { %3752 = vmatpush1.bf16.msra.mxu1 %v3751_v4  ;;  %v1329_v4 = vld [vmem:[#allocation4 + $0x108] sm:$0xff]  ;;  %v1352_v45 = vld [vmem:[#allocation4 + $0x1c0] sm:$0xff]  ;;  %v1358_v58 = vld [vmem:[#allocation4 + $0x1f0] sm:$0xff] }
 0x226   : > { %1532 = vmatmul.mubr.f32.gmra.mrb[6].mxu1 %v1437_v17  ;;  %3754 = vmatprep.subr.bf16.mxu1 %v3753_v42  ;;  %v3875_v17 = vpack.c.bf16 %v1992_v31, %v1990_v29  ;;  %v1331_v42 = vld [vmem:[#allocation4 + $0x118] sm:$0xff]  ;;  %v1345_v29 = vld [vmem:[#allocation4 + $0x188] sm:$0xff]  ;;  %v1634_v12 = vld [vmem:[#allocation4 + $0x430] sm:$0xff] }
 0x227   : > { %3208 = vmatprep.mubr.msk.f32.mxu1 %vm5026_vm5, %v4963_v44  ;;  %v1327_v44 = vld [vmem:[#allocation4 + $0xf8] sm:$0xff]  ;;  %v3769_v61 = vpack.c.bf16 %v1331_v42, %v1329_v4  ;;  %v1357_v4 = vld [vmem:[#allocation4 + $0x1e8] sm:$0xff]  ;;  %v1636_v22 = vld [vmem:[#allocation4 + $0x440] sm:$0xff] }
 0x228   : > { %v3765_v43 = vpack.c.bf16 %v1327_v44, %v1325_v28  ;;  %3876 = vmatpush1.bf16.msra.mxu0 %v3875_v17  ;;  %v1347_v31 = vld [vmem:[#allocation4 + $0x198] sm:$0xff]  ;;  %v1349_v28 = vld [vmem:[#allocation4 + $0x1a8] sm:$0xff]  ;;  %v3787_v17 = vpack.c.bf16 %v1346_v21, %v1344_v34  ;;  %v1644_v21 = vld [vmem:[#allocation4 + $0x480] sm:$0xff] }
 0x229   : > { %3756 = vmatpush1.bf16.msra.mxu1 %v3755_v6  ;;  %3878 = vmatprep.subr.bf16.mxu0 %v3877_v37  ;;  %v1335_v6 = vld [vmem:[#allocation4 + $0x138] sm:$0xff]  ;;  %v3785_v54 = vpack.c.bf16 %v1347_v31, %v1345_v29  ;;  %v1350_v37 = vld [vmem:[#allocation4 + $0x1b0] sm:$0xff]  ;;  %v1637_v15 = vld [vmem:[#allocation4 + $0x448] sm:$0xff]  ;;  %v1696_v31 = vrot.slane %v4985_v63, 4 }
 0x22a   : > { %3758 = vmatprep.subr.bf16.mxu1 %v3757_v57  ;;  %v3773_v10 = vpack.c.bf16 %v1335_v6, %v1333_v3  ;;  %v1334_v57 = vld [vmem:[#allocation4 + $0x130] sm:$0xff]  ;;  %v1351_v44 = vld [vmem:[#allocation4 + $0x1b8] sm:$0xff]  ;;  %v1628_v3 = vld [vmem:[#allocation4 + $0x400] sm:$0xff] }
 0x22b   : > { %v3775_v16 = vpack.c.bf16 %v1334_v57, %v1332_v11  ;;  %v1359_v42 = vld [vmem:[#allocation4 + $0x1f8] sm:$0xff]  ;;  %v1630_v6 = vld [vmem:[#allocation4 + $0x410] sm:$0xff]  ;;  %v1632_v57 = vld [vmem:[#allocation4 + $0x420] sm:$0xff] }
 0x22c   : > { %3880 = vmatpush1.bf16.msra.mxu0 %v3879_v50  ;;  %v3795_v50 = vpack.c.bf16 %v1354_v30, %v1352_v45  ;;  %v1647_v29 = vld [vmem:[#allocation4 + $0x498] sm:$0xff]  ;;  %v1648_v40 = vld [vmem:[#allocation4 + $0x4a0] sm:$0xff]  ;;  %v1650_v41 = vld [vmem:[#allocation4 + $0x4b0] sm:$0xff] }
 0x22d   : > { %3760 = vmatpush1.bf16.msra.mxu1 %v3759_v26  ;;  %3882 = vmatprep.subr.bf16.mxu0 %v3881_v56  ;;  %v3781_v26 = vpack.c.bf16 %v1343_v59, %v1341_v23  ;;  %v1356_v56 = vld [vmem:[#allocation4 + $0x1e0] sm:$0xff]  ;;  %v1638_v23 = vld [vmem:[#allocation4 + $0x450] sm:$0xff]  ;;  %v1641_v59 = vld [vmem:[#allocation4 + $0x468] sm:$0xff] }
 0x22e   : > { %3762 = vmatprep.subr.bf16.mxu1 %v3761_v32  ;;  %v3783_v32 = vpack.c.bf16 %v1342_v27, %v1340_v39  ;;  %v3799_v1 = vpack.c.bf16 %v1358_v58, %v1356_v56  ;;  %v1645_v27 = vld [vmem:[#allocation4 + $0x488] sm:$0xff]  ;;  %v1652_v30 = vld [vmem:[#allocation4 + $0x4c0] sm:$0xff] }
 0x22f   : > { %v3817_v34 = vpack.c.bf16 %v1647_v29, %v1645_v27  ;;  %v1656_v58 = vld [vmem:[#allocation4 + $0x4e0] sm:$0xff]  ;;  %v1674_v27 = vld [vmem:[#allocation4 + $0x570] sm:$0xff]  ;;  %v1677_v29 = vld [vmem:[#allocation4 + $0x588] sm:$0xff] }
 0x230   : > { %3884 = vmatpush1.bf16.msra.mxu0 %v3883_v8  ;;  %v1633_v8 = vld [vmem:[#allocation4 + $0x428] sm:$0xff] }
 0x231   : > { %3764 = vmatpush1.bf16.msra.mxu1 %v3763_v36  ;;  %v3789_v36 = vpack.c.bf16 %v1351_v44, %v1349_v28  ;;  %v1646_v28 = vld [vmem:[#allocation4 + $0x490] sm:$0xff]  ;;  %v1649_v44 = vld [vmem:[#allocation4 + $0x4a8] sm:$0xff] }
 0x232   : > { %3766 = vmatprep.subr.bf16.mxu1 %v3765_v43  ;;  %v3791_v43 = vpack.c.bf16 %v1350_v37, %v1348_v62  ;;  %v3819_v62 = vpack.c.bf16 %v1646_v28, %v1644_v21  ;;  %v1676_v21 = vld [vmem:[#allocation4 + $0x580] sm:$0xff]  ;;  %v1678_v28 = vld [vmem:[#allocation4 + $0x590] sm:$0xff] }
 0x235   : > { %3768 = vmatpush1.bf16.msra.mxu1 %v3767_v55  ;;  %v3797_v55 = vpack.c.bf16 %v1359_v42, %v1357_v4  ;;  %v1654_v4 = vld [vmem:[#allocation4 + $0x4d0] sm:$0xff]  ;;  %v1657_v42 = vld [vmem:[#allocation4 + $0x4e8] sm:$0xff] }
 0x236   : > { %3770 = vmatprep.subr.bf16.mxu1 %v3769_v61  ;;  %v1631_v61 = vld [vmem:[#allocation4 + $0x418] sm:$0xff] }
 0x237   : > { %v3801_v2 = vpack.c.bf16 %v1631_v61, %v1629_v60  ;;  %v1658_v60 = vld [vmem:[#allocation4 + $0x4f0] sm:$0xff]  ;;  %v1661_v61 = vld [vmem:[#allocation4 + $0x508] sm:$0xff] }
 0x239   : > { %3772 = vmatpush1.bf16.msra.mxu1 %v3771_v9  ;;  %v1635_v9 = vld [vmem:[#allocation4 + $0x438] sm:$0xff] }
 0x23a   : > { %3774 = vmatprep.subr.bf16.mxu1 %v3773_v10  ;;  %v3803_v10 = vpack.c.bf16 %v1630_v6, %v1628_v3  ;;  %v3805_v11 = vpack.c.bf16 %v1635_v9, %v1633_v8  ;;  %v1660_v6 = vld [vmem:[#allocation4 + $0x500] sm:$0xff]  ;;  %v1662_v8 = vld [vmem:[#allocation4 + $0x510] sm:$0xff]  ;;  %v1665_v9 = vld [vmem:[#allocation4 + $0x528] sm:$0xff] }
 0x23d   : > { %3776 = vmatpush1.bf16.msra.mxu1 %v3775_v16  ;;  %v1639_v16 = vld [vmem:[#allocation4 + $0x458] sm:$0xff] }
 0x23e   : > { %3778 = vmatprep.subr.bf16.mxu1 %v3777_v18  ;;  %v3807_v18 = vpack.c.bf16 %v1634_v12, %v1632_v57  ;;  %v3809_v19 = vpack.c.bf16 %v1639_v16, %v1637_v15  ;;  %v1664_v12 = vld [vmem:[#allocation4 + $0x520] sm:$0xff]  ;;  %v1666_v15 = vld [vmem:[#allocation4 + $0x530] sm:$0xff]  ;;  %v1669_v16 = vld [vmem:[#allocation4 + $0x548] sm:$0xff] }
 0x241   : > { %3780 = vmatpush1.bf16.msra.mxu1 %v3779_v24  ;;  %v1643_v24 = vld [vmem:[#allocation4 + $0x478] sm:$0xff] }
 0x242   : > { %3782 = vmatprep.subr.bf16.mxu1 %v3781_v26  ;;  %v3811_v26 = vpack.c.bf16 %v1638_v23, %v1636_v22  ;;  %v3813_v39 = vpack.c.bf16 %v1643_v24, %v1641_v59  ;;  %v1668_v23 = vld [vmem:[#allocation4 + $0x540] sm:$0xff]  ;;  %v1670_v59 = vld [vmem:[#allocation4 + $0x550] sm:$0xff]  ;;  %v1673_v24 = vld [vmem:[#allocation4 + $0x568] sm:$0xff] }
 0x245   : > { %3784 = vmatpush1.bf16.msra.mxu1 %v3783_v32 }
 0x246   : > { %3786 = vmatprep.subr.bf16.mxu1 %v3785_v54  ;;  %v1695_v54 = vrot.slane %v4971_v51, 4  ;;  %v1655_v51 = vld [vmem:[#allocation4 + $0x4d8] sm:$0xff] }
 0x249   : > { %3788 = vmatpush1.bf16.msra.mxu1 %v3787_v17  ;;  %v1651_v17 = vld [vmem:[#allocation4 + $0x4b8] sm:$0xff] }
 0x24a   : > { %3790 = vmatprep.subr.bf16.mxu1 %v3789_v36  ;;  %v1697_v36 = vsel %vm1084_vm3, %v1695_v54, %v1696_v31  ;;  %v3821_v37 = vpack.c.bf16 %v1651_v17, %v1649_v44  ;;  %v1681_v44 = vld [vmem:[#allocation4 + $0x5a8] sm:$0xff]  ;;  %v1683_v17 = vld [vmem:[#allocation4 + $0x5b8] sm:$0xff] }
 0x24d   : > { %3792 = vmatpush1.bf16.msra.mxu1 %v3791_v43  ;;  %v1653_v43 = vld [vmem:[#allocation4 + $0x4c8] sm:$0xff] }
 0x24e   : > { %3794 = vmatprep.subr.bf16.mxu1 %v3793_v46  ;;  %v3823_v46 = vpack.c.bf16 %v1650_v41, %v1648_v40  ;;  %v3825_v45 = vpack.c.bf16 %v1655_v51, %v1653_v43  ;;  %v1682_v40 = vld [vmem:[#allocation4 + $0x5b0] sm:$0xff]  ;;  %v1685_v41 = vld [vmem:[#allocation4 + $0x5c8] sm:$0xff]  ;;  %v1687_v43 = vld [vmem:[#allocation4 + $0x5d8] sm:$0xff] }
 0x251   : > { %3796 = vmatpush1.bf16.msra.mxu1 %v3795_v50  ;;  %v1659_v50 = vld [vmem:[#allocation4 + $0x4f8] sm:$0xff] }
 0x252   : > { %3798 = vmatprep.subr.bf16.mxu1 %v3797_v55  ;;  %v3827_v55 = vpack.c.bf16 %v1654_v4, %v1652_v30  ;;  %v3829_v56 = vpack.c.bf16 %v1659_v50, %v1657_v42  ;;  %v1686_v30 = vld [vmem:[#allocation4 + $0x5d0] sm:$0xff]  ;;  %v1689_v4 = vld [vmem:[#allocation4 + $0x5e8] sm:$0xff]  ;;  %v1691_v42 = vld [vmem:[#allocation4 + $0x5f8] sm:$0xff] }
 0x255   : > { %3800 = vmatpush1.bf16.msra.mxu1 %v3799_v1  ;;  %v1663_v1 = vld [vmem:[#allocation4 + $0x518] sm:$0xff] }
 0x256   : > { %3802 = vmatprep.subr.bf16.mxu1 %v3801_v2  ;;  %v3831_v2 = vpack.c.bf16 %v1658_v60, %v1656_v58  ;;  %v3833_v3 = vpack.c.bf16 %v1663_v1, %v1661_v61  ;;  %v1690_v58 = vld [vmem:[#allocation4 + $0x5f0] sm:$0xff]  ;;  %v1693_v61 = vrot.slane %v4975_v5, 4  ;;  %v1700_v1 = vrot.slane %v4999_v20, 4 }
 0x258   : > { %3210 = vmatmul.mubr.msk.f32.vlgmr.msra.gmra.mrb[0].mxu1 %vm5026_vm5, %v4965_v47  ;;  %v1642_v47 = vld [vmem:[#allocation4 + $0x470] sm:$0xff] }
 0x259   : > { %1608 = vmatprep.mubr.f32.mxu1 %v4985_v63  ;;  %3804 = vmatpush1.bf16.msra.mxu1 %v3803_v10  ;;  %v3815_v32 = vpack.c.bf16 %v1642_v47, %v1640_v52  ;;  %v1667_v10 = vld [vmem:[#allocation4 + $0x538] sm:$0xff]  ;;  %v1672_v47 = vld [vmem:[#allocation4 + $0x560] sm:$0xff] }
 0x25a   : > { %3806 = vmatprep.subr.bf16.mxu1 %v3805_v11  ;;  %v3835_v11 = vpack.c.bf16 %v1662_v8, %v1660_v6  ;;  %v3837_v57 = vpack.c.bf16 %v1667_v10, %v1665_v9  ;;  %v3847_v54 = vpack.c.bf16 %v1674_v27, %v1672_v47  ;;  %v1698_v6 = vrot.slane %v4992_v13, 4  ;;  %v2017_v47 = vld [vmem:[#allocation6 + $0x318] sm:$0xff] }
 0x25b   : > { %v1701_v8 = vsel %vm1084_vm3, %v1696_v31, %v1700_v1  ;;  %v1704_v9 = vrot.slane %v5019_v35, 4 }
 0x25c   : > { %1609 = vmatmul.mubr.f32.gmra.mrb[2].mxu1 %v4975_v5  ;;  %v1699_v10 = vsel %vm1084_vm3, %v1693_v61, %v1698_v6  ;;  %v1702_v5 = vrot.slane %v5011_v7, 4 }
 0x25d   : > { %1614 = vmatprep.mubr.f32.mxu1 %v4999_v20  ;;  %3808 = vmatpush1.bf16.msra.mxu1 %v3807_v18  ;;  %v1671_v18 = vld [vmem:[#allocation4 + $0x558] sm:$0xff]  ;;  %v1705_v20 = vsel %vm1084_vm3, %v1700_v1, %v1704_v9 }
 0x25e   : > { %3810 = vmatprep.subr.bf16.mxu1 %v3809_v19  ;;  %v3839_v19 = vpack.c.bf16 %v1666_v15, %v1664_v12  ;;  %v3841_v22 = vpack.c.bf16 %v1671_v18, %v1669_v16  ;;  %v1703_v63 = vsel %vm1084_vm3, %v1698_v6, %v1702_v5  ;;  %v2007_v15 = vld [vmem:[#allocation6 + $0x2c8] sm:$0xff]  ;;  %v2006_v16 = vld [vmem:[#allocation6 + $0x2c0] sm:$0xff]  ;;  %v2008_v18 = vld [vmem:[#allocation6 + $0x2d0] sm:$0xff] }
 0x260   : > { %1615 = vmatmul.mubr.f32.gmra.mrb[4].mxu1 %v4992_v13  ;;  %v1706_v13 = vrot.slane %v1282_v38, 4  ;;  %v3889_v38 = vpack.c.bf16 %v2009_v14, %v2007_v15  ;;  %v1920_v15 = vld [vmem:[#allocation6 + $0x18] sm:$0xff] }
 0x261   : > { %1620 = vmatprep.mubr.f32.mxu1 %v5019_v35  ;;  %3812 = vmatpush1.bf16.msra.mxu1 %v3811_v26  ;;  %v1675_v26 = vld [vmem:[#allocation4 + $0x578] sm:$0xff] }
 0x262   : > { %3814 = vmatprep.subr.bf16.mxu1 %v3813_v39  ;;  %v3843_v39 = vpack.c.bf16 %v1670_v59, %v1668_v23  ;;  %v3845_v52 = vpack.c.bf16 %v1675_v26, %v1673_v24  ;;  %v1707_v31 = vsel %vm1084_vm3, %v1702_v5, %v1706_v13  ;;  %v2013_v23 = vld [vmem:[#allocation6 + $0x2f8] sm:$0xff]  ;;  %v2010_v24 = vld [vmem:[#allocation6 + $0x2e0] sm:$0xff]  ;;  %v2012_v26 = vld [vmem:[#allocation6 + $0x2f0] sm:$0xff] }
 0x263   : > { %v2039_v5 = vld [vmem:[#allocation6 + $0x3c8] sm:$0xff]  ;;  %v2038_v13 = vld [vmem:[#allocation6 + $0x3c0] sm:$0xff] }
 0x264   : > { %1621 = vmatmul.mubr.f32.gmra.mrb[6].mxu1 %v5011_v7  ;;  %v2003_v7 = vld [vmem:[#allocation6 + $0x2a8] sm:$0xff] }
 0x265   : > { %3816 = vmatpush1.bf16.msra.mxu1 %v3815_v32  ;;  %1782 = vmatprep.mubr.f32.mxu1 %v1697_v36  ;;  %v1679_v32 = vld [vmem:[#allocation4 + $0x598] sm:$0xff]  ;;  %v3851_v36 = vpack.c.bf16 %v1678_v28, %v1676_v21 }
 0x266   : > { %3818 = vmatprep.subr.bf16.mxu1 %v3817_v34  ;;  %v3849_v34 = vpack.c.bf16 %v1679_v32, %v1677_v29  ;;  %v2014_v29 = vld [vmem:[#allocation6 + $0x300] sm:$0xff]  ;;  %v2016_v32 = vld [vmem:[#allocation6 + $0x310] sm:$0xff]  ;;  %v2021_v21 = vld [vmem:[#allocation6 + $0x338] sm:$0xff] }
 0x269   : > { %3820 = vmatpush1.bf16.msra.mxu1 %v3819_v62  ;;  %v3853_v62 = vpack.c.bf16 %v1683_v17, %v1681_v44  ;;  %v2018_v44 = vld [vmem:[#allocation6 + $0x320] sm:$0xff]  ;;  %v2020_v17 = vld [vmem:[#allocation6 + $0x330] sm:$0xff] }
 0x26a   : > { %3822 = vmatprep.subr.bf16.mxu1 %v3821_v37  ;;  %v1680_v37 = vld [vmem:[#allocation4 + $0x5a0] sm:$0xff] }
 0x26b   : > { %v3855_v51 = vpack.c.bf16 %v1682_v40, %v1680_v37  ;;  %v2025_v37 = vld [vmem:[#allocation6 + $0x358] sm:$0xff] }
 0x26d   : > { %3824 = vmatpush1.bf16.msra.mxu1 %v3823_v46  ;;  %v3857_v46 = vpack.c.bf16 %v1687_v43, %v1685_v41  ;;  %v2022_v41 = vld [vmem:[#allocation6 + $0x340] sm:$0xff]  ;;  %v2024_v43 = vld [vmem:[#allocation6 + $0x350] sm:$0xff] }
 0x26e   : > { %3826 = vmatprep.subr.bf16.mxu1 %v3825_v45  ;;  %v1684_v45 = vld [vmem:[#allocation4 + $0x5c0] sm:$0xff] }
 0x26f   : > { %v3859_v50 = vpack.c.bf16 %v1686_v30, %v1684_v45  ;;  %v2029_v45 = vld [vmem:[#allocation6 + $0x378] sm:$0xff] }
 0x271   : > { %3828 = vmatpush1.bf16.msra.mxu1 %v3827_v55  ;;  %v3861_v55 = vpack.c.bf16 %v1691_v42, %v1689_v4  ;;  %v2026_v4 = vld [vmem:[#allocation6 + $0x360] sm:$0xff]  ;;  %v2028_v42 = vld [vmem:[#allocation6 + $0x370] sm:$0xff] }
 0x272   : > { %3830 = vmatprep.subr.bf16.mxu1 %v3829_v56  ;;  %v1688_v56 = vld [vmem:[#allocation4 + $0x5e0] sm:$0xff] }
 0x273   : > { %v3863_v60 = vpack.c.bf16 %v1690_v58, %v1688_v56  ;;  %v2033_v56 = vld [vmem:[#allocation6 + $0x398] sm:$0xff] }
 0x275   : > { %3832 = vmatpush1.bf16.msra.mxu1 %v3831_v2  ;;  %v1692_v2 = vrot.slane %v4980_v53, 4  ;;  %v1708_v53 = vrot.slane %v1284_v33, 4  ;;  %v2002_v33 = vld [vmem:[#allocation6 + $0x2a0] sm:$0xff] }
 0x276   : > { %3834 = vmatprep.subr.bf16.mxu1 %v3833_v3 }
 0x277   : > { %v1694_v3 = vsel %vm1084_vm3, %v1692_v2, %v1693_v61  ;;  %v1709_v35 = vsel %vm1084_vm3, %v1704_v9, %v1708_v53  ;;  %v2032_v61 = vld [vmem:[#allocation6 + $0x390] sm:$0xff]  ;;  %v2035_v2 = vld [vmem:[#allocation6 + $0x3a8] sm:$0xff]  ;;  %v2041_v53 = vld [vmem:[#allocation6 + $0x3d8] sm:$0xff] }
 0x278   : > { %v2036_v9 = vld [vmem:[#allocation6 + $0x3b0] sm:$0xff] }
 0x279   : > { %3836 = vmatpush1.bf16.msra.mxu1 %v3835_v11  ;;  %v2005_v11 = vld [vmem:[#allocation6 + $0x2b8] sm:$0xff] }
 0x27a   : > { %3838 = vmatprep.subr.bf16.mxu1 %v3837_v57  ;;  %v3885_v25 = vpack.c.bf16 %v2005_v11, %v2003_v7  ;;  %v2004_v57 = vld [vmem:[#allocation6 + $0x2b0] sm:$0xff]  ;;  %v2045_v7 = vld [vmem:[#allocation6 + $0x3f8] sm:$0xff] }
 0x27b   : > { %v3887_v12 = vpack.c.bf16 %v2004_v57, %v2002_v33  ;;  %v2044_v33 = vld [vmem:[#allocation6 + $0x3f0] sm:$0xff] }
 0x27c   : > { %3886 = vmatprep.subr.bf16.mxu0 %v3885_v25  ;;  %v2042_v25 = vld [vmem:[#allocation6 + $0x3e0] sm:$0xff] }
 0x27d   : > { %3840 = vmatpush1.bf16.msra.mxu1 %v3839_v19  ;;  %3888 = vmatpush1.bf16.msra.mxu0 %v3887_v12  ;;  %v3891_v19 = vpack.c.bf16 %v2008_v18, %v2006_v16  ;;  %v3927_v57 = vpack.c.bf16 %v2044_v33, %v2042_v25  ;;  %v1918_v12 = vld [vmem:[#allocation6 + $0x8] sm:$0xff] }
 0x27e   : > { %3842 = vmatprep.subr.bf16.mxu1 %v3841_v22  ;;  %3890 = vmatprep.subr.bf16.mxu0 %v3889_v38  ;;  %v2011_v22 = vld [vmem:[#allocation6 + $0x2e8] sm:$0xff]  ;;  %v3929_v14 = vpack.c.bf16 %v1920_v15, %v1918_v12  ;;  %v1815_v38 = vld [vmem:[%s5415_s4] sm:$0x3] }
 0x27f   : > { %v3893_v59 = vpack.c.bf16 %v2013_v23, %v2011_v22  ;;  %v1820_v16 = vrot.slane %v1815_v38, %v4936_v48  ;;  %v1824_v18 = vrot.slane %v1815_v38, %v4941_v49 }
 0x281   : > { %3844 = vmatpush1.bf16.msra.mxu1 %v3843_v39  ;;  %3892 = vmatpush1.bf16.msra.mxu0 %v3891_v19  ;;  %v3895_v39 = vpack.c.bf16 %v2012_v26, %v2010_v24 }
 0x282   : > { %3846 = vmatprep.subr.bf16.mxu1 %v3845_v52  ;;  %3894 = vmatprep.subr.bf16.mxu0 %v3893_v59  ;;  %v2015_v52 = vld [vmem:[#allocation6 + $0x308] sm:$0xff] }
 0x283   : > { %v3897_v27 = vpack.c.bf16 %v2017_v47, %v2015_v52 }
 0x285   : > { %3848 = vmatpush1.bf16.msra.mxu1 %v3847_v54  ;;  %3896 = vmatpush1.bf16.msra.mxu0 %v3895_v39  ;;  %v3899_v54 = vpack.c.bf16 %v2016_v32, %v2014_v29 }
 0x286   : > { %3850 = vmatprep.subr.bf16.mxu1 %v3849_v34  ;;  %3898 = vmatprep.subr.bf16.mxu0 %v3897_v27  ;;  %v2019_v34 = vld [vmem:[#allocation6 + $0x328] sm:$0xff] }
 0x287   : > { %v3901_v28 = vpack.c.bf16 %v2021_v21, %v2019_v34 }
 0x289   : > { %3852 = vmatpush1.bf16.msra.mxu1 %v3851_v36  ;;  %3900 = vmatpush1.bf16.msra.mxu0 %v3899_v54  ;;  %v3903_v36 = vpack.c.bf16 %v2020_v17, %v2018_v44 }
 0x28a   : > { %3854 = vmatprep.subr.bf16.mxu1 %v3853_v62  ;;  %3902 = vmatprep.subr.bf16.mxu0 %v3901_v28  ;;  %v2023_v62 = vld [vmem:[#allocation6 + $0x348] sm:$0xff] }
 0x28b   : > { %v3905_v40 = vpack.c.bf16 %v2025_v37, %v2023_v62 }
 0x28d   : > { %3856 = vmatpush1.bf16.msra.mxu1 %v3855_v51  ;;  %3904 = vmatpush1.bf16.msra.mxu0 %v3903_v36  ;;  %v3907_v51 = vpack.c.bf16 %v2024_v43, %v2022_v41 }
 0x28e   : > { %3858 = vmatprep.subr.bf16.mxu1 %v3857_v46  ;;  %3906 = vmatprep.subr.bf16.mxu0 %v3905_v40  ;;  %v2027_v46 = vld [vmem:[#allocation6 + $0x368] sm:$0xff] }
 0x28f   : > { %v3909_v30 = vpack.c.bf16 %v2029_v45, %v2027_v46 }
 0x291   : > { %3860 = vmatpush1.bf16.msra.mxu1 %v3859_v50  ;;  %3908 = vmatpush1.bf16.msra.mxu0 %v3907_v51  ;;  %v3911_v50 = vpack.c.bf16 %v2028_v42, %v2026_v4 }
 0x292   : > { %3862 = vmatprep.subr.bf16.mxu1 %v3861_v55  ;;  %3910 = vmatprep.subr.bf16.mxu0 %v3909_v30  ;;  %v2031_v55 = vld [vmem:[#allocation6 + $0x388] sm:$0xff] }
 0x293   : > { %v3913_v58 = vpack.c.bf16 %v2033_v56, %v2031_v55 }
 0x295   : > { %3864 = vmatpush1.bf16.msra.mxu1 %v3863_v60  ;;  %3912 = vmatpush1.bf16.msra.mxu0 %v3911_v50  ;;  %v2030_v60 = vld [vmem:[#allocation6 + $0x380] sm:$0xff] }
 0x296   : > { %v3915_v1 = vpack.c.bf16 %v2032_v61, %v2030_v60  ;;  %3914 = vmatprep.subr.bf16.mxu0 %v3913_v58 }
 0x298   : > { %1783 = vmatmul.mubr.f32.vlgmr.msra.gmra.mrb[0].mxu1 %v1694_v3  ;;  %v2037_v3 = vld [vmem:[#allocation6 + $0x3b8] sm:$0xff] }
 0x299   : > { %1788 = vmatprep.mubr.f32.mxu1 %v1701_v8  ;;  %3916 = vmatpush1.bf16.msra.mxu0 %v3915_v1  ;;  %v3917_v6 = vpack.c.bf16 %v2037_v3, %v2035_v2  ;;  %v2034_v8 = vld [vmem:[#allocation6 + $0x3a0] sm:$0xff] }
 0x29b   : > { %3918 = vmatprep.subr.bf16.mxu0 %v3917_v6 }
 0x29c   : > { %1789 = vmatmul.mubr.f32.gmra.mrb[2].mxu1 %v1699_v10  ;;  %v3919_v10 = vpack.c.bf16 %v2036_v9, %v2034_v8 }
 0x29d   : > { %1794 = vmatprep.mubr.f32.mxu1 %v1705_v20  ;;  %v3921_v20 = vpack.c.bf16 %v2041_v53, %v2039_v5 }
 0x29e   : > { %3920 = vmatpush1.bf16.msra.mxu0 %v3919_v10 }
 0x29f   : > { %3922 = vmatprep.subr.bf16.mxu0 %v3921_v20 }
 0x2a0   : > { %1795 = vmatmul.mubr.f32.gmra.mrb[4].mxu1 %v1703_v63  ;;  %v2040_v63 = vld [vmem:[#allocation6 + $0x3d0] sm:$0xff] }
 0x2a1   : > { %1800 = vmatprep.mubr.f32.mxu1 %v1709_v35  ;;  %v3923_v35 = vpack.c.bf16 %v2040_v63, %v2038_v13 }
 0x2a3   : > { %3924 = vmatpush1.bf16.msra.mxu0 %v3923_v35 }
 0x2a4   : > { %1801 = vmatmul.mubr.f32.gmra.mrb[6].mxu1 %v1707_v31  ;;  %v2043_v31 = vld [vmem:[#allocation6 + $0x3e8] sm:$0xff] }
 0x2a5   : > { %v3925_v11 = vpack.c.bf16 %v2045_v7, %v2043_v31 }
 0x2a7   : > { %3926 = vmatprep.subr.bf16.mxu0 %v3925_v11 }
 0x2a8   : > { %3928 = vmatpush1.bf16.msra.mxu0 %v3927_v57 }
 0x2a9   : > { %3930 = vmatprep.subr.bf16.mxu0 %v3929_v14 }
 0x36b   : > { %v1784_v19 = vpop.f32.mrb[0].mxu1 }
 0x36c   : > { %v1827_v22 = vadd.f32 %v1820_v16, %v1784_v19  ;;  %v1786_v23 = vpop.f32.mrb[1].mxu1 }
 0x36d   : > { %v1828_v59 = vadd.f32 %v1824_v18, %v1786_v23 }
 0x36e   : > { %v1835_v24 = vsub.f32 0.0, %v1827_v22 }
 0x36f   : > { %v1836_v26 = vsub.f32 0.0, %v1828_v59  ;;  %v1790_v39 = vpop.f32.mrb[2].mxu1 }
 0x370   : > { %v1843_v52 = vmul.f32 1.442695, %v1835_v24  ;;  %v5071_v47 = vadd.f32 %v1820_v16, %v1790_v39  ;;  %v1792_v27 = vpop.f32.mrb[3].mxu1  ;;  %v1919_v39 = vld [vmem:[#allocation6 + $0x10] sm:$0xff] }
 0x371   : > { %v1845_v29 = vmul.f32 1.442695, %v1836_v26  ;;  %v1830_v32 = vadd.f32 %v1824_v18, %v1792_v27  ;;  %v1917_v26 = vld [vmem:[#allocation6] sm:$0xff] }
 0x372   : > { %4378 = vpow2.f32 %v1843_v52  ;;  %v1837_v54 = vsub.f32 0.0, %v5071_v47 }
 0x373   : > { %4380 = vpow2.f32 %v1845_v29  ;;  %v1838_v34 = vsub.f32 0.0, %v1830_v32  ;;  %v1796_v21 = vpop.f32.mrb[4].mxu1  ;;  %v1922_v29 = vld [vmem:[#allocation6 + $0x28] sm:$0xff] }
 0x374   : > { %v1847_v28 = vmul.f32 1.442695, %v1837_v54  ;;  %v5074_v44 = vadd.f32 %v1820_v16, %v1796_v21  ;;  %v1798_v17 = vpop.f32.mrb[5].mxu1 }
 0x375   : > { %v1849_v36 = vmul.f32 1.442695, %v1838_v34  ;;  %v5076_v62 = vadd.f32 %v1824_v18, %v1798_v17 }
 0x376   : > { %4382 = vpow2.f32 %v1847_v28  ;;  %v1839_v37 = vsub.f32 0.0, %v5074_v44 }
 0x377   : > { %4384 = vpow2.f32 %v1849_v36  ;;  %v1840_v40 = vsub.f32 0.0, %v5076_v62  ;;  %v1802_v41 = vpop.f32.mrb[6].mxu1 }
 0x378   : > { %v1851_v43 = vmul.f32 1.442695, %v1839_v37  ;;  %v5080_v51 = vadd.f32 %v1820_v16, %v1802_v41  ;;  %v1804_v46 = vpop.f32.mrb[7].mxu1 }
 0x379   : > { %v1853_v45 = vmul.f32 1.442695, %v1840_v40  ;;  %v5082_v30 = vadd.f32 %v1824_v18, %v1804_v46  ;;  %v1923_v46 = vld [vmem:[#allocation6 + $0x30] sm:$0xff] }
 0x37a   : > { %4386 = vpow2.f32 %v1851_v43  ;;  %v1841_v4 = vsub.f32 0.0, %v5080_v51 }
 0x37b   : > { %4388 = vpow2.f32 %v1853_v45  ;;  %v1842_v42 = vsub.f32 0.0, %v5082_v30 }
 0x37c   : > { %v4379_v50 = vpop.eup %4378  ;;  %v1855_v55 = vmul.f32 1.442695, %v1841_v4 }
 0x37d   : > { %v4381_v56 = vpop.eup %4380  ;;  %v1859_v58 = vadd.f32 1.0, %v4379_v50  ;;  %v1857_v60 = vmul.f32 1.442695, %v1842_v42  ;;  %v1926_v50 = vld [vmem:[#allocation6 + $0x48] sm:$0xff] }
 0x37e   : > { %v1860_v61 = vadd.f32 1.0, %v4381_v56  ;;  %4390 = vpow2.f32 %v1855_v55  ;;  %v1928_v55 = vld [vmem:[#allocation6 + $0x58] sm:$0xff] }
 0x37f   : > { %4392 = vrcp.f32 %v1859_v58 }
 0x380   : > { %v4383_v1 = vpop.eup %4382  ;;  %4394 = vrcp.f32 %v1860_v61 }
 0x381   : > { %v4385_v2 = vpop.eup %4384  ;;  %v1861_v3 = vadd.f32 1.0, %v4383_v1  ;;  %4396 = vpow2.f32 %v1857_v60 }
 0x382   : > { %v1862_v6 = vadd.f32 1.0, %v4385_v2 }
 0x383   : > { %4398 = vrcp.f32 %v1861_v3  ;;  %v3937_v3 = vpack.c.bf16 %v1928_v55, %v1926_v50  ;;  %v1951_v50 = vld [vmem:[#allocation6 + $0x110] sm:$0xff]  ;;  %v1954_v55 = vld [vmem:[#allocation6 + $0x128] sm:$0xff] }
 0x384   : > { %v4387_v8 = vpop.eup %4386  ;;  %4400 = vrcp.f32 %v1862_v6  ;;  %v1925_v6 = vld [vmem:[#allocation6 + $0x40] sm:$0xff] }
 0x385   : > { %v4389_v9 = vpop.eup %4388  ;;  %v1863_v10 = vadd.f32 1.0, %v4387_v8  ;;  %v1927_v8 = vld [vmem:[#allocation6 + $0x50] sm:$0xff] }
 0x386   : > { %v1864_v5 = vadd.f32 1.0, %v4389_v9 }
 0x387   : > { %4402 = vrcp.f32 %v1863_v10 }
 0x388   : > { %v4391_v53 = vpop.eup %4390  ;;  %4404 = vrcp.f32 %v1864_v5  ;;  %v1932_v5 = vld [vmem:[#allocation6 + $0x78] sm:$0xff] }
 0x389   : > { %v4393_v20 = vpop.eup %4392  ;;  %v1865_v13 = vadd.f32 1.0, %v4391_v53 }
 0x38a   : > { %v4395_v63 = vpop.eup %4394  ;;  %v1875_v35 = vmul.f32 %v4393_v20, %v1827_v22 }
 0x38b   : > { %v4397_v31 = vpop.eup %4396  ;;  %v1876_v7 = vmul.f32 %v4395_v63, %v1828_v59  ;;  %4406 = vrcp.f32 %v1865_v13  ;;  %v3939_v13 = vpack.c.bf16 %v1927_v8, %v1925_v6  ;;  %v1958_v6 = vld [vmem:[#allocation6 + $0x148] sm:$0xff]  ;;  %v1960_v8 = vld [vmem:[#allocation6 + $0x158] sm:$0xff] }
 0x38c   : > { %v1866_v11 = vadd.f32 1.0, %v4397_v31  ;;  %v5088_v12 = vrot.slane %v1875_v35, 4  ;;  %v1929_v31 = vld [vmem:[#allocation6 + $0x60] sm:$0xff] }
 0x38d   : > { %v4399_v25 = vpop.eup %4398  ;;  %v5086_v33 = vrot.slane %v1876_v7, 4  ;;  %v1931_v7 = vld [vmem:[#allocation6 + $0x70] sm:$0xff] }
 0x38e   : > { %v4401_v57 = vpop.eup %4400  ;;  %v1877_v15 = vmul.f32 %v4399_v25, %v5071_v47  ;;  %4408 = vrcp.f32 %v1866_v11  ;;  %v1915_v23 = vsel %vm1084_vm3, 0.0, %v5088_v12  ;;  %v1934_v11 = vld [vmem:[#allocation6 + $0x88] sm:$0xff]  ;;  %v1936_v25 = vld [vmem:[#allocation6 + $0x98] sm:$0xff] }
 0x38f   : > { %v1878_v14 = vmul.f32 %v4401_v57, %v1830_v32  ;;  %v1916_v19 = vsel %vm1084_vm3, 0.0, %v5086_v33  ;;  %v1924_v32 = vld [vmem:[#allocation6 + $0x38] sm:$0xff]  ;;  %v2048_v17 = vrot.slane %v1915_v23, 4  ;;  %v2261_v23 = vld [vmem:[#allocation6 + $0x460] sm:$0xff] }
 0x390   : > { %v1893_v38 = vrot.slane %v1877_v15, 4  ;;  %v2051_v34 = vrot.slane %v1916_v19, 4  ;;  %v3933_v43 = vpack.c.bf16 %v1924_v32, %v1922_v29  ;;  %v1938_v19 = vld [vmem:[#allocation6 + $0xa8] sm:$0xff]  ;;  %v1944_v29 = vld [vmem:[#allocation6 + $0xd8] sm:$0xff] }
 0x391   : > { %v4403_v16 = vpop.eup %4402  ;;  %v1895_v18 = vrot.slane %v1878_v14, 4  ;;  %v3943_v14 = vpack.c.bf16 %v1931_v7, %v1929_v31  ;;  %v1961_v7 = vld [vmem:[#allocation6 + $0x160] sm:$0xff] }
 0x392   : > { %v4405_v22 = vpop.eup %4404  ;;  %v5097_v59 = vsel %vm1084_vm3, %v5088_v12, %v1893_v38  ;;  %v1879_v24 = vmul.f32 %v4403_v16, %v5074_v44  ;;  %v3931_v44 = vpack.c.bf16 %v1919_v39, %v1917_v26  ;;  %v1933_v16 = vld [vmem:[#allocation6 + $0x80] sm:$0xff] }
 0x393   : > { %v2049_v52 = vrot.slane %v5097_v59, 4  ;;  %v5103_v47 = vsel %vm1084_vm3, %v5086_v33, %v1895_v18  ;;  %v1880_v27 = vmul.f32 %v4405_v22, %v5076_v62  ;;  %v1921_v62 = vld [vmem:[#allocation6 + $0x20] sm:$0xff]  ;;  %v1940_v22 = vld [vmem:[#allocation6 + $0xb8] sm:$0xff] }
 0x394   : > { %v1897_v54 = vrot.slane %v1879_v24, 4  ;;  %v2052_v21 = vrot.slane %v5103_v47, 4  ;;  %v3935_v61 = vpack.c.bf16 %v1923_v46, %v1921_v62  ;;  %v3949_v26 = vpack.c.bf16 %v1940_v22, %v1938_v19  ;;  %v1937_v39 = vld [vmem:[#allocation6 + $0xa0] sm:$0xff]  ;;  %v1950_v62 = vld [vmem:[#allocation6 + $0x108] sm:$0xff]  ;;  %v1952_v46 = vld [vmem:[#allocation6 + $0x118] sm:$0xff] }
 0x395   : > { %v4407_v28 = vpop.eup %4406  ;;  %v1899_v36 = vrot.slane %v1880_v27, 4  ;;  %v2050_v4 = vsel %vm1084_vm3, %v2048_v17, %v2049_v52  ;;  %v1942_v27 = vld [vmem:[#allocation6 + $0xc8] sm:$0xff]  ;;  %v1948_v17 = vld [vmem:[#allocation6 + $0xf8] sm:$0xff] }
 0x396   : > { %v5108_v37 = vsel %vm1084_vm3, %v1893_v38, %v1897_v54  ;;  %v5111_v40 = vmul.f32 %v4407_v28, %v5080_v51  ;;  %v2053_v41 = vsel %vm1084_vm3, %v2051_v34, %v2052_v21  ;;  %v3945_v38 = vpack.c.bf16 %v1936_v25, %v1934_v11  ;;  %v1941_v34 = vld [vmem:[#allocation6 + $0xc0] sm:$0xff]  ;;  %v1946_v28 = vld [vmem:[#allocation6 + $0xe8] sm:$0xff]  ;;  %v1963_v11 = vld [vmem:[#allocation6 + $0x170] sm:$0xff] }
 0x397   : > { %v5115_v45 = vsel %vm1084_vm3, %v1895_v18, %v1899_v36  ;;  %2134 = vmatprep.mubr.f32.mxu0 %v2053_v41  ;;  %v2054_v42 = vrot.slane %v5108_v37, 4  ;;  %v1935_v18 = vld [vmem:[#allocation6 + $0x90] sm:$0xff]  ;;  %v1945_v41 = vld [vmem:[#allocation6 + $0xe0] sm:$0xff]  ;;  %v1966_v25 = vld [vmem:[#allocation6 + $0x188] sm:$0xff] }
 0x398   : > { %v4409_v56 = vpop.eup %4408  ;;  %v1901_v58 = vrot.slane %v5111_v40, 4  ;;  %2135 = vmatmul.mubr.f32.vlgmr.msra.gmra.mrb[8].mxu0 %v2050_v4  ;;  %v2056_v51 = vrot.slane %v5115_v45, 4  ;;  %v3947_v24 = vpack.c.bf16 %v1935_v18, %v1933_v16  ;;  %v3961_v4 = vpack.c.bf16 %v1952_v46, %v1950_v62  ;;  %v1967_v16 = vld [vmem:[#allocation6 + $0x190] sm:$0xff]  ;;  %v1970_v18 = vld [vmem:[#allocation6 + $0x1a8] sm:$0xff]  ;;  %v1972_v19 = vld [vmem:[#allocation6 + $0x1b8] sm:$0xff] }
 0x399   : > { %v5122_v60 = vmul.f32 %v4409_v56, %v5082_v30  ;;  %3932 = vmatpush1.bf16.msra.mxu0 %v3931_v44  ;;  %v2055_v10 = vsel %vm1084_vm3, %v2049_v52, %v2054_v42  ;;  %v1930_v30 = vld [vmem:[#allocation6 + $0x68] sm:$0xff]  ;;  %v1939_v52 = vld [vmem:[#allocation6 + $0xb0] sm:$0xff]  ;;  %v3957_v44 = vpack.c.bf16 %v1948_v17, %v1946_v28  ;;  %v1956_v56 = vld [vmem:[#allocation6 + $0x138] sm:$0xff] }
 0x39a   : > { %v5127_v1 = vsel %vm1084_vm3, %v1897_v54, %v1901_v58  ;;  %v2057_v2 = vsel %vm1084_vm3, %v2052_v21, %v2056_v51  ;;  %3934 = vmatprep.subr.bf16.mxu0 %v3933_v43  ;;  %v3941_v35 = vpack.c.bf16 %v1932_v5, %v1930_v30  ;;  %v3951_v32 = vpack.c.bf16 %v1939_v52, %v1937_v39  ;;  %v1943_v21 = vld [vmem:[#allocation6 + $0xd0] sm:$0xff]  ;;  %v1957_v5 = vld [vmem:[#allocation6 + $0x140] sm:$0xff]  ;;  %v1974_v52 = vld [vmem:[#allocation6 + $0x1c8] sm:$0xff] }
 0x39b   : > { %v1903_v9 = vrot.slane %v5122_v60, 4  ;;  %2140 = vmatprep.mubr.f32.mxu0 %v2057_v2  ;;  %v2058_v20 = vrot.slane %v5127_v1, 4  ;;  %v3953_v54 = vpack.c.bf16 %v1944_v29, %v1942_v27  ;;  %v1947_v43 = vld [vmem:[#allocation6 + $0xf0] sm:$0xff]  ;;  %v1953_v2 = vld [vmem:[#allocation6 + $0x120] sm:$0xff]  ;;  %v3969_v30 = vpack.c.bf16 %v1960_v8, %v1958_v6  ;;  %v1976_v27 = vld [vmem:[#allocation6 + $0x1d8] sm:$0xff] }
 0x39c   : > { %2141 = vmatmul.mubr.f32.gmra.mrb[10].mxu0 %v2055_v10  ;;  %v1971_v39 = vld [vmem:[#allocation6 + $0x1b0] sm:$0xff]  ;;  %v1980_v28 = vld [vmem:[#allocation6 + $0x1f8] sm:$0xff]  ;;  %v2531_v60 = vld [vmem:[#allocation7 + $0x1a0] sm:$0xff] }
 0x39d   : > { %v5135_v53 = vsel %vm1084_vm3, %v1899_v36, %v1903_v9  ;;  %3936 = vmatpush1.bf16.msra.mxu0 %v3935_v61  ;;  %v2059_v15 = vsel %vm1084_vm3, %v2054_v42, %v2058_v20  ;;  %v3955_v36 = vpack.c.bf16 %v1943_v21, %v1941_v34  ;;  %v1949_v42 = vld [vmem:[#allocation6 + $0x100] sm:$0xff]  ;;  %v3965_v61 = vpack.c.bf16 %v1956_v56, %v1954_v55  ;;  %v1975_v34 = vld [vmem:[#allocation6 + $0x1d0] sm:$0xff]  ;;  %v1978_v21 = vld [vmem:[#allocation6 + $0x1e8] sm:$0xff] }
 0x39e   : > { %v2060_v63 = vrot.slane %v5135_v53, 4  ;;  %3938 = vmatprep.subr.bf16.mxu0 %v3937_v3  ;;  %v1955_v3 = vld [vmem:[#allocation6 + $0x130] sm:$0xff]  ;;  %v2252_v62 = vld [vmem:[#allocation6 + $0x418] sm:$0xff] }
 0x39f   : > { %v3967_v10 = vpack.c.bf16 %v1955_v3, %v1953_v2  ;;  %v2256_v55 = vld [vmem:[#allocation6 + $0x438] sm:$0xff]  ;;  %v2255_v2 = vld [vmem:[#allocation6 + $0x430] sm:$0xff]  ;;  %v2258_v3 = vld [vmem:[#allocation6 + $0x448] sm:$0xff] }
 0x3a0   : > { %v2061_v57 = vsel %vm1084_vm3, %v2056_v51, %v2060_v63  ;;  %v3963_v51 = vpack.c.bf16 %v1951_v50, %v1949_v42  ;;  %v2251_v42 = vld [vmem:[#allocation6 + $0x410] sm:$0xff]  ;;  %v2254_v50 = vld [vmem:[#allocation6 + $0x428] sm:$0xff]  ;;  %v2260_v6 = vld [vmem:[#allocation6 + $0x458] sm:$0xff] }
 0x3a1   : > { %2146 = vmatprep.mubr.f32.mxu0 %v2061_v57  ;;  %3940 = vmatpush1.bf16.msra.mxu0 %v3939_v13  ;;  %v1962_v13 = vld [vmem:[#allocation6 + $0x168] sm:$0xff]  ;;  %v1968_v57 = vld [vmem:[#allocation6 + $0x198] sm:$0xff] }
 0x3a2   : > { %2147 = vmatmul.mubr.f32.gmra.mrb[12].mxu0 %v2059_v15  ;;  %3942 = vmatprep.subr.bf16.mxu0 %v3941_v35  ;;  %v3975_v15 = vpack.c.bf16 %v1963_v11, %v1961_v7  ;;  %v2268_v7 = vld [vmem:[#allocation6 + $0x498] sm:$0xff] }
 0x3a3   : > { %2152 = vmatprep.mubr.f32.mxu0 %v2060_v63  ;;  %v1964_v63 = vld [vmem:[#allocation6 + $0x178] sm:$0xff] }
 0x3a4   : > { %v3973_v31 = vpack.c.bf16 %v1964_v63, %v1962_v13  ;;  %v2264_v13 = vld [vmem:[#allocation6 + $0x478] sm:$0xff] }
 0x3a5   : > { %3944 = vmatpush1.bf16.msra.mxu0 %v3943_v14  ;;  %v3977_v14 = vpack.c.bf16 %v1968_v57, %v1966_v25  ;;  %v2265_v57 = vld [vmem:[#allocation6 + $0x480] sm:$0xff] }
 0x3a6   : > { %2153 = vmatmul.mubr.f32.gmra.mrb[14].mxu0 %v2058_v20  ;;  %3946 = vmatprep.subr.bf16.mxu0 %v3945_v38  ;;  %v1959_v20 = vld [vmem:[#allocation6 + $0x150] sm:$0xff]  ;;  %v1965_v38 = vld [vmem:[#allocation6 + $0x180] sm:$0xff] }
 0x3a7   : > { %3212 = vmatprep.mubr.msk.f32.mxu0 %vm5142_vm6, %v5086_v33  ;;  %v3959_v33 = vpack.c.bf16 %v1947_v43, %v1945_v41  ;;  %v3971_v35 = vpack.c.bf16 %v1959_v20, %v1957_v5  ;;  %v3979_v22 = vpack.c.bf16 %v1967_v16, %v1965_v38  ;;  %v1979_v41 = vld [vmem:[#allocation6 + $0x1f0] sm:$0xff]  ;;  %v2250_v43 = vld [vmem:[#allocation6 + $0x408] sm:$0xff]  ;;  %v2272_v38 = vld [vmem:[#allocation6 + $0x4b8] sm:$0xff] }
 0x3a8   : > { %v2259_v5 = vld [vmem:[#allocation6 + $0x450] sm:$0xff]  ;;  %v2262_v20 = vld [vmem:[#allocation6 + $0x468] sm:$0xff] }
 0x3a9   : > { %3948 = vmatpush1.bf16.msra.mxu0 %v3947_v24  ;;  %v3981_v24 = vpack.c.bf16 %v1972_v19, %v1970_v18  ;;  %v2269_v19 = vld [vmem:[#allocation6 + $0x4a0] sm:$0xff] }
 0x3aa   : > { %3950 = vmatprep.subr.bf16.mxu0 %v3949_v26  ;;  %v1969_v26 = vld [vmem:[#allocation6 + $0x1a0] sm:$0xff] }
 0x3ab   : > { %v3983_v29 = vpack.c.bf16 %v1971_v39, %v1969_v26  ;;  %v2276_v26 = vld [vmem:[#allocation6 + $0x4d8] sm:$0xff] }
 0x3ad   : > { %3952 = vmatpush1.bf16.msra.mxu0 %v3951_v32  ;;  %v3985_v32 = vpack.c.bf16 %v1976_v27, %v1974_v52  ;;  %v2273_v27 = vld [vmem:[#allocation6 + $0x4c0] sm:$0xff] }
 0x3ae   : > { %3954 = vmatprep.subr.bf16.mxu0 %v3953_v54  ;;  %v1973_v54 = vld [vmem:[#allocation6 + $0x1c0] sm:$0xff] }
 0x3af   : > { %v3987_v17 = vpack.c.bf16 %v1975_v34, %v1973_v54  ;;  %v2280_v54 = vld [vmem:[#allocation6 + $0x4f8] sm:$0xff] }
 0x3b1   : > { %3956 = vmatpush1.bf16.msra.mxu0 %v3955_v36  ;;  %v3989_v36 = vpack.c.bf16 %v1980_v28, %v1978_v21  ;;  %v2279_v28 = vld [vmem:[#allocation6 + $0x4f0] sm:$0xff] }
 0x3b2   : > { %3958 = vmatprep.subr.bf16.mxu0 %v3957_v44  ;;  %v1977_v44 = vld [vmem:[#allocation6 + $0x1e0] sm:$0xff] }
 0x3b3   : > { %v3991_v46 = vpack.c.bf16 %v1979_v41, %v1977_v44 }
 0x3b5   : > { %3960 = vmatpush1.bf16.msra.mxu0 %v3959_v33  ;;  %v3993_v33 = vpack.c.bf16 %v2252_v62, %v2250_v43  ;;  %v2281_v43 = vld [vmem:[#allocation6 + $0x500] sm:$0xff]  ;;  %v2283_v62 = vld [vmem:[#allocation6 + $0x510] sm:$0xff] }
 0x3b6   : > { %3962 = vmatprep.subr.bf16.mxu0 %v3961_v4  ;;  %v2249_v4 = vld [vmem:[#allocation6 + $0x400] sm:$0xff] }
 0x3b7   : > { %v3995_v56 = vpack.c.bf16 %v2251_v42, %v2249_v4  ;;  %v4027_v4 = vpack.c.bf16 %v2283_v62, %v2281_v43  ;;  %v2516_v43 = vld [vmem:[#allocation7 + $0x128] sm:$0xff] }
 0x3b9   : > { %3964 = vmatpush1.bf16.msra.mxu0 %v3963_v51  ;;  %v3997_v51 = vpack.c.bf16 %v2256_v55, %v2254_v50  ;;  %v2285_v50 = vld [vmem:[#allocation6 + $0x520] sm:$0xff]  ;;  %v2287_v55 = vld [vmem:[#allocation6 + $0x530] sm:$0xff] }
 0x3ba   : > { %3966 = vmatprep.subr.bf16.mxu0 %v3965_v61  ;;  %v2253_v61 = vld [vmem:[#allocation6 + $0x420] sm:$0xff] }
 0x3bb   : > { %v3999_v8 = vpack.c.bf16 %v2255_v2, %v2253_v61  ;;  %v4031_v61 = vpack.c.bf16 %v2287_v55, %v2285_v50  ;;  %v2518_v50 = vld [vmem:[#allocation7 + $0x138] sm:$0xff] }
 0x3bd   : > { %3968 = vmatpush1.bf16.msra.mxu0 %v3967_v10  ;;  %v4001_v10 = vpack.c.bf16 %v2260_v6, %v2258_v3  ;;  %v2289_v3 = vld [vmem:[#allocation6 + $0x540] sm:$0xff]  ;;  %v2291_v6 = vld [vmem:[#allocation6 + $0x550] sm:$0xff] }
 0x3be   : > { %3970 = vmatprep.subr.bf16.mxu0 %v3969_v30  ;;  %v2257_v30 = vld [vmem:[#allocation6 + $0x440] sm:$0xff] }
 0x3bf   : > { %v4003_v63 = vpack.c.bf16 %v2259_v5, %v2257_v30  ;;  %v4035_v30 = vpack.c.bf16 %v2291_v6, %v2289_v3  ;;  %v2520_v3 = vld [vmem:[#allocation7 + $0x148] sm:$0xff] }
 0x3c1   : > { %3972 = vmatpush1.bf16.msra.mxu0 %v3971_v35  ;;  %v4005_v35 = vpack.c.bf16 %v2264_v13, %v2262_v20  ;;  %v2293_v20 = vld [vmem:[#allocation6 + $0x560] sm:$0xff]  ;;  %v2295_v13 = vld [vmem:[#allocation6 + $0x570] sm:$0xff] }
 0x3c2   : > { %3974 = vmatprep.subr.bf16.mxu0 %v3973_v31  ;;  %v2266_v31 = vld [vmem:[#allocation6 + $0x488] sm:$0xff] }
 0x3c3   : > { %v4009_v25 = vpack.c.bf16 %v2268_v7, %v2266_v31  ;;  %v2297_v31 = vld [vmem:[#allocation6 + $0x580] sm:$0xff]  ;;  %v2299_v7 = vld [vmem:[#allocation6 + $0x590] sm:$0xff] }
 0x3c5   : > { %3976 = vmatpush1.bf16.msra.mxu0 %v3975_v15  ;;  %v2267_v15 = vld [vmem:[#allocation6 + $0x490] sm:$0xff] }
 0x3c6   : > { %3978 = vmatprep.subr.bf16.mxu0 %v3977_v14  ;;  %v2270_v14 = vld [vmem:[#allocation6 + $0x4a8] sm:$0xff]  ;;  %v4011_v16 = vpack.c.bf16 %v2267_v15, %v2265_v57  ;;  %v4043_v57 = vpack.c.bf16 %v2299_v7, %v2297_v31 }
 0x3c7   : > { %v4013_v18 = vpack.c.bf16 %v2272_v38, %v2270_v14  ;;  %v2301_v14 = vld [vmem:[#allocation6 + $0x5a0] sm:$0xff]  ;;  %v2303_v38 = vld [vmem:[#allocation6 + $0x5b0] sm:$0xff]  ;;  %v2524_v31 = vld [vmem:[#allocation7 + $0x168] sm:$0xff] }
 0x3c9   : > { %3980 = vmatpush1.bf16.msra.mxu0 %v3979_v22  ;;  %v2271_v22 = vld [vmem:[#allocation6 + $0x4b0] sm:$0xff] }
 0x3ca   : > { %3982 = vmatprep.subr.bf16.mxu0 %v3981_v24  ;;  %v2274_v24 = vld [vmem:[#allocation6 + $0x4c8] sm:$0xff]  ;;  %v4015_v39 = vpack.c.bf16 %v2271_v22, %v2269_v19  ;;  %v4047_v19 = vpack.c.bf16 %v2303_v38, %v2301_v14  ;;  %v2526_v14 = vld [vmem:[#allocation7 + $0x178] sm:$0xff] }
 0x3cb   : > { %v4017_v52 = vpack.c.bf16 %v2276_v26, %v2274_v24  ;;  %v2305_v24 = vld [vmem:[#allocation6 + $0x5c0] sm:$0xff]  ;;  %v2307_v26 = vld [vmem:[#allocation6 + $0x5d0] sm:$0xff] }
 0x3cd   : > { %3984 = vmatpush1.bf16.msra.mxu0 %v3983_v29  ;;  %v2275_v29 = vld [vmem:[#allocation6 + $0x4d0] sm:$0xff] }
 0x3ce   : > { %3986 = vmatprep.subr.bf16.mxu0 %v3985_v32  ;;  %v2278_v32 = vld [vmem:[#allocation6 + $0x4e8] sm:$0xff]  ;;  %v4019_v34 = vpack.c.bf16 %v2275_v29, %v2273_v27  ;;  %v4051_v27 = vpack.c.bf16 %v2307_v26, %v2305_v24 }
 0x3cf   : > { %v4021_v21 = vpack.c.bf16 %v2280_v54, %v2278_v32  ;;  %v2309_v32 = vld [vmem:[#allocation6 + $0x5e0] sm:$0xff]  ;;  %v2311_v54 = vld [vmem:[#allocation6 + $0x5f0] sm:$0xff] }
 0x3d1   : > { %3988 = vmatpush1.bf16.msra.mxu0 %v3987_v17  ;;  %v2282_v17 = vld [vmem:[#allocation6 + $0x508] sm:$0xff] }
 0x3d2   : > { %3990 = vmatprep.subr.bf16.mxu0 %v3989_v36  ;;  %v2284_v36 = vld [vmem:[#allocation6 + $0x518] sm:$0xff] }
 0x3d3   : > { %v4025_v41 = vpack.c.bf16 %v2284_v36, %v2282_v17  ;;  %v2511_v17 = vld [vmem:[#allocation7 + $0x100] sm:$0xff]  ;;  %v2512_v36 = vld [vmem:[#allocation7 + $0x108] sm:$0xff] }
 0x3d5   : > { %3992 = vmatpush1.bf16.msra.mxu0 %v3991_v46  ;;  %v2286_v46 = vld [vmem:[#allocation6 + $0x528] sm:$0xff] }
 0x3d6   : > { %3994 = vmatprep.subr.bf16.mxu0 %v3993_v33  ;;  %v2288_v33 = vld [vmem:[#allocation6 + $0x538] sm:$0xff] }
 0x3d7   : > { %v4029_v42 = vpack.c.bf16 %v2288_v33, %v2286_v46  ;;  %v2533_v46 = vld [vmem:[#allocation7 + $0x1b0] sm:$0xff]  ;;  %v2534_v33 = vld [vmem:[#allocation7 + $0x1b8] sm:$0xff] }
 0x3d8   : > { %3214 = vmatmul.mubr.msk.f32.vlgmr.msra.gmra.mrb[8].mxu0 %vm5142_vm6, %v5088_v12  ;;  %v2263_v12 = vld [vmem:[#allocation6 + $0x470] sm:$0xff] }
 0x3d9   : > { %2229 = vmatprep.mubr.f32.mxu0 %v5103_v47  ;;  %3996 = vmatpush1.bf16.msra.mxu0 %v3995_v56  ;;  %v4007_v11 = vpack.c.bf16 %v2263_v12, %v2261_v23  ;;  %v2290_v56 = vld [vmem:[#allocation6 + $0x548] sm:$0xff]  ;;  %v4039_v23 = vpack.c.bf16 %v2295_v13, %v2293_v20  ;;  %v2522_v20 = vld [vmem:[#allocation7 + $0x158] sm:$0xff] }
 0x3da   : > { %3998 = vmatprep.subr.bf16.mxu0 %v3997_v51  ;;  %v2292_v51 = vld [vmem:[#allocation6 + $0x558] sm:$0xff] }
 0x3db   : > { %v4033_v2 = vpack.c.bf16 %v2292_v51, %v2290_v56  ;;  %v2535_v56 = vld [vmem:[#allocation7 + $0x1c0] sm:$0xff]  ;;  %v2536_v51 = vld [vmem:[#allocation7 + $0x1c8] sm:$0xff] }
 0x3dc   : > { %2230 = vmatmul.mubr.f32.gmra.mrb[10].mxu0 %v5097_v59 }
 0x3dd   : > { %2235 = vmatprep.mubr.f32.mxu0 %v5115_v45  ;;  %4000 = vmatpush1.bf16.msra.mxu0 %v3999_v8  ;;  %v2294_v8 = vld [vmem:[#allocation6 + $0x568] sm:$0xff] }
 0x3de   : > { %4002 = vmatprep.subr.bf16.mxu0 %v4001_v10  ;;  %v2296_v10 = vld [vmem:[#allocation6 + $0x578] sm:$0xff] }
 0x3df   : > { %v4037_v5 = vpack.c.bf16 %v2296_v10, %v2294_v8  ;;  %v2537_v8 = vld [vmem:[#allocation7 + $0x1d0] sm:$0xff]  ;;  %v2538_v10 = vld [vmem:[#allocation7 + $0x1d8] sm:$0xff] }
 0x3e0   : > { %2236 = vmatmul.mubr.f32.gmra.mrb[12].mxu0 %v5108_v37 }
 0x3e1   : > { %2241 = vmatprep.mubr.f32.mxu0 %v5135_v53  ;;  %4004 = vmatpush1.bf16.msra.mxu0 %v4003_v63  ;;  %v2298_v63 = vld [vmem:[#allocation6 + $0x588] sm:$0xff] }
 0x3e2   : > { %4006 = vmatprep.subr.bf16.mxu0 %v4005_v35  ;;  %v2300_v35 = vld [vmem:[#allocation6 + $0x598] sm:$0xff] }
 0x3e3   : > { %v4041_v12 = vpack.c.bf16 %v2300_v35, %v2298_v63  ;;  %v2539_v63 = vld [vmem:[#allocation7 + $0x1e0] sm:$0xff]  ;;  %v2540_v35 = vld [vmem:[#allocation7 + $0x1e8] sm:$0xff] }
 0x3e4   : > { %2242 = vmatmul.mubr.f32.gmra.mrb[14].mxu0 %v5127_v1 }
 0x3e5   : > { %4008 = vmatpush1.bf16.msra.mxu0 %v4007_v11  ;;  %2377 = vmatprep.mubr.f32.mxu0 %v5103_v47  ;;  %v2277_v47 = vld [vmem:[#allocation6 + $0x4e0] sm:$0xff]  ;;  %v2302_v11 = vld [vmem:[#allocation6 + $0x5a8] sm:$0xff] }
 0x3e6   : > { %4010 = vmatprep.subr.bf16.mxu0 %v4009_v25  ;;  %v4023_v44 = vpack.c.bf16 %v2279_v28, %v2277_v47  ;;  %v2304_v25 = vld [vmem:[#allocation6 + $0x5b8] sm:$0xff]  ;;  %v2528_v47 = vld [vmem:[#allocation7 + $0x188] sm:$0xff] }
 0x3e7   : > { %v4045_v15 = vpack.c.bf16 %v2304_v25, %v2302_v11  ;;  %v2541_v11 = vld [vmem:[#allocation7 + $0x1f0] sm:$0xff]  ;;  %v2542_v25 = vld [vmem:[#allocation7 + $0x1f8] sm:$0xff] }
 0x3e9   : > { %4012 = vmatpush1.bf16.msra.mxu0 %v4011_v16  ;;  %v2306_v16 = vld [vmem:[#allocation6 + $0x5c8] sm:$0xff] }
 0x3ea   : > { %4014 = vmatprep.subr.bf16.mxu0 %v4013_v18  ;;  %v2308_v18 = vld [vmem:[#allocation6 + $0x5d8] sm:$0xff] }
 0x3eb   : > { %v4049_v22 = vpack.c.bf16 %v2308_v18, %v2306_v16  ;;  %v2494_v16 = vld [vmem:[#allocation7 + $0x80] sm:$0xff]  ;;  %v2495_v18 = vld [vmem:[#allocation7 + $0x88] sm:$0xff] }
 0x3ed   : > { %4016 = vmatpush1.bf16.msra.mxu0 %v4015_v39  ;;  %v2310_v39 = vld [vmem:[#allocation6 + $0x5e8] sm:$0xff] }
 0x3ee   : > { %4018 = vmatprep.subr.bf16.mxu0 %v4017_v52  ;;  %v2312_v52 = vld [vmem:[#allocation6 + $0x5f8] sm:$0xff] }
 0x3ef   : > { %v4053_v29 = vpack.c.bf16 %v2312_v52, %v2310_v39 }
 0x3f1   : > { %4020 = vmatpush1.bf16.msra.mxu0 %v4019_v34  ;;  %v4055_v34 = vpack.c.bf16 %v2311_v54, %v2309_v32 }
 0x3f2   : > { %4022 = vmatprep.subr.bf16.mxu0 %v4021_v21  ;;  %v2527_v21 = vld [vmem:[#allocation7 + $0x180] sm:$0xff] }
 0x3f3   : > { %v4057_v28 = vpack.c.bf16 %v2528_v47, %v2527_v21 }
 0x3f5   : > { %4024 = vmatpush1.bf16.msra.mxu0 %v4023_v44  ;;  %4058 = vmatprep.subr.bf16.mxu1 %v4057_v28 }
 0x3f6   : > { %4026 = vmatprep.subr.bf16.mxu0 %v4025_v41  ;;  %v2514_v41 = vld [vmem:[#allocation7 + $0x118] sm:$0xff] }
 0x3f9   : > { %4028 = vmatpush1.bf16.msra.mxu0 %v4027_v4  ;;  %v4069_v4 = vpack.c.bf16 %v2534_v33, %v2533_v46 }
 0x3fa   : > { %4030 = vmatprep.subr.bf16.mxu0 %v4029_v42  ;;  %v2517_v42 = vld [vmem:[#allocation7 + $0x130] sm:$0xff] }
 0x3fb   : > { %v4071_v55 = vpack.c.bf16 %v2518_v50, %v2517_v42 }
 0x3fd   : > { %4032 = vmatpush1.bf16.msra.mxu0 %v4031_v61  ;;  %v4073_v61 = vpack.c.bf16 %v2536_v51, %v2535_v56 }
 0x3fe   : > { %4034 = vmatprep.subr.bf16.mxu0 %v4033_v2  ;;  %v2519_v2 = vld [vmem:[#allocation7 + $0x140] sm:$0xff] }
 0x3ff   : > { %v4075_v6 = vpack.c.bf16 %v2520_v3, %v2519_v2 }
 0x401   : > { %4036 = vmatpush1.bf16.msra.mxu0 %v4035_v30  ;;  %v4077_v30 = vpack.c.bf16 %v2538_v10, %v2537_v8  ;;  %v2478_v10 = vld [vmem:[#allocation7] sm:$0xff] }
 0x402   : > { %4038 = vmatprep.subr.bf16.mxu0 %v4037_v5  ;;  %v2521_v5 = vld [vmem:[#allocation7 + $0x150] sm:$0xff] }
 0x403   : > { %v4079_v13 = vpack.c.bf16 %v2522_v20, %v2521_v5  ;;  %v2496_v20 = vld [vmem:[#allocation7 + $0x90] sm:$0xff] }
 0x405   : > { %4040 = vmatpush1.bf16.msra.mxu0 %v4039_v23  ;;  %v4081_v23 = vpack.c.bf16 %v2540_v35, %v2539_v63 }
 0x406   : > { %4042 = vmatprep.subr.bf16.mxu0 %v4041_v12  ;;  %v2523_v12 = vld [vmem:[#allocation7 + $0x160] sm:$0xff] }
 0x407   : > { %v4083_v7 = vpack.c.bf16 %v2524_v31, %v2523_v12 }
 0x409   : > { %4044 = vmatpush1.bf16.msra.mxu0 %v4043_v57  ;;  %v4085_v57 = vpack.c.bf16 %v2542_v25, %v2541_v11  ;;  %v2481_v11 = vld [vmem:[#allocation7 + $0x18] sm:$0xff] }
 0x40a   : > { %4046 = vmatprep.subr.bf16.mxu0 %v4045_v15  ;;  %v2525_v15 = vld [vmem:[#allocation7 + $0x170] sm:$0xff] }
 0x40b   : > { %v4087_v38 = vpack.c.bf16 %v2526_v14, %v2525_v15  ;;  %v2499_v15 = vld [vmem:[#allocation7 + $0xa8] sm:$0xff] }
 0x40d   : > { %4048 = vmatpush1.bf16.msra.mxu0 %v4047_v19  ;;  %v4089_v19 = vpack.c.bf16 %v2495_v18, %v2494_v16 }
 0x40e   : > { %4050 = vmatprep.subr.bf16.mxu0 %v4049_v22  ;;  %v2410_v22 = vld [vmem:[%s5417_s6] sm:$0x3] }
 0x40f   : > { %v2415_v24 = vrot.slane %v2410_v22, %v4936_v48  ;;  %v2419_v26 = vrot.slane %v2410_v22, %v4941_v49  ;;  %v2482_v22 = vld [vmem:[#allocation7 + $0x20] sm:$0xff] }
 0x411   : > { %4052 = vmatpush1.bf16.msra.mxu0 %v4051_v27 }
 0x412   : > { %4054 = vmatprep.subr.bf16.mxu0 %v4053_v29 }
 0x415   : > { %4056 = vmatpush1.bf16.msra.mxu0 %v4055_v34 }
 0x418   : > { %2378 = vmatmul.mubr.f32.vlgmr.msra.gmra.mrb[8].mxu0 %v5097_v59  ;;  %v4059_v59 = vpack.c.bf16 %v2512_v36, %v2511_v17 }
 0x419   : > { %2383 = vmatprep.mubr.f32.mxu0 %v5115_v45  ;;  %v2529_v45 = vld [vmem:[#allocation7 + $0x190] sm:$0xff] }
 0x41a   : > { %4060 = vmatpush3.bf16.msra.mxu1 %v4059_v59 }
 0x41c   : > { %2384 = vmatmul.mubr.f32.gmra.mrb[10].mxu0 %v5108_v37  ;;  %v2530_v37 = vld [vmem:[#allocation7 + $0x198] sm:$0xff] }
 0x41d   : > { %2389 = vmatprep.mubr.f32.mxu0 %v5135_v53  ;;  %v4061_v44 = vpack.c.bf16 %v2530_v37, %v2529_v45  ;;  %v2513_v53 = vld [vmem:[#allocation7 + $0x110] sm:$0xff] }
 0x41f   : > { %4062 = vmatprep.subr.bf16.mxu1 %v4061_v44 }
 0x420   : > { %2390 = vmatmul.mubr.f32.gmra.mrb[12].mxu0 %v5127_v1  ;;  %v4063_v1 = vpack.c.bf16 %v2514_v41, %v2513_v53 }
 0x421   : > { %2395 = vmatprep.mubr.f32.mxu0 %v1903_v9  ;;  %v2532_v9 = vld [vmem:[#allocation7 + $0x1a8] sm:$0xff] }
 0x422   : > { %4064 = vmatpush3.bf16.msra.mxu1 %v4063_v1  ;;  %v4065_v40 = vpack.c.bf16 %v2532_v9, %v2531_v60 }
 0x424   : > { %2396 = vmatmul.mubr.f32.gmra.mrb[14].mxu0 %v1901_v58  ;;  %v2515_v58 = vld [vmem:[#allocation7 + $0x120] sm:$0xff]  ;;  %4066 = vmatprep.subr.bf16.mxu1 %v4065_v40 }
 0x425   : > { %v4067_v62 = vpack.c.bf16 %v2516_v43, %v2515_v58  ;;  %3510 = vmatprep.mubr.msk.f32.mxu0 %vm4596_vm7, %v4594_v0 }
 0x427   : > { %4068 = vmatpush3.bf16.msra.mxu1 %v4067_v62 }
 0x428   : > { %4070 = vmatprep.subr.bf16.mxu1 %v4069_v4 }
 0x42b   : > { %4072 = vmatpush3.bf16.msra.mxu1 %v4071_v55 }
 0x42c   : > { %4074 = vmatprep.subr.bf16.mxu1 %v4073_v61 }
 0x42f   : > { %4076 = vmatpush3.bf16.msra.mxu1 %v4075_v6 }
 0x430   : > { %4078 = vmatprep.subr.bf16.mxu1 %v4077_v30  ;;  %v2479_v30 = vld [vmem:[#allocation7 + $0x8] sm:$0xff] }
 0x433   : > { %4080 = vmatpush3.bf16.msra.mxu1 %v4079_v13  ;;  %v2497_v13 = vld [vmem:[#allocation7 + $0x98] sm:$0xff] }
 0x434   : > { %4082 = vmatprep.subr.bf16.mxu1 %v4081_v23  ;;  %v4091_v23 = vpack.c.bf16 %v2479_v30, %v2478_v10  ;;  %v4093_v31 = vpack.c.bf16 %v2497_v13, %v2496_v20  ;;  %v2703_v10 = vld [vmem:[#allocation7 + $0x208] sm:$0xff]  ;;  %v2720_v30 = vld [vmem:[#allocation7 + $0x290] sm:$0xff] }
 0x437   : > { %4084 = vmatpush3.bf16.msra.mxu1 %v4083_v7  ;;  %v2480_v7 = vld [vmem:[#allocation7 + $0x10] sm:$0xff] }
 0x438   : > { %4086 = vmatprep.subr.bf16.mxu1 %v4085_v57  ;;  %v2498_v57 = vld [vmem:[#allocation7 + $0xa0] sm:$0xff]  ;;  %v4095_v16 = vpack.c.bf16 %v2481_v11, %v2480_v7  ;;  %v2723_v11 = vld [vmem:[#allocation7 + $0x2a8] sm:$0xff] }
 0x439   : > { %v2722_v7 = vld [vmem:[#allocation7 + $0x2a0] sm:$0xff] }
 0x43b   : > { %4088 = vmatpush3.bf16.msra.mxu1 %v4087_v38 }
 0x43c   : > { %4090 = vmatprep.subr.bf16.mxu1 %v4089_v19  ;;  %v4097_v19 = vpack.c.bf16 %v2499_v15, %v2498_v57 }
 0x4eb   : > { %v2379_v39 = vpop.f32.mrb[8].mxu0 }
 0x4ec   : > { %v2422_v52 = vadd.f32 %v2415_v24, %v2379_v39  ;;  %v2381_v27 = vpop.f32.mrb[9].mxu0  ;;  %v2500_v39 = vld [vmem:[#allocation7 + $0xb0] sm:$0xff] }
 0x4ed   : > { %v2423_v29 = vadd.f32 %v2419_v26, %v2381_v27 }
 0x4ee   : > { %v2430_v32 = vsub.f32 0.0, %v2422_v52 }
 0x4ef   : > { %v2431_v54 = vsub.f32 0.0, %v2423_v29  ;;  %v2385_v34 = vpop.f32.mrb[10].mxu0 }
 0x4f0   : > { %v2438_v21 = vmul.f32 1.442695, %v2430_v32  ;;  %v5173_v47 = vadd.f32 %v2415_v24, %v2385_v34  ;;  %v2387_v28 = vpop.f32.mrb[11].mxu0 }
 0x4f1   : > { %v2440_v17 = vmul.f32 1.442695, %v2431_v54  ;;  %v2425_v36 = vadd.f32 %v2419_v26, %v2387_v28  ;;  %v2502_v28 = vld [vmem:[#allocation7 + $0xc0] sm:$0xff] }
 0x4f2   : > { %4410 = vpow2.f32 %v2438_v21  ;;  %v2432_v59 = vsub.f32 0.0, %v5173_v47  ;;  %v2484_v21 = vld [vmem:[#allocation7 + $0x30] sm:$0xff] }
 0x4f3   : > { %4412 = vpow2.f32 %v2440_v17  ;;  %v2433_v48 = vsub.f32 0.0, %v2425_v36  ;;  %v2391_v45 = vpop.f32.mrb[12].mxu0  ;;  %v2503_v17 = vld [vmem:[#allocation7 + $0xc8] sm:$0xff] }
 0x4f4   : > { %v2442_v49 = vmul.f32 1.442695, %v2432_v59  ;;  %v5176_v37 = vadd.f32 %v2415_v24, %v2391_v45  ;;  %v2393_v44 = vpop.f32.mrb[13].mxu0  ;;  %v4105_v59 = vpack.c.bf16 %v2503_v17, %v2502_v28  ;;  %v2487_v45 = vld [vmem:[#allocation7 + $0x48] sm:$0xff]  ;;  %v2728_v17 = vld [vmem:[#allocation7 + $0x2d0] sm:$0xff] }
 0x4f5   : > { %v2444_v53 = vmul.f32 1.442695, %v2433_v48  ;;  %v5178_v41 = vadd.f32 %v2419_v26, %v2393_v44  ;;  %v2486_v48 = vld [vmem:[#allocation7 + $0x40] sm:$0xff]  ;;  %v2711_v28 = vld [vmem:[#allocation7 + $0x248] sm:$0xff] }
 0x4f6   : > { %4414 = vpow2.f32 %v2442_v49  ;;  %v2434_v1 = vsub.f32 0.0, %v5176_v37  ;;  %v2504_v49 = vld [vmem:[#allocation7 + $0xd0] sm:$0xff]  ;;  %v4107_v44 = vpack.c.bf16 %v2487_v45, %v2486_v48 }
 0x4f7   : > { %4416 = vpow2.f32 %v2444_v53  ;;  %v2435_v60 = vsub.f32 0.0, %v5178_v41  ;;  %v2397_v9 = vpop.f32.mrb[14].mxu0  ;;  %v2712_v45 = vld [vmem:[#allocation7 + $0x250] sm:$0xff] }
 0x4f8   : > { %v2446_v40 = vmul.f32 1.442695, %v2434_v1  ;;  %v5182_v58 = vadd.f32 %v2415_v24, %v2397_v9  ;;  %v2399_v43 = vpop.f32.mrb[15].mxu0  ;;  %v2483_v24 = vld [vmem:[#allocation7 + $0x28] sm:$0xff]  ;;  %v2489_v1 = vld [vmem:[#allocation7 + $0x58] sm:$0xff] }
 0x4f9   : > { %v2448_v62 = vmul.f32 1.442695, %v2435_v60  ;;  %v5184_v46 = vadd.f32 %v2419_v26, %v2399_v43  ;;  %v4099_v32 = vpack.c.bf16 %v2483_v24, %v2482_v22  ;;  %v2506_v60 = vld [vmem:[#allocation7 + $0xe0] sm:$0xff]  ;;  %v2507_v9 = vld [vmem:[#allocation7 + $0xe8] sm:$0xff]  ;;  %v2724_v22 = vld [vmem:[#allocation7 + $0x2b0] sm:$0xff] }
 0x4fa   : > { %4418 = vpow2.f32 %v2446_v40  ;;  %v4113_v43 = vpack.c.bf16 %v2507_v9, %v2506_v60  ;;  %v2725_v24 = vld [vmem:[#allocation7 + $0x2b8] sm:$0xff]  ;;  %v2714_v9 = vld [vmem:[#allocation7 + $0x260] sm:$0xff] }
 0x4fb   : > { %4420 = vpow2.f32 %v2448_v62  ;;  %v2490_v62 = vld [vmem:[#allocation7 + $0x60] sm:$0xff]  ;;  %v2437_v20 = vsub.f32 0.0, %v5184_v46 }
 0x4fc   : > { %v4411_v33 = vpop.eup %4410 }
 0x4fd   : > { %v4413_v4 = vpop.eup %4412  ;;  %v2454_v42 = vadd.f32 1.0, %v4411_v33  ;;  %v2491_v33 = vld [vmem:[#allocation7 + $0x68] sm:$0xff]  ;;  %v2452_v57 = vmul.f32 1.442695, %v2437_v20  ;;  %v3222_v20 = vld [vmem:[%s5420_s9 + $0xb0] sm:$0xff] }
 0x4fe   : > { %v2455_v50 = vadd.f32 1.0, %v4413_v4  ;;  %v2508_v4 = vld [vmem:[#allocation7 + $0xf0] sm:$0xff] }
 0x4ff   : > { %4422 = vrcp.f32 %v2454_v42  ;;  %v2509_v42 = vld [vmem:[#allocation7 + $0xf8] sm:$0xff] }
 0x500   : > { %v4415_v55 = vpop.eup %4414  ;;  %4424 = vrcp.f32 %v2455_v50  ;;  %v4115_v50 = vpack.c.bf16 %v2491_v33, %v2490_v62  ;;  %v2733_v62 = vld [vmem:[#allocation7 + $0x2f8] sm:$0xff] }
 0x501   : > { %v4417_v56 = vpop.eup %4416  ;;  %v2456_v51 = vadd.f32 1.0, %v4415_v55  ;;  %v4117_v55 = vpack.c.bf16 %v2509_v42, %v2508_v4 }
 0x502   : > { %v2457_v61 = vadd.f32 1.0, %v4417_v56  ;;  %v2492_v56 = vld [vmem:[#allocation7 + $0x70] sm:$0xff] }
 0x503   : > { %4426 = vrcp.f32 %v2456_v51  ;;  %v2493_v51 = vld [vmem:[#allocation7 + $0x78] sm:$0xff] }
 0x504   : > { %v4419_v2 = vpop.eup %4418  ;;  %4428 = vrcp.f32 %v2457_v61  ;;  %v2718_v61 = vld [vmem:[#allocation7 + $0x280] sm:$0xff] }
 0x505   : > { %v4421_v3 = vpop.eup %4420  ;;  %v2458_v6 = vadd.f32 1.0, %v4419_v2  ;;  %v2719_v2 = vld [vmem:[#allocation7 + $0x288] sm:$0xff] }
 0x506   : > { %v2459_v8 = vadd.f32 1.0, %v4421_v3  ;;  %v4119_v3 = vpack.c.bf16 %v2493_v51, %v2492_v56 }
 0x507   : > { %4430 = vrcp.f32 %v2458_v6  ;;  %v4121_v6 = vpack.c.bf16 %v2719_v2, %v2718_v61 }
 0x508   : > { %4432 = vrcp.f32 %v2459_v8  ;;  %v2702_v8 = vld [vmem:[#allocation7 + $0x200] sm:$0xff] }
 0x509   : > { %v4423_v5 = vpop.eup %4422  ;;  %v4123_v13 = vpack.c.bf16 %v2703_v10, %v2702_v8  ;;  %4434 = vpow2.f32 %v2452_v57  ;;  %v3217_v8 = vld [vmem:[%s5420_s9 + $0x88] sm:$0xff]  ;;  %v4595_v10 = vmov 0.0|0.0  }
 0x50a   : > { %v4425_v63 = vpop.eup %4424  ;;  %v5188_v12 = vmul.f32 %v4423_v5, %v2422_v52  ;;  %v2501_v52 = vld [vmem:[#allocation7 + $0xb8] sm:$0xff]  ;;  %4201 = vmatprep.subr.bf16.mxu0 %v4595_v10 }
 0x50b   : > { %v5186_v35 = vmul.f32 %v4425_v63, %v2423_v29  ;;  %v4101_v34 = vpack.c.bf16 %v2501_v52, %v2500_v39  ;;  %v2721_v5 = vld [vmem:[#allocation7 + $0x298] sm:$0xff]  ;;  %v4133_v52 = vpack.c.bf16 %v2725_v24, %v2724_v22 }
 0x50c   : > { %v4125_v63 = vpack.c.bf16 %v2721_v5, %v2720_v30  ;;  %v3221_v30 = vld [vmem:[%s5420_s9 + $0xa8] sm:$0xff]  ;;  %v3231_v22 = vld [vmem:[%s5420_s9 + $0xf8] sm:$0xff] }
 0x50d   : > { %v4427_v25 = vpop.eup %4426  ;;  %2607 = vmatprep.mubr.f32.mxu1 %v5186_v35 }
 0x50e   : > { %v4429_v14 = vpop.eup %4428  ;;  %2608 = vmatmul.mubr.f32.vlgmr.msra.gmra.mrb[8].mxu1 %v5188_v12  ;;  %v5195_v18 = vmul.f32 %v4427_v25, %v5173_v47  ;;  %v2485_v47 = vld [vmem:[#allocation7 + $0x38] sm:$0xff]  ;;  %v2436_v25 = vsub.f32 0.0, %v5182_v58 }
 0x50f   : > { %v5192_v38 = vmul.f32 %v4429_v14, %v2425_v36  ;;  %4092 = vmatpush3.bf16.msra.mxu1 %v4091_v23  ;;  %v4103_v36 = vpack.c.bf16 %v2485_v47, %v2484_v21  ;;  %v2704_v23 = vld [vmem:[#allocation7 + $0x210] sm:$0xff]  ;;  %v4129_v14 = vpack.c.bf16 %v2723_v11, %v2722_v7  ;;  %v2710_v47 = vld [vmem:[#allocation7 + $0x240] sm:$0xff] }
 0x510   : > { %4094 = vmatprep.subr.bf16.mxu1 %v4093_v31  ;;  %v2705_v31 = vld [vmem:[#allocation7 + $0x218] sm:$0xff]  ;;  %v3226_v11 = vld [vmem:[%s5420_s9 + $0xd0] sm:$0xff] }
 0x511   : > { %v4431_v26 = vpop.eup %4430  ;;  %2612 = vmatprep.mubr.f32.mxu1 %v5192_v38  ;;  %v4127_v15 = vpack.c.bf16 %v2705_v31, %v2704_v23  ;;  %v3224_v23 = vld [vmem:[%s5420_s9 + $0xc0] sm:$0xff]  ;;  %v3225_v31 = vld [vmem:[%s5420_s9 + $0xc8] sm:$0xff] }
 0x512   : > { %v4433_v27 = vpop.eup %4432  ;;  %2613 = vmatmul.mubr.f32.gmra.mrb[10].mxu1 %v5195_v18  ;;  %v5203_v54 = vmul.f32 %v4431_v26, %v5176_v37  ;;  %v2505_v37 = vld [vmem:[#allocation7 + $0xd8] sm:$0xff]  ;;  %v2450_v26 = vmul.f32 1.442695, %v2436_v25  ;;  %v4166_v7 = vpack.c.bf16 %v3225_v31, %v3224_v23  ;;  %v2844_v31 = vld [vmem:[%s5420_s9 + $0x40] sm:$0xff] }
 0x513   : > { %v5200_v29 = vmul.f32 %v4433_v27, %v5178_v41  ;;  %4096 = vmatpush3.bf16.msra.mxu1 %v4095_v16  ;;  %v4109_v53 = vpack.c.bf16 %v2505_v37, %v2504_v49  ;;  %v2488_v41 = vld [vmem:[#allocation7 + $0x50] sm:$0xff]  ;;  %v2706_v16 = vld [vmem:[#allocation7 + $0x220] sm:$0xff]  ;;  %v2713_v49 = vld [vmem:[#allocation7 + $0x258] sm:$0xff]  ;;  %v4435_v37 = vpop.eup %4434 }
 0x514   : > { %4098 = vmatprep.subr.bf16.mxu1 %v4097_v19  ;;  %v4111_v40 = vpack.c.bf16 %v2489_v1, %v2488_v41  ;;  %v2707_v19 = vld [vmem:[#allocation7 + $0x228] sm:$0xff]  ;;  %v2708_v27 = vld [vmem:[#allocation7 + $0x230] sm:$0xff]  ;;  %4436 = vpow2.f32 %v2450_v26  ;;  %v4143_v41 = vpack.c.bf16 %v2713_v49, %v2712_v45  ;;  %v3227_v25 = vld [vmem:[%s5420_s9 + $0xd8] sm:$0xff] }
 0x515   : > { %2616 = vmatprep.mubr.f32.mxu1 %v5200_v29  ;;  %v4131_v39 = vpack.c.bf16 %v2707_v19, %v2706_v16  ;;  %v4169_v57 = vpack.c.bf16 %v3227_v25, %v3226_v11  ;;  %v3230_v19 = vld [vmem:[%s5420_s9 + $0xf0] sm:$0xff] }
 0x516   : > { %2617 = vmatmul.mubr.f32.gmra.mrb[12].mxu1 %v5203_v54  ;;  %v4175_v24 = vpack.c.bf16 %v3231_v22, %v3230_v19  ;;  %v2849_v19 = vld [vmem:[%s5420_s9 + $0x68] sm:$0xff] }
 0x517   : > { %4100 = vmatpush3.bf16.msra.mxu1 %v4099_v32  ;;  %2686 = vmatprep.mubr.f32.mxu1 %v4594_v0  ;;  %v2726_v32 = vld [vmem:[#allocation7 + $0x2c0] sm:$0xff] }
 0x518   : > { %4102 = vmatprep.subr.bf16.mxu1 %v4101_v34  ;;  %v2727_v34 = vld [vmem:[#allocation7 + $0x2c8] sm:$0xff] }
 0x51b   : > { %4104 = vmatpush3.bf16.msra.mxu1 %v4103_v36  ;;  %v2729_v36 = vld [vmem:[#allocation7 + $0x2d8] sm:$0xff] }
 0x51c   : > { %4106 = vmatprep.subr.bf16.mxu1 %v4105_v59  ;;  %v4139_v59 = vpack.c.bf16 %v2711_v28, %v2710_v47  ;;  %v4141_v48 = vpack.c.bf16 %v2729_v36, %v2728_v17 }
 0x51e   : > { %v4437_v1 = vpop.eup %4436 }
 0x51f   : > { %4108 = vmatpush3.bf16.msra.mxu1 %v4107_v44  ;;  %v2730_v44 = vld [vmem:[#allocation7 + $0x2e0] sm:$0xff]  ;;  %v2460_v33 = vadd.f32 1.0, %v4437_v1 }
 0x520   : > { %4110 = vmatprep.subr.bf16.mxu1 %v4109_v53  ;;  %v2731_v53 = vld [vmem:[#allocation7 + $0x2e8] sm:$0xff] }
 0x521   : > { %v4145_v60 = vpack.c.bf16 %v2731_v53, %v2730_v44 }
 0x523   : > { %4112 = vmatpush3.bf16.msra.mxu1 %v4111_v40  ;;  %v2715_v40 = vld [vmem:[#allocation7 + $0x268] sm:$0xff] }
 0x524   : > { %4114 = vmatprep.subr.bf16.mxu1 %v4113_v43  ;;  %v2732_v43 = vld [vmem:[#allocation7 + $0x2f0] sm:$0xff]  ;;  %v4147_v4 = vpack.c.bf16 %v2715_v40, %v2714_v9 }
 0x525   : > { %v4149_v42 = vpack.c.bf16 %v2733_v62, %v2732_v43 }
 0x527   : > { %4116 = vmatpush3.bf16.msra.mxu1 %v4115_v50  ;;  %v2716_v50 = vld [vmem:[#allocation7 + $0x270] sm:$0xff] }
 0x528   : > { %4118 = vmatprep.subr.bf16.mxu1 %v4117_v55  ;;  %v2717_v55 = vld [vmem:[#allocation7 + $0x278] sm:$0xff] }
 0x529   : > { %v4151_v56 = vpack.c.bf16 %v2717_v55, %v2716_v50 }
 0x52b   : > { %4120 = vmatpush3.bf16.msra.mxu1 %v4119_v3 }
 0x52c   : > { %4122 = vmatprep.subr.bf16.mxu1 %v4121_v6  ;;  %v3216_v6 = vld [vmem:[%s5420_s9 + $0x80] sm:$0xff] }
 0x52e   : > { %2687 = vmatmul.mubr.f32.vlgmr.msra.gmra.mrb[14].mxu1 %v4594_v0 }
 0x52f   : > { %2691 = vmatprep.mubr.f32.mxu1 %v5186_v35  ;;  %4124 = vmatpush3.bf16.msra.mxu1 %v4123_v13  ;;  %v2709_v35 = vld [vmem:[#allocation7 + $0x238] sm:$0xff] }
 0x530   : > { %4126 = vmatprep.subr.bf16.mxu1 %v4125_v63  ;;  %v4135_v21 = vpack.c.bf16 %v2709_v35, %v2708_v27  ;;  %v3223_v13 = vld [vmem:[%s5420_s9 + $0xb8] sm:$0xff] }
 0x531   : > { %v4163_v63 = vpack.c.bf16 %v3223_v13, %v3222_v20  ;;  %v2842_v13 = vld [vmem:[%s5420_s9 + $0x30] sm:$0xff] }
 0x532   : > { %2692 = vmatmul.mubr.f32.gmra.mrb[16].mxu1 %v5188_v12  ;;  %v4137_v12 = vpack.c.bf16 %v2727_v34, %v2726_v32 }
 0x533   : > { %2695 = vmatprep.mubr.f32.mxu1 %v5192_v38  ;;  %4128 = vmatpush3.bf16.msra.mxu1 %v4127_v15  ;;  %v3228_v15 = vld [vmem:[%s5420_s9 + $0xe0] sm:$0xff] }
 0x534   : > { %4130 = vmatprep.subr.bf16.mxu1 %v4129_v14  ;;  %v3229_v14 = vld [vmem:[%s5420_s9 + $0xe8] sm:$0xff] }
 0x535   : > { %v4172_v16 = vpack.c.bf16 %v3229_v14, %v3228_v15  ;;  %v2847_v15 = vld [vmem:[%s5420_s9 + $0x58] sm:$0xff] }
 0x536   : > { %2696 = vmatmul.mubr.f32.gmra.mrb[18].mxu1 %v5195_v18 }
 0x537   : > { %4132 = vmatpush3.bf16.msra.mxu1 %v4131_v39  ;;  %2798 = vmatprep.mubr.f32.mxu1 %v5192_v38  ;;  %v2461_v38 = vadd.f32 1.0, %v4435_v37 }
 0x538   : > { %4134 = vmatprep.subr.bf16.mxu1 %v4133_v52 }
 0x539   : > { %4438 = vrcp.f32 %v2461_v38 }
 0x53a   : > { %4440 = vrcp.f32 %v2460_v33  ;;  %v3215_v33 = vld [vmem:[%s5419_s8] ss:$0 sm:$0xff] }
 0x53b   : > { %4136 = vmatpush3.bf16.msra.mxu1 %v4135_v21 }
 0x53c   : > { %4138 = vmatprep.subr.bf16.mxu1 %v4137_v12 }
 0x53f   : > { %4140 = vmatpush3.bf16.msra.mxu1 %v4139_v59 }
 0x540   : > { %4142 = vmatprep.subr.bf16.mxu1 %v4141_v48 }
 0x543   : > { %4144 = vmatpush3.bf16.msra.mxu1 %v4143_v41  ;;  %v4439_v51 = vpop.eup %4438 }
 0x544   : > { %4146 = vmatprep.subr.bf16.mxu1 %v4145_v60  ;;  %v4441_v61 = vpop.eup %4440  ;;  %v2477_v2 = vmul.f32 %v4439_v51, %v5184_v46  ;;  %v3219_v46 = vld [vmem:[%s5420_s9 + $0x98] sm:$0xff] }
 0x545   : > { %v2476_v3 = vmul.f32 %v4441_v61, %v5182_v58  ;;  %v3218_v58 = vld [vmem:[%s5420_s9 + $0x90] sm:$0xff] }
 0x547   : > { %4148 = vmatpush3.bf16.msra.mxu1 %v4147_v4 }
 0x548   : > { %4150 = vmatprep.subr.bf16.mxu1 %v4149_v42 }
 0x54b   : > { %4152 = vmatpush3.bf16.msra.mxu1 %v4151_v56 }
 0x54c   : > { %4153 = vmatprep.subr.bf16.mxu1 %v4595_v10 }
 0x54e   : > { %2799 = vmatmul.mubr.f32.vlgmr.msra.gmra.mrb[20].mxu1 %v5195_v18  ;;  %v4154_v18 = vpack.c.bf16 %v3217_v8, %v3216_v6 }
 0x54f   : > { %2803 = vmatprep.mubr.f32.mxu1 %v5200_v29  ;;  %v4157_v29 = vpack.c.bf16 %v3219_v46, %v3218_v58  ;;  %v2838_v46 = vld [vmem:[%s5420_s9 + $0x10] sm:$0xff] }
 0x550   : > { %4155 = vmatpush3.bf16.msra.mxu1 %v4154_v18 }
 0x551   : > { %4156 = vmatprep.subr.bf16.mxu1 %v4595_v10 }
 0x552   : > { %2804 = vmatmul.mubr.f32.gmra.mrb[22].mxu1 %v5203_v54  ;;  %v3220_v54 = vld [vmem:[%s5420_s9 + $0xa0] sm:$0xff] }
 0x553   : > { %2807 = vmatprep.mubr.f32.mxu1 %v2477_v2  ;;  %v4160_v5 = vpack.c.bf16 %v3221_v30, %v3220_v54  ;;  %v2836_v2 = vld [vmem:[%s5420_s9] sm:$0xff] }
 0x554   : > { %4158 = vmatpush3.bf16.msra.mxu1 %v4157_v29  ;;  %v2839_v29 = vld [vmem:[%s5420_s9 + $0x18] sm:$0xff]  ;;  %v2840_v30 = vld [vmem:[%s5420_s9 + $0x20] sm:$0xff] }
 0x555   : > { %4159 = vmatprep.subr.bf16.mxu1 %v4595_v10  ;;  %v4181_v54 = vpack.c.bf16 %v2839_v29, %v2838_v46 }
 0x556   : > { %2808 = vmatmul.mubr.f32.gmra.mrb[24].mxu1 %v2476_v3  ;;  %v2837_v3 = vld [vmem:[%s5420_s9 + $0x8] sm:$0xff] }
 0x557   : > { %3440 = vmatprep.mubr.msk.f32.mxu1 %vm4596_vm7, %v4594_v0  ;;  %v4178_v18 = vpack.c.bf16 %v2837_v3, %v2836_v2 }
 0x558   : > { %4161 = vmatpush3.bf16.msra.mxu1 %v4160_v5  ;;  %v2841_v5 = vld [vmem:[%s5420_s9 + $0x28] sm:$0xff] }
 0x559   : > { %4162 = vmatprep.subr.bf16.mxu1 %v4595_v10  ;;  %v4184_v20 = vpack.c.bf16 %v2841_v5, %v2840_v30 }
 0x55c   : > { %4164 = vmatpush3.bf16.msra.mxu1 %v4163_v63 }
 0x55d   : > { %4165 = vmatprep.subr.bf16.mxu1 %v4595_v10 }
 0x560   : > { %4167 = vmatpush3.bf16.msra.mxu1 %v4166_v7  ;;  %v2845_v7 = vld [vmem:[%s5420_s9 + $0x48] sm:$0xff] }
 0x561   : > { %4168 = vmatprep.subr.bf16.mxu1 %v4595_v10  ;;  %v4190_v25 = vpack.c.bf16 %v2845_v7, %v2844_v31 }
 0x564   : > { %4170 = vmatpush3.bf16.msra.mxu1 %v4169_v57  ;;  %v2846_v57 = vld [vmem:[%s5420_s9 + $0x50] sm:$0xff] }
 0x565   : > { %4171 = vmatprep.subr.bf16.mxu1 %v4595_v10  ;;  %v4193_v14 = vpack.c.bf16 %v2847_v15, %v2846_v57 }
 0x568   : > { %4173 = vmatpush3.bf16.msra.mxu1 %v4172_v16  ;;  %v2848_v16 = vld [vmem:[%s5420_s9 + $0x60] sm:$0xff] }
 0x569   : > { %4174 = vmatprep.subr.bf16.mxu1 %v4595_v10  ;;  %v4196_v22 = vpack.c.bf16 %v2849_v19, %v2848_v16 }
 0x56c   : > { %4176 = vmatpush3.bf16.msra.mxu1 %v4175_v24  ;;  %v2850_v24 = vld [vmem:[%s5420_s9 + $0x70] sm:$0xff] }
 0x56d   : > { %4177 = vmatprep.subr.bf16.mxu1 %v4595_v10 }
 0x5e1   : > { %v3266_v26 = vpop.f32.mrb[8].mxu1 }
 0x5e2   : > { %v3267_v39 = vpop.f32.mrb[9].mxu1 }
 0x5e3   : > { %v3268_v52 = vadd.f32 %v3267_v39, %v3266_v26  ;;  %v2851_v26 = vld [vmem:[%s5420_s9 + $0x78] sm:$0xff] }
 0x5e4   : > { %v4199_v39 = vpack.c.bf16 %v2851_v26, %v2850_v24 }
 0x5e5   : > { %v3269_v27 = vpop.f32.mrb[10].mxu1 }
 0x5e6   : > { %v3270_v35 = vpop.f32.mrb[11].mxu1 }
 0x5e7   : > { %v3017_v35 = vld [vmem:[%s5422_s11] sm:$0xff] }
 0x5e9   : > { %v3272_v32 = vpop.f32.mrb[12].mxu1 }
 0x5ea   : > { %v3273_v34 = vpop.f32.mrb[13].mxu1 }
 0x5eb   : > { %v3274_v21 = vadd.f32 %v3273_v34, %v3272_v32  ;;  %v3018_v32 = vld [vmem:[%s5422_s11 + $0x8] sm:$0xff] }
 0x5ec   : > { %v4202_v34 = vpack.c.bf16 %v3018_v32, %v3017_v35 }
 0x5ee   : > { %4203 = vmatpush3.bf16.msra.mxu0 %v4202_v34 }
 0x5ef   : > { %4204 = vmatprep.subr.bf16.mxu0 %v4595_v10 }
 0x601   : > { %v3307_v12 = vpop.f32.mrb[14].mxu1 }
 0x602   : > { %v3308_v47 = vpop.f32.mrb[15].mxu1 }
 0x603   : > { %v3309_v28 = vadd.f32 %v3308_v47, %v3307_v12  ;;  %v3020_v12 = vld [vmem:[%s5422_s11 + $0x18] sm:$0xff] }
 0x605   : > { %v2689_v17 = vadd.f32 %v3309_v28, %v3268_v52  ;;  %v3310_v36 = vpop.f32.mrb[16].mxu1  ;;  %v3021_v28 = vld [vmem:[%s5422_s11 + $0x20] sm:$0xff] }
 0x606   : > { %v3311_v59 = vpop.f32.mrb[17].mxu1 }
 0x607   : > { %v3023_v59 = vld [vmem:[%s5422_s11 + $0x30] sm:$0xff] }
 0x609   : > { %v3313_v48 = vpop.f32.mrb[18].mxu1 }
 0x60a   : > { %v3314_v45 = vpop.f32.mrb[19].mxu1 }
 0x60b   : > { %v3315_v49 = vadd.f32 %v3314_v45, %v3313_v48  ;;  %v3024_v48 = vld [vmem:[%s5422_s11 + $0x38] sm:$0xff] }
 0x60c   : > { %v4211_v45 = vpack.c.bf16 %v3024_v48, %v3023_v59 }
 0x60d   : > { %v2698_v37 = vadd.f32 %v3315_v49, %v3274_v21  ;;  %v3019_v21 = vld [vmem:[%s5422_s11 + $0x10] sm:$0xff]  ;;  %v3025_v49 = vld [vmem:[%s5422_s11 + $0x40] sm:$0xff] }
 0x60e   : > { %v4205_v47 = vpack.c.bf16 %v3020_v12, %v3019_v21 }
 0x610   : > { %4206 = vmatpush3.bf16.msra.mxu0 %v4205_v47 }
 0x611   : > { %4207 = vmatprep.subr.bf16.mxu0 %v4595_v10 }
 0x621   : > { %v3348_v44 = vpop.f32.mrb[20].mxu1 }
 0x622   : > { %v3349_v53 = vpop.f32.mrb[21].mxu1 }
 0x623   : > { %v3350_v41 = vadd.f32 %v3349_v53, %v3348_v44  ;;  %v3027_v53 = vld [vmem:[%s5422_s11 + $0x50] sm:$0xff] }
 0x625   : > { %v2813_v1 = vadd.f32 %v3350_v41, %v2689_v17  ;;  %v3351_v38 = vpop.f32.mrb[22].mxu1  ;;  %v3022_v17 = vld [vmem:[%s5422_s11 + $0x28] sm:$0xff]  ;;  %v3028_v41 = vld [vmem:[%s5422_s11 + $0x58] sm:$0xff] }
 0x626   : > { %v3352_v60 = vpop.f32.mrb[23].mxu1  ;;  %v4208_v36 = vpack.c.bf16 %v3022_v17, %v3021_v28  ;;  %v3029_v38 = vld [vmem:[%s5422_s11 + $0x60] sm:$0xff] }
 0x627   : > { %v2822_v51 = vadd.f32 %v3215_v33, %v2813_v1  ;;  %v4217_v1 = vpack.c.bf16 %v3028_v41, %v3027_v53  ;;  %v3030_v60 = vld [vmem:[%s5422_s11 + $0x68] sm:$0xff] }
 0x628   : > { %4209 = vmatpush3.bf16.msra.mxu0 %v4208_v36 }
 0x629   : > { %v3354_v9 = vpop.f32.mrb[24].mxu1  ;;  %v2824_v61 = vsub.f32 0.0, %v2822_v51  ;;  %4210 = vmatprep.subr.bf16.mxu0 %v4595_v10 }
 0x62a   : > { %v3355_v40 = vpop.f32.mrb[25].mxu1 }
 0x62b   : > { %v3356_v43 = vadd.f32 %v3355_v40, %v3354_v9  ;;  %v2826_v6 = vmul.f32 1.442695, %v2824_v61  ;;  %v4220_v9 = vpack.c.bf16 %v3030_v60, %v3029_v38  ;;  %v3031_v40 = vld [vmem:[%s5422_s11 + $0x70] sm:$0xff] }
 0x62c   : > { %4212 = vmatpush3.bf16.msra.mxu0 %v4211_v45 }
 0x62d   : > { %v2814_v62 = vadd.f32 %v3356_v43, %v2698_v37  ;;  %4213 = vmatprep.subr.bf16.mxu0 %v4595_v10  ;;  %v3026_v37 = vld [vmem:[%s5422_s11 + $0x48] sm:$0xff]  ;;  %v3032_v43 = vld [vmem:[%s5422_s11 + $0x78] sm:$0xff] }
 0x62e   : > { %v4214_v44 = vpack.c.bf16 %v3026_v37, %v3025_v49 }
 0x62f   : > { %v2823_v4 = vadd.f32 %v3215_v33, %v2814_v62  ;;  %v4223_v62 = vpack.c.bf16 %v3032_v43, %v3031_v40 }
 0x630   : > { %4215 = vmatpush3.bf16.msra.mxu0 %v4214_v44 }
 0x631   : > { %v2825_v42 = vsub.f32 0.0, %v2823_v4  ;;  %4216 = vmatprep.subr.bf16.mxu0 %v4595_v10 }
 0x633   : > { %v2828_v50 = vmul.f32 1.442695, %v2825_v42 }
 0x634   : > { %4218 = vmatpush3.bf16.msra.mxu0 %v4217_v1 }
 0x635   : > { %4442 = vpow2.f32 %v2828_v50  ;;  %4219 = vmatprep.subr.bf16.mxu0 %v4595_v10  ;;  %v3009_v50 = vld [vmem:[%s5421_s10] sm:$0x1] }
 0x638   : > { %4221 = vmatpush3.bf16.msra.mxu0 %v4220_v9 }
 0x639   : > { %4222 = vmatprep.subr.bf16.mxu0 %v4595_v10 }
 0x63c   : > { %4224 = vmatpush3.bf16.msra.mxu0 %v4223_v62 }
 0x63f   : > { %v4443_v55 = vpop.eup %4442 }
 0x640   : > { %v2831_v56 = vadd.f32 1.0, %v4443_v55 }
 0x642   : > { %4444 = vrcp.f32 %v2831_v56 }
 0x643   : > { %4446 = vpow2.f32 %v2826_v6 }
 0x64c   : > { %v4445_v8 = vpop.eup %4444 }
 0x64d   : > { %v2835_v58 = vmul.f32 %v4445_v8, %v2823_v4  ;;  %v4447_v23 = vpop.eup %4446 }
 0x64e   : > { %v2830_v11 = vadd.f32 1.0, %v4447_v23 }
 0x64f   : > { %3441 = vmatmul.mubr.f32.vlgmr.msra.gmra.mrb[26].mxu1 %v2835_v58 }
 0x650   : > { %4179 = vmatpush3.bf16.msra.mxu1 %v4178_v18  ;;  %3475 = vmatprep.mubr.msk.f32.mxu1 %vm4596_vm7, %v4594_v0  ;;  %v2843_v0 = vld [vmem:[%s5420_s9 + $0x38] sm:$0xff]  ;;  %4448 = vrcp.f32 %v2830_v11  ;;  %v3033_v18 = vld [vmem:[%s5445_s29] sm:$0x1] }
 0x651   : > { %4180 = vmatprep.subr.bf16.mxu1 %v4595_v10  ;;  %v4187_v63 = vpack.c.bf16 %v2843_v0, %v2842_v13 }
 0x654   : > { %4182 = vmatpush3.bf16.msra.mxu1 %v4181_v54 }
 0x655   : > { %4183 = vmatprep.subr.bf16.mxu1 %v4595_v10 }
 0x658   : > { %4185 = vmatpush3.bf16.msra.mxu1 %v4184_v20 }
 0x659   : > { %4186 = vmatprep.subr.bf16.mxu1 %v4595_v10 }
 0x65a   : > { %v4449_v52 = vpop.eup %4448 }
 0x65b   : > { %v2834_v27 = vmul.f32 %v4449_v52, %v2822_v51 }
 0x65c   : > { %4188 = vmatpush3.bf16.msra.mxu1 %v4187_v63 }
 0x65d   : > { %4189 = vmatprep.subr.bf16.mxu1 %v4595_v10 }
 0x660   : > { %4191 = vmatpush3.bf16.msra.mxu1 %v4190_v25 }
 0x661   : > { %4192 = vmatprep.subr.bf16.mxu1 %v4595_v10 }
 0x664   : > { %4194 = vmatpush3.bf16.msra.mxu1 %v4193_v14 }
 0x665   : > { %4195 = vmatprep.subr.bf16.mxu1 %v4595_v10 }
 0x668   : > { %4197 = vmatpush3.bf16.msra.mxu1 %v4196_v22 }
 0x669   : > { %4198 = vmatprep.subr.bf16.mxu1 %v4595_v10 }
 0x66c   : > { %4200 = vmatpush3.bf16.msra.mxu1 %v4199_v39 }
 0x66f   : > { %3476 = vmatmul.mubr.f32.vlgmr.msra.gmra.mrb[28].mxu1 %v2834_v27 }
 0x722   : > { %v2935_v33 = vpop.f32.mrb[26].mxu1 }
 0x723   : > { %v3442_v4 = vpop.f32.mrb[27].mxu1 }
 0x742   : > { %v3005_v42 = vpop.f32.mrb[28].mxu1 }
 0x743   : > { %v3006_v55 = vadd.f32 %v3005_v42, %v2935_v33  ;;  %v3477_v10 = vpop.f32.mrb[29].mxu1 }
 0x745   : > { %v3010_v56 = vadd.f32 %v3009_v50, %v3006_v55 }
 0x747   : > { %v3011_v51 = vsub.f32 0.0, %v3010_v56 }
 0x749   : > { %v3012_v61 = vmul.f32 1.442695, %v3011_v51 }
 0x74b   : > { %4450 = vpow2.f32 %v3012_v61 }
 0x755   : > { %v4451_v2 = vpop.eup %4450 }
 0x756   : > { %v3014_v3 = vadd.f32 1.0, %v4451_v2 }
 0x758   : > { %4452 = vrcp.f32 %v3014_v3 }
 0x762   : > { %v4453_v6 = vpop.eup %4452 }
 0x763   : > { %v3016_v8 = vmul.f32 %v4453_v6, %v3010_v56 }
 0x765   : > { %3511 = vmatmul.mubr.f32.vlgmr.msra.gmra.mrb[16].mxu0 %v3016_v8 }
 0x838   : > { %v3100_v58 = vpop.f32.mrb[16].mxu0 }
 0x839   : > { %v3101_v46 = vadd.f32 %v3100_v58, %v3033_v18  ;;  %v3512_v29 = vpop.f32.mrb[17].mxu0 }
 0x83b   : > { %3104 = vst [vmem:[%s495_s22] sm:$0x1] %v3101_v46 }
 0x83c PF: > { %s5447_s23 = sld [smem:[#allocation12_spill]] }
 0x842   : > { %s26_s25 = sadd.s32 1, %s5447_s23  }
 0x843   : > { %p23_p6 = scmp.ge.s32.totalorder %s26_s25, 4  }
 0x845   :  { %25 = sbr.rel (!%p23_p6) target bundleno = 6 (0x6), region = 130 }
 0x84c   :  { %3122 = vsyncpa [#allocation3], 1 }
 0x84d   :  { %3124 = vsyncpa [#allocation3 + $0x1], 1 }
 0x84e   :  { %3125 = vsyncpa [#allocation5], 1 }
 0x84f   :  { %3126 = vsyncpa [#allocation8], 1 }

</bundles_post_ra>
